<compile_context>
chip_gen: v7x
topology: tpu7x:2x2x1
jax: 0.10.0
libtpu: 0.0.40
codegen_flags: <defaults>
</compile_context>

<pallas_src>
import numpy as np
import jax
import jax.numpy as jnp
from jax import lax
from jax.experimental import pallas as pl
from jax.experimental.pallas import tpu as pltpu

EPS = 1e-3
SCALE = 1.0  # Block35(scale=1.0) default


# ------------------------------- fused kernel --------------------------------

def _make_block35_kernel(scale):
    scale = float(scale)
    apply_scale = scale != 1.0

    def kernel(x_ref, wb_ref, bb_ref, wfu_ref, bfu_ref, w22_ref, b22_ref,
               wf_ref, bf_ref, o_ref, pad_ref, col_ref):
        bn, H, W, Cin = x_ref.shape
        M = bn * H * W

        # ---- fused branch-entry 1x1 convs (BN folded) + ReLU -----------------
        # wb column order: [branch1.0 | branch2.0 | branch0]  ->  the first 64
        # lanes are exactly the two 3x3-chain inputs (cheap prefix slice).
        xb = x_ref[...].reshape(M, Cin).astype(jnp.bfloat16)
        t = jnp.dot(xb, wb_ref[...], preferred_element_type=jnp.float32) + bb_ref[...]
        t = jnp.maximum(t, 0.0)                      # (M, 96) f32: [b1in | b2in | x0]

        # ---- re-zero ONLY the halo border of the padded scratch --------------
        # The interior is fully rewritten below every step and the border is
        # never written by anything else (keep it that way!).  Per-step (not
        # program_id==0) so it is correct under a 'parallel' megacore split.
        zrow = jnp.zeros((bn, 1, W + 2, 64), jnp.bfloat16)
        zcol = jnp.zeros((bn, H, 1, 64), jnp.bfloat16)
        pad_ref[:, 0:1, :, :] = zrow
        pad_ref[:, H + 1:H + 2, :, :] = zrow
        pad_ref[:, 1:H + 1, 0:1, :] = zcol
        pad_ref[:, 1:H + 1, W + 1:W + 2, :] = zcol

        def conv3x3(inp4d, cch, w_ref, b_ref):
            # inp4d: (bn, H, W, cch) bf16.  Zero-padded im2col in VMEM, then a
            # single (M, 9*cch) @ (9*cch, Nout) MXU pass; f32 bias + ReLU.
            pad_ref[:, 1:H + 1, 1:W + 1, :cch] = inp4d
            for kh in range(3):
                for kw in range(3):
                    c0 = (kh * 3 + kw) * cch
                    col_ref[:, :, :, c0:c0 + cch] = pad_ref[:, kh:kh + H, kw:kw + W, :cch]
            taps = col_ref[:, :, :, :9 * cch].reshape(M, 9 * cch)     # bf16
            y = jnp.dot(taps, w_ref[...], preferred_element_type=jnp.float32) + b_ref[...]
            return jnp.maximum(y, 0.0)

        # branch1 3x3 + branch2 first 3x3, fused via block-diagonal weights.
        # Output lane order: [0:32] = branch2 intermediate (y2), [32:64] = x1.
        t64 = t[:, :64].astype(jnp.bfloat16).reshape(bn, H, W, 64)
        fused = conv3x3(t64, 64, wfu_ref, bfu_ref)                    # (M, 64) f32

        # branch2 second 3x3 on y2 (prefix slice of `fused`).
        y2 = fused[:, :32].astype(jnp.bfloat16).reshape(bn, H, W, 32)
        x2 = conv3x3(y2, 32, w22_ref, b22_ref)                        # (M, 32) f32

        # ---- final 1x1 conv (K padded 96->128), scale, residual, ReLU --------
        # In-register concat order [y2 | x1 | x2 | x0]; wf rows are packed to
        # match (zero rows for the y2 lanes) so K is one dense 128-wide pass.
        cat = jnp.concatenate(
            [fused.astype(jnp.bfloat16),
             x2.astype(jnp.bfloat16),
             t[:, 64:96].astype(jnp.bfloat16)], axis=-1)              # (M, 128) bf16
        y = jnp.dot(cat, wf_ref[...], preferred_element_type=jnp.float32) + bf_ref[...]
        if apply_scale:
            y = y * scale
        # Residual: fresh f32 load (keeps the big input value's live range short).
        x_res = x_ref[...].reshape(M, Cin)
        o_ref[...] = jnp.maximum(y + x_res, 0.0).reshape(bn, H, W, Cin)

    return kernel


# --------------------------- parameters / BN fold ----------------------------

def fold_bn(w, bn, eps=EPS):
    gamma, beta, mean, var = bn
    s = gamma / jnp.sqrt(var + eps)
    return w * s, beta - mean * s   # scales the output-channel (last) dim


def init_params(key):
    def conv_w(k, shape, fan_in):
        return jax.random.normal(k, shape, jnp.float32) / np.sqrt(fan_in)

    def bn(k, c):
        k1, k2, k3, k4 = jax.random.split(k, 4)
        gamma = 1.0 + 0.1 * jax.random.normal(k1, (c,), jnp.float32)
        beta = 0.1 * jax.random.normal(k2, (c,), jnp.float32)
        mean = 0.1 * jax.random.normal(k3, (c,), jnp.float32)
        var = 0.5 + jax.random.uniform(k4, (c,), jnp.float32)
        return (gamma, beta, mean, var)

    ks = jax.random.split(key, 14)
    p = {}
    # branch0: 1x1 256 -> 32
    p['b0_w'] = conv_w(ks[0], (256, 32), 256);          p['b0_bn'] = bn(ks[1], 32)
    # branch1: 1x1 256 -> 32, 3x3 32 -> 32 (pad 1)
    p['b1_0_w'] = conv_w(ks[2], (256, 32), 256);        p['b1_0_bn'] = bn(ks[3], 32)
    p['b1_1_w'] = conv_w(ks[4], (3, 3, 32, 32), 288);   p['b1_1_bn'] = bn(ks[5], 32)
    # branch2: 1x1 256 -> 32, 3x3 32 -> 32, 3x3 32 -> 32
    p['b2_0_w'] = conv_w(ks[6], (256, 32), 256);        p['b2_0_bn'] = bn(ks[7], 32)
    p['b2_1_w'] = conv_w(ks[8], (3, 3, 32, 32), 288);   p['b2_1_bn'] = bn(ks[9], 32)
    p['b2_2_w'] = conv_w(ks[10], (3, 3, 32, 32), 288);  p['b2_2_bn'] = bn(ks[11], 32)
    # final conv2d: 1x1 96 -> 256, with bias, no BN / no ReLU before residual
    p['final_w'] = conv_w(ks[12], (96, 256), 96)
    p['final_b'] = 0.1 * jax.random.normal(ks[13], (256,), jnp.float32)
    return p


def _pack_weights(params):
    # entry 1x1s, column order [branch1.0 | branch2.0 | branch0]
    w0, b0 = fold_bn(params['b0_w'], params['b0_bn'])
    w10, b10 = fold_bn(params['b1_0_w'], params['b1_0_bn'])
    w20, b20 = fold_bn(params['b2_0_w'], params['b2_0_bn'])
    wb = jnp.concatenate([w10, w20, w0], axis=1).astype(jnp.bfloat16)   # (256, 96)
    bb = jnp.concatenate([b10, b20, b0], axis=0).reshape(1, 96)         # f32

    # fused 3x3 (branch1.1 + branch2.1): block-diagonal (576, 64).
    # Per-tap input rows = [b1in(32); b2in(32)], output cols = [y2(32) | x1(32)].
    w11, b11 = fold_bn(params['b1_1_w'], params['b1_1_bn'])             # (3,3,32,32)
    w21, b21 = fold_bn(params['b2_1_w'], params['b2_1_bn'])
    w11r = w11.reshape(9, 32, 32)
    w21r = w21.reshape(9, 32, 32)
    z = jnp.zeros((9, 32, 32), jnp.float32)
    top = jnp.concatenate([z, w11r], axis=2)        # b1in rows -> [y2: 0   | x1: w11]
    bot = jnp.concatenate([w21r, z], axis=2)        # b2in rows -> [y2: w21 | x1: 0  ]
    wfu = jnp.concatenate([top, bot], axis=1).reshape(576, 64).astype(jnp.bfloat16)
    bfu = jnp.concatenate([b21, b11], axis=0).reshape(1, 64)            # [y2 | x1] bias

    # branch2 second 3x3
    w22, b22 = fold_bn(params['b2_2_w'], params['b2_2_bn'])
    w22 = w22.reshape(288, 32).astype(jnp.bfloat16)
    b22 = b22.reshape(1, 32)

    # final 1x1: rows reordered to the in-kernel concat [y2 | x1 | x2 | x0],
    # with zero rows for y2 -> dense K = 128.
    wf = params['final_w']                                              # rows [x0|x1|x2]
    wf128 = jnp.concatenate([jnp.zeros((32, 256), jnp.float32),
                             wf[32:64], wf[64:96], wf[0:32]],
                            axis=0).astype(jnp.bfloat16)                # (128, 256)
    bf = params['final_b'].reshape(1, 256)
    return (wb, bb, wfu, bfu, w22, b22, wf128, bf)


# ------------------------------ Block35 forward -------------------------------

def block35_forward(x_nhwc, params, scale=SCALE, block_n=None):
    """Fused Block35 forward.  Input and output are NHWC (no layout transposes)."""
    N, H, W, C = x_nhwc.shape
    assert C == 256, "Block35 requires 256 input channels"
    weights = _pack_weights(params)

    # ---- batch tile: ~4 MiB of input per step, but keep the grid length >= 2
    #      when N >= 2 so both v7x TensorCores get work. ----
    if block_n is None:
        per_img_bytes = H * W * 256 * 4
        block_n = max(1, min(N, (4 * 1024 * 1024) // max(per_img_bytes, 1)))
        if N >= 2:
            block_n = min(block_n, max(1, N // 2))
        while N % block_n:
            block_n -= 1
    grid = (N // block_n,)

    # Explicit VMEM budget: double-buffered in/out blocks + bf16 pad/col scratch.
    m = block_n * H * W
    est = (4 * m * 256 * 4                               # 2x in + 2x out blocks
           + block_n * (H + 2) * (W + 2) * 128 * 2       # pad (64 ch -> 128-lane tile)
           + m * 640 * 2                                 # col (576 -> 640 lanes)
           + (1 << 20))                                  # weights / biases
    vmem_limit = int(min(max(est * 5 // 4, 32 << 20), 48 << 20))

    def full_spec(a):
        zeros = (0,) * a.ndim
        return pl.BlockSpec(a.shape, lambda n, _z=zeros: _z)

    x_spec = pl.BlockSpec((block_n, H, W, 256), lambda n: (n, 0, 0, 0))
    out_spec = pl.BlockSpec((block_n, H, W, 256), lambda n: (n, 0, 0, 0))

    out = pl.pallas_call(
        _make_block35_kernel(scale),
        out_shape=jax.ShapeDtypeStruct((N, H, W, 256), jnp.float32),
        grid_spec=pltpu.PrefetchScalarGridSpec(
            num_scalar_prefetch=0,
            grid=grid,
            in_specs=[x_spec] + [full_spec(a) for a in weights],
            out_specs=out_spec,
            scratch_shapes=[
                pltpu.VMEM((block_n, H + 2, W + 2, 64), jnp.bfloat16),  # padded halo buffer
                pltpu.VMEM((block_n, H, W, 576), jnp.bfloat16),         # im2col taps
            ],
        ),
        compiler_params=pltpu.CompilerParams(
            dimension_semantics=("parallel",),
            vmem_limit_bytes=vmem_limit),
    )(x_nhwc, *weights)
    return out


def block35_forward_nchw(x_nchw, params, scale=SCALE, block_n=None):
    """PyTorch-layout (NCHW) compatibility wrapper.  Prefer the NHWC entry point
    and keep the surrounding model NHWC to avoid the layout transposes."""
    x = jnp.transpose(x_nchw, (0, 2, 3, 1))
    out = block35_forward(x, params, scale=scale, block_n=block_n)
    return jnp.transpose(out, (0, 3, 1, 2))


# ----------------------------- plain-JAX reference ----------------------------

def block35_reference(x_nchw, params, scale=SCALE):
    x = jnp.transpose(x_nchw, (0, 2, 3, 1))
    dn = ('NHWC', 'HWIO', 'NHWC')

    def conv(xx, w, b, pad):
        if w.ndim == 2:
            w = w.reshape(1, 1, *w.shape)
        y = lax.conv_general_dilated(xx, w, (1, 1), pad, dimension_numbers=dn)
        return y + b

    def bcr(xx, w, bn, pad):
        wf_, bf_ = fold_bn(w, bn)
        return jnp.maximum(conv(xx, wf_, bf_, pad), 0.0)

    x0 = bcr(x, params['b0_w'], params['b0_bn'], 'VALID')
    x1 = bcr(x, params['b1_0_w'], params['b1_0_bn'], 'VALID')
    x1 = bcr(x1, params['b1_1_w'], params['b1_1_bn'], 'SAME')
    x2 = bcr(x, params['b2_0_w'], params['b2_0_bn'], 'VALID')
    x2 = bcr(x2, params['b2_1_w'], params['b2_1_bn'], 'SAME')
    x2 = bcr(x2, params['b2_2_w'], params['b2_2_bn'], 'SAME')
    cat = jnp.concatenate([x0, x1, x2], axis=-1)
    out = conv(cat, params['final_w'], params['final_b'], 'VALID')
    out = jnp.maximum(scale * out + x, 0.0)
    return jnp.transpose(out, (0, 3, 1, 2))


# ------------------------------------ main ------------------------------------

if __name__ == "__main__":
    key = jax.random.PRNGKey(0)
    kx, kp = jax.random.split(key)
    # Block35 hard-requires 256 input channels; keep batch/spatial small.
    x_nchw = jax.random.normal(kx, (2, 256, 8, 8), jnp.float32)   # PyTorch layout
    params = init_params(kp)

    # Kernel runs NHWC end-to-end; the layout conversion here is harness-only.
    x_nhwc = jnp.transpose(x_nchw, (0, 2, 3, 1))
    out_nhwc = jax.jit(block35_forward)(x_nhwc, params)
    out_nhwc = jax.block_until_ready(out_nhwc)

    ref_nchw = block35_reference(x_nchw, params)
    np.testing.assert_allclose(np.transpose(np.asarray(out_nhwc), (0, 3, 1, 2)),
                               np.asarray(ref_nchw), atol=5e-2, rtol=5e-2)
    assert out_nhwc.shape == x_nhwc.shape and out_nhwc.dtype == jnp.float32
    print("KERNEL_OK")
</pallas_src>

<mosaic_0001>
module attributes {stable_mosaic.version = 11 : i64} {
  func.func @kernel(%arg0: i32, %arg1: memref<1x8x8x256xf32, #tpu.memory_space<vmem>>, %arg2: memref<256x96xbf16, #tpu.memory_space<vmem>>, %arg3: memref<1x96xf32, #tpu.memory_space<vmem>>, %arg4: memref<576x64xbf16, #tpu.memory_space<vmem>>, %arg5: memref<1x64xf32, #tpu.memory_space<vmem>>, %arg6: memref<288x32xbf16, #tpu.memory_space<vmem>>, %arg7: memref<1x32xf32, #tpu.memory_space<vmem>>, %arg8: memref<128x256xbf16, #tpu.memory_space<vmem>>, %arg9: memref<1x256xf32, #tpu.memory_space<vmem>>, %arg10: memref<1x8x8x256xf32, #tpu.memory_space<vmem>>, %arg11: memref<1x10x10x64xbf16, #tpu.memory_space<vmem>>, %arg12: memref<1x8x8x576xbf16, #tpu.memory_space<vmem>>) attributes {dimension_semantics = [#tpu.dimension_semantics<parallel>], iteration_bounds = array<i64: 2>, scalar_prefetch = 0 : i64, scratch_operands = 2 : i64, tpu.core_type = #tpu.core_type<tc>, window_params = [{transform_indices = @transform_0, window_bounds = array<i64: 1, 8, 8, 256>}, {pipeline_mode = #tpu.pipeline_mode<synchronous>, transform_indices = @transform_1, window_bounds = array<i64: 256, 96>}, {pipeline_mode = #tpu.pipeline_mode<synchronous>, transform_indices = @transform_2, window_bounds = array<i64: 1, 96>}, {pipeline_mode = #tpu.pipeline_mode<synchronous>, transform_indices = @transform_3, window_bounds = array<i64: 576, 64>}, {pipeline_mode = #tpu.pipeline_mode<synchronous>, transform_indices = @transform_4, window_bounds = array<i64: 1, 64>}, {pipeline_mode = #tpu.pipeline_mode<synchronous>, transform_indices = @transform_5, window_bounds = array<i64: 288, 32>}, {pipeline_mode = #tpu.pipeline_mode<synchronous>, transform_indices = @transform_6, window_bounds = array<i64: 1, 32>}, {pipeline_mode = #tpu.pipeline_mode<synchronous>, transform_indices = @transform_7, window_bounds = array<i64: 128, 256>}, {pipeline_mode = #tpu.pipeline_mode<synchronous>, transform_indices = @transform_8, window_bounds = array<i64: 1, 256>}, {transform_indices = @transform_9, window_bounds = array<i64: 1, 8, 8, 256>}]} {
    %c0 = arith.constant 0 : index
    %c0_0 = arith.constant 0 : index
    %c0_1 = arith.constant 0 : index
    %c0_2 = arith.constant 0 : index
    %0 = vector.load %arg1[%c0, %c0_0, %c0_1, %c0_2] : memref<1x8x8x256xf32, #tpu.memory_space<vmem>>, vector<1x8x8x256xf32>
    %1 = vector.shape_cast %0 : vector<1x8x8x256xf32> to vector<64x256xf32>
    %2 = arith.truncf %1 : vector<64x256xf32> to vector<64x256xbf16>
    %c0_3 = arith.constant 0 : index
    %c0_4 = arith.constant 0 : index
    %3 = vector.load %arg2[%c0_3, %c0_4] : memref<256x96xbf16, #tpu.memory_space<vmem>>, vector<256x96xbf16>
    %cst = arith.constant dense<0.000000e+00> : vector<64x96xf32>
    %4 = tpu.matmul %2, %3, %cst {dimension_numbers = #tpu.dot_dimension_numbers<[1], [0], [0], [1], [0, 0, 1, 1], [], []>} : vector<64x256xbf16>, vector<256x96xbf16>, vector<64x96xf32> -> vector<64x96xf32>
    %c0_5 = arith.constant 0 : index
    %c0_6 = arith.constant 0 : index
    %5 = vector.load %arg3[%c0_5, %c0_6] : memref<1x96xf32, #tpu.memory_space<vmem>>, vector<1x96xf32>
    %6 = vector.broadcast %5 : vector<1x96xf32> to vector<64x96xf32>
    %7 = arith.addf %4, %6 : vector<64x96xf32>
    %cst_7 = arith.constant 0.000000e+00 : f32
    %8 = vector.broadcast %cst_7 : f32 to vector<64x96xf32>
    %9 = arith.maximumf %7, %8 : vector<64x96xf32>
    %cst_8 = arith.constant 0.000000e+00 : bf16
    %10 = vector.broadcast %cst_8 : bf16 to vector<1x1x10x64xbf16>
    %cst_9 = arith.constant 0.000000e+00 : bf16
    %11 = vector.broadcast %cst_9 : bf16 to vector<1x8x1x64xbf16>
    %c0_10 = arith.constant 0 : index
    %c0_11 = arith.constant 0 : index
    %c0_12 = arith.constant 0 : index
    %c0_13 = arith.constant 0 : index
    %12 = vector.load %arg11[%c0_10, %c0_11, %c0_12, %c0_13] : memref<1x10x10x64xbf16, #tpu.memory_space<vmem>>, vector<1x1x10x64xbf16>
    tpu.vector_store %arg11[%c0_10, %c0_11, %c0_12, %c0_13], %10 {strides = array<i32>} : memref<1x10x10x64xbf16, #tpu.memory_space<vmem>>, vector<1x1x10x64xbf16>,
    %c0_14 = arith.constant 0 : index
    %c9 = arith.constant 9 : index
    %c0_15 = arith.constant 0 : index
    %c0_16 = arith.constant 0 : index
    %13 = vector.load %arg11[%c0_14, %c9, %c0_15, %c0_16] : memref<1x10x10x64xbf16, #tpu.memory_space<vmem>>, vector<1x1x10x64xbf16>
    tpu.vector_store %arg11[%c0_14, %c9, %c0_15, %c0_16], %10 {strides = array<i32>} : memref<1x10x10x64xbf16, #tpu.memory_space<vmem>>, vector<1x1x10x64xbf16>,
    %c0_17 = arith.constant 0 : index
    %c1 = arith.constant 1 : index
    %c0_18 = arith.constant 0 : index
    %c0_19 = arith.constant 0 : index
    %14 = vector.load %arg11[%c0_17, %c1, %c0_18, %c0_19] : memref<1x10x10x64xbf16, #tpu.memory_space<vmem>>, vector<1x8x1x64xbf16>
    tpu.vector_store %arg11[%c0_17, %c1, %c0_18, %c0_19], %11 {strides = array<i32>} : memref<1x10x10x64xbf16, #tpu.memory_space<vmem>>, vector<1x8x1x64xbf16>,
    %c0_20 = arith.constant 0 : index
    %c1_21 = arith.constant 1 : index
    %c9_22 = arith.constant 9 : index
    %c0_23 = arith.constant 0 : index
    %15 = vector.load %arg11[%c0_20, %c1_21, %c9_22, %c0_23] : memref<1x10x10x64xbf16, #tpu.memory_space<vmem>>, vector<1x8x1x64xbf16>
    tpu.vector_store %arg11[%c0_20, %c1_21, %c9_22, %c0_23], %11 {strides = array<i32>} : memref<1x10x10x64xbf16, #tpu.memory_space<vmem>>, vector<1x8x1x64xbf16>,
    %16 = vector.extract_strided_slice %9 {offsets = [0, 0], sizes = [64, 64], strides = [1, 1]} : vector<64x96xf32> to vector<64x64xf32>
    %17 = arith.truncf %16 : vector<64x64xf32> to vector<64x64xbf16>
    %18 = vector.shape_cast %17 : vector<64x64xbf16> to vector<1x8x8x64xbf16>
    %c0_24 = arith.constant 0 : index
    %c1_25 = arith.constant 1 : index
    %c1_26 = arith.constant 1 : index
    %c0_27 = arith.constant 0 : index
    %19 = vector.load %arg11[%c0_24, %c1_25, %c1_26, %c0_27] : memref<1x10x10x64xbf16, #tpu.memory_space<vmem>>, vector<1x8x8x64xbf16>
    tpu.vector_store %arg11[%c0_24, %c1_25, %c1_26, %c0_27], %18 {strides = array<i32>} : memref<1x10x10x64xbf16, #tpu.memory_space<vmem>>, vector<1x8x8x64xbf16>,
    %c0_28 = arith.constant 0 : index
    %c0_29 = arith.constant 0 : index
    %c0_30 = arith.constant 0 : index
    %c0_31 = arith.constant 0 : index
    %20 = vector.load %arg11[%c0_28, %c0_29, %c0_30, %c0_31] : memref<1x10x10x64xbf16, #tpu.memory_space<vmem>>, vector<1x8x8x64xbf16>
    %c0_32 = arith.constant 0 : index
    %c0_33 = arith.constant 0 : index
    %c0_34 = arith.constant 0 : index
    %c0_35 = arith.constant 0 : index
    %21 = vector.load %arg12[%c0_32, %c0_33, %c0_34, %c0_35] : memref<1x8x8x576xbf16, #tpu.memory_space<vmem>>, vector<1x8x8x64xbf16>
    tpu.vector_store %arg12[%c0_32, %c0_33, %c0_34, %c0_35], %20 {strides = array<i32>} : memref<1x8x8x576xbf16, #tpu.memory_space<vmem>>, vector<1x8x8x64xbf16>,
    %c0_36 = arith.constant 0 : index
    %c0_37 = arith.constant 0 : index
    %c1_38 = arith.constant 1 : index
    %c0_39 = arith.constant 0 : index
    %22 = vector.load %arg11[%c0_36, %c0_37, %c1_38, %c0_39] : memref<1x10x10x64xbf16, #tpu.memory_space<vmem>>, vector<1x8x8x64xbf16>
    %c0_40 = arith.constant 0 : index
    %c0_41 = arith.constant 0 : index
    %c0_42 = arith.constant 0 : index
    %c64 = arith.constant 64 : index
    %23 = vector.load %arg12[%c0_40, %c0_41, %c0_42, %c64] : memref<1x8x8x576xbf16, #tpu.memory_space<vmem>>, vector<1x8x8x64xbf16>
    tpu.vector_store %arg12[%c0_40, %c0_41, %c0_42, %c64], %22 {strides = array<i32>} : memref<1x8x8x576xbf16, #tpu.memory_space<vmem>>, vector<1x8x8x64xbf16>,
    %c0_43 = arith.constant 0 : index
    %c0_44 = arith.constant 0 : index
    %c2 = arith.constant 2 : index
    %c0_45 = arith.constant 0 : index
    %24 = vector.load %arg11[%c0_43, %c0_44, %c2, %c0_45] : memref<1x10x10x64xbf16, #tpu.memory_space<vmem>>, vector<1x8x8x64xbf16>
    %c0_46 = arith.constant 0 : index
    %c0_47 = arith.constant 0 : index
    %c0_48 = arith.constant 0 : index
    %c128 = arith.constant 128 : index
    %25 = vector.load %arg12[%c0_46, %c0_47, %c0_48, %c128] : memref<1x8x8x576xbf16, #tpu.memory_space<vmem>>, vector<1x8x8x64xbf16>
    tpu.vector_store %arg12[%c0_46, %c0_47, %c0_48, %c128], %24 {strides = array<i32>} : memref<1x8x8x576xbf16, #tpu.memory_space<vmem>>, vector<1x8x8x64xbf16>,
    %c0_49 = arith.constant 0 : index
    %c1_50 = arith.constant 1 : index
    %c0_51 = arith.constant 0 : index
    %c0_52 = arith.constant 0 : index
    %26 = vector.load %arg11[%c0_49, %c1_50, %c0_51, %c0_52] : memref<1x10x10x64xbf16, #tpu.memory_space<vmem>>, vector<1x8x8x64xbf16>
    %c0_53 = arith.constant 0 : index
    %c0_54 = arith.constant 0 : index
    %c0_55 = arith.constant 0 : index
    %c192 = arith.constant 192 : index
    %27 = vector.load %arg12[%c0_53, %c0_54, %c0_55, %c192] : memref<1x8x8x576xbf16, #tpu.memory_space<vmem>>, vector<1x8x8x64xbf16>
    tpu.vector_store %arg12[%c0_53, %c0_54, %c0_55, %c192], %26 {strides = array<i32>} : memref<1x8x8x576xbf16, #tpu.memory_space<vmem>>, vector<1x8x8x64xbf16>,
    %c0_56 = arith.constant 0 : index
    %c1_57 = arith.constant 1 : index
    %c1_58 = arith.constant 1 : index
    %c0_59 = arith.constant 0 : index
    %28 = vector.load %arg11[%c0_56, %c1_57, %c1_58, %c0_59] : memref<1x10x10x64xbf16, #tpu.memory_space<vmem>>, vector<1x8x8x64xbf16>
    %c0_60 = arith.constant 0 : index
    %c0_61 = arith.constant 0 : index
    %c0_62 = arith.constant 0 : index
    %c256 = arith.constant 256 : index
    %29 = vector.load %arg12[%c0_60, %c0_61, %c0_62, %c256] : memref<1x8x8x576xbf16, #tpu.memory_space<vmem>>, vector<1x8x8x64xbf16>
    tpu.vector_store %arg12[%c0_60, %c0_61, %c0_62, %c256], %28 {strides = array<i32>} : memref<1x8x8x576xbf16, #tpu.memory_space<vmem>>, vector<1x8x8x64xbf16>,
    %c0_63 = arith.constant 0 : index
    %c1_64 = arith.constant 1 : index
    %c2_65 = arith.constant 2 : index
    %c0_66 = arith.constant 0 : index
    %30 = vector.load %arg11[%c0_63, %c1_64, %c2_65, %c0_66] : memref<1x10x10x64xbf16, #tpu.memory_space<vmem>>, vector<1x8x8x64xbf16>
    %c0_67 = arith.constant 0 : index
    %c0_68 = arith.constant 0 : index
    %c0_69 = arith.constant 0 : index
    %c320 = arith.constant 320 : index
    %31 = vector.load %arg12[%c0_67, %c0_68, %c0_69, %c320] : memref<1x8x8x576xbf16, #tpu.memory_space<vmem>>, vector<1x8x8x64xbf16>
    tpu.vector_store %arg12[%c0_67, %c0_68, %c0_69, %c320], %30 {strides = array<i32>} : memref<1x8x8x576xbf16, #tpu.memory_space<vmem>>, vector<1x8x8x64xbf16>,
    %c0_70 = arith.constant 0 : index
    %c2_71 = arith.constant 2 : index
    %c0_72 = arith.constant 0 : index
    %c0_73 = arith.constant 0 : index
    %32 = vector.load %arg11[%c0_70, %c2_71, %c0_72, %c0_73] : memref<1x10x10x64xbf16, #tpu.memory_space<vmem>>, vector<1x8x8x64xbf16>
    %c0_74 = arith.constant 0 : index
    %c0_75 = arith.constant 0 : index
    %c0_76 = arith.constant 0 : index
    %c384 = arith.constant 384 : index
    %33 = vector.load %arg12[%c0_74, %c0_75, %c0_76, %c384] : memref<1x8x8x576xbf16, #tpu.memory_space<vmem>>, vector<1x8x8x64xbf16>
    tpu.vector_store %arg12[%c0_74, %c0_75, %c0_76, %c384], %32 {strides = array<i32>} : memref<1x8x8x576xbf16, #tpu.memory_space<vmem>>, vector<1x8x8x64xbf16>,
    %c0_77 = arith.constant 0 : index
    %c2_78 = arith.constant 2 : index
    %c1_79 = arith.constant 1 : index
    %c0_80 = arith.constant 0 : index
    %34 = vector.load %arg11[%c0_77, %c2_78, %c1_79, %c0_80] : memref<1x10x10x64xbf16, #tpu.memory_space<vmem>>, vector<1x8x8x64xbf16>
    %c0_81 = arith.constant 0 : index
    %c0_82 = arith.constant 0 : index
    %c0_83 = arith.constant 0 : index
    %c448 = arith.constant 448 : index
    %35 = vector.load %arg12[%c0_81, %c0_82, %c0_83, %c448] : memref<1x8x8x576xbf16, #tpu.memory_space<vmem>>, vector<1x8x8x64xbf16>
    tpu.vector_store %arg12[%c0_81, %c0_82, %c0_83, %c448], %34 {strides = array<i32>} : memref<1x8x8x576xbf16, #tpu.memory_space<vmem>>, vector<1x8x8x64xbf16>,
    %c0_84 = arith.constant 0 : index
    %c2_85 = arith.constant 2 : index
    %c2_86 = arith.constant 2 : index
    %c0_87 = arith.constant 0 : index
    %36 = vector.load %arg11[%c0_84, %c2_85, %c2_86, %c0_87] : memref<1x10x10x64xbf16, #tpu.memory_space<vmem>>, vector<1x8x8x64xbf16>
    %c0_88 = arith.constant 0 : index
    %c0_89 = arith.constant 0 : index
    %c0_90 = arith.constant 0 : index
    %c512 = arith.constant 512 : index
    %37 = vector.load %arg12[%c0_88, %c0_89, %c0_90, %c512] : memref<1x8x8x576xbf16, #tpu.memory_space<vmem>>, vector<1x8x8x64xbf16>
    tpu.vector_store %arg12[%c0_88, %c0_89, %c0_90, %c512], %36 {strides = array<i32>} : memref<1x8x8x576xbf16, #tpu.memory_space<vmem>>, vector<1x8x8x64xbf16>,
    %c0_91 = arith.constant 0 : index
    %c0_92 = arith.constant 0 : index
    %c0_93 = arith.constant 0 : index
    %c0_94 = arith.constant 0 : index
    %38 = vector.load %arg12[%c0_91, %c0_92, %c0_93, %c0_94] : memref<1x8x8x576xbf16, #tpu.memory_space<vmem>>, vector<1x8x8x576xbf16>
    %39 = vector.shape_cast %38 : vector<1x8x8x576xbf16> to vector<64x576xbf16>
    %c0_95 = arith.constant 0 : index
    %c0_96 = arith.constant 0 : index
    %40 = vector.load %arg4[%c0_95, %c0_96] : memref<576x64xbf16, #tpu.memory_space<vmem>>, vector<576x64xbf16>
    %cst_97 = arith.constant dense<0.000000e+00> : vector<64x64xf32>
    %41 = tpu.matmul %39, %40, %cst_97 {dimension_numbers = #tpu.dot_dimension_numbers<[1], [0], [0], [1], [0, 0, 1, 1], [], []>} : vector<64x576xbf16>, vector<576x64xbf16>, vector<64x64xf32> -> vector<64x64xf32>
    %c0_98 = arith.constant 0 : index
    %c0_99 = arith.constant 0 : index
    %42 = vector.load %arg5[%c0_98, %c0_99] : memref<1x64xf32, #tpu.memory_space<vmem>>, vector<1x64xf32>
    %43 = vector.broadcast %42 : vector<1x64xf32> to vector<64x64xf32>
    %44 = arith.addf %41, %43 : vector<64x64xf32>
    %cst_100 = arith.constant 0.000000e+00 : f32
    %45 = vector.broadcast %cst_100 : f32 to vector<64x64xf32>
    %46 = arith.maximumf %44, %45 : vector<64x64xf32>
    %47 = vector.extract_strided_slice %46 {offsets = [0, 0], sizes = [64, 32], strides = [1, 1]} : vector<64x64xf32> to vector<64x32xf32>
    %48 = arith.truncf %47 : vector<64x32xf32> to vector<64x32xbf16>
    %49 = vector.shape_cast %48 : vector<64x32xbf16> to vector<1x8x8x32xbf16>
    %c0_101 = arith.constant 0 : index
    %c1_102 = arith.constant 1 : index
    %c1_103 = arith.constant 1 : index
    %c0_104 = arith.constant 0 : index
    %50 = vector.load %arg11[%c0_101, %c1_102, %c1_103, %c0_104] : memref<1x10x10x64xbf16, #tpu.memory_space<vmem>>, vector<1x8x8x32xbf16>
    tpu.vector_store %arg11[%c0_101, %c1_102, %c1_103, %c0_104], %49 {strides = array<i32>} : memref<1x10x10x64xbf16, #tpu.memory_space<vmem>>, vector<1x8x8x32xbf16>,
    %c0_105 = arith.constant 0 : index
    %c0_106 = arith.constant 0 : index
    %c0_107 = arith.constant 0 : index
    %c0_108 = arith.constant 0 : index
    %51 = vector.load %arg11[%c0_105, %c0_106, %c0_107, %c0_108] : memref<1x10x10x64xbf16, #tpu.memory_space<vmem>>, vector<1x8x8x32xbf16>
    %c0_109 = arith.constant 0 : index
    %c0_110 = arith.constant 0 : index
    %c0_111 = arith.constant 0 : index
    %c0_112 = arith.constant 0 : index
    %52 = vector.load %arg12[%c0_109, %c0_110, %c0_111, %c0_112] : memref<1x8x8x576xbf16, #tpu.memory_space<vmem>>, vector<1x8x8x32xbf16>
    tpu.vector_store %arg12[%c0_109, %c0_110, %c0_111, %c0_112], %51 {strides = array<i32>} : memref<1x8x8x576xbf16, #tpu.memory_space<vmem>>, vector<1x8x8x32xbf16>,
    %c0_113 = arith.constant 0 : index
    %c0_114 = arith.constant 0 : index
    %c1_115 = arith.constant 1 : index
    %c0_116 = arith.constant 0 : index
    %53 = vector.load %arg11[%c0_113, %c0_114, %c1_115, %c0_116] : memref<1x10x10x64xbf16, #tpu.memory_space<vmem>>, vector<1x8x8x32xbf16>
    %c0_117 = arith.constant 0 : index
    %c0_118 = arith.constant 0 : index
    %c0_119 = arith.constant 0 : index
    %c32 = arith.constant 32 : index
    %54 = vector.load %arg12[%c0_117, %c0_118, %c0_119, %c32] : memref<1x8x8x576xbf16, #tpu.memory_space<vmem>>, vector<1x8x8x32xbf16>
    tpu.vector_store %arg12[%c0_117, %c0_118, %c0_119, %c32], %53 {strides = array<i32>} : memref<1x8x8x576xbf16, #tpu.memory_space<vmem>>, vector<1x8x8x32xbf16>,
    %c0_120 = arith.constant 0 : index
    %c0_121 = arith.constant 0 : index
    %c2_122 = arith.constant 2 : index
    %c0_123 = arith.constant 0 : index
    %55 = vector.load %arg11[%c0_120, %c0_121, %c2_122, %c0_123] : memref<1x10x10x64xbf16, #tpu.memory_space<vmem>>, vector<1x8x8x32xbf16>
    %c0_124 = arith.constant 0 : index
    %c0_125 = arith.constant 0 : index
    %c0_126 = arith.constant 0 : index
    %c64_127 = arith.constant 64 : index
    %56 = vector.load %arg12[%c0_124, %c0_125, %c0_126, %c64_127] : memref<1x8x8x576xbf16, #tpu.memory_space<vmem>>, vector<1x8x8x32xbf16>
    tpu.vector_store %arg12[%c0_124, %c0_125, %c0_126, %c64_127], %55 {strides = array<i32>} : memref<1x8x8x576xbf16, #tpu.memory_space<vmem>>, vector<1x8x8x32xbf16>,
    %c0_128 = arith.constant 0 : index
    %c1_129 = arith.constant 1 : index
    %c0_130 = arith.constant 0 : index
    %c0_131 = arith.constant 0 : index
    %57 = vector.load %arg11[%c0_128, %c1_129, %c0_130, %c0_131] : memref<1x10x10x64xbf16, #tpu.memory_space<vmem>>, vector<1x8x8x32xbf16>
    %c0_132 = arith.constant 0 : index
    %c0_133 = arith.constant 0 : index
    %c0_134 = arith.constant 0 : index
    %c96 = arith.constant 96 : index
    %58 = vector.load %arg12[%c0_132, %c0_133, %c0_134, %c96] : memref<1x8x8x576xbf16, #tpu.memory_space<vmem>>, vector<1x8x8x32xbf16>
    tpu.vector_store %arg12[%c0_132, %c0_133, %c0_134, %c96], %57 {strides = array<i32>} : memref<1x8x8x576xbf16, #tpu.memory_space<vmem>>, vector<1x8x8x32xbf16>,
    %c0_135 = arith.constant 0 : index
    %c1_136 = arith.constant 1 : index
    %c1_137 = arith.constant 1 : index
    %c0_138 = arith.constant 0 : index
    %59 = vector.load %arg11[%c0_135, %c1_136, %c1_137, %c0_138] : memref<1x10x10x64xbf16, #tpu.memory_space<vmem>>, vector<1x8x8x32xbf16>
    %c0_139 = arith.constant 0 : index
    %c0_140 = arith.constant 0 : index
    %c0_141 = arith.constant 0 : index
    %c128_142 = arith.constant 128 : index
    %60 = vector.load %arg12[%c0_139, %c0_140, %c0_141, %c128_142] : memref<1x8x8x576xbf16, #tpu.memory_space<vmem>>, vector<1x8x8x32xbf16>
    tpu.vector_store %arg12[%c0_139, %c0_140, %c0_141, %c128_142], %59 {strides = array<i32>} : memref<1x8x8x576xbf16, #tpu.memory_space<vmem>>, vector<1x8x8x32xbf16>,
    %c0_143 = arith.constant 0 : index
    %c1_144 = arith.constant 1 : index
    %c2_145 = arith.constant 2 : index
    %c0_146 = arith.constant 0 : index
    %61 = vector.load %arg11[%c0_143, %c1_144, %c2_145, %c0_146] : memref<1x10x10x64xbf16, #tpu.memory_space<vmem>>, vector<1x8x8x32xbf16>
    %c0_147 = arith.constant 0 : index
    %c0_148 = arith.constant 0 : index
    %c0_149 = arith.constant 0 : index
    %c160 = arith.constant 160 : index
    %62 = vector.load %arg12[%c0_147, %c0_148, %c0_149, %c160] : memref<1x8x8x576xbf16, #tpu.memory_space<vmem>>, vector<1x8x8x32xbf16>
    tpu.vector_store %arg12[%c0_147, %c0_148, %c0_149, %c160], %61 {strides = array<i32>} : memref<1x8x8x576xbf16, #tpu.memory_space<vmem>>, vector<1x8x8x32xbf16>,
    %c0_150 = arith.constant 0 : index
    %c2_151 = arith.constant 2 : index
    %c0_152 = arith.constant 0 : index
    %c0_153 = arith.constant 0 : index
    %63 = vector.load %arg11[%c0_150, %c2_151, %c0_152, %c0_153] : memref<1x10x10x64xbf16, #tpu.memory_space<vmem>>, vector<1x8x8x32xbf16>
    %c0_154 = arith.constant 0 : index
    %c0_155 = arith.constant 0 : index
    %c0_156 = arith.constant 0 : index
    %c192_157 = arith.constant 192 : index
    %64 = vector.load %arg12[%c0_154, %c0_155, %c0_156, %c192_157] : memref<1x8x8x576xbf16, #tpu.memory_space<vmem>>, vector<1x8x8x32xbf16>
    tpu.vector_store %arg12[%c0_154, %c0_155, %c0_156, %c192_157], %63 {strides = array<i32>} : memref<1x8x8x576xbf16, #tpu.memory_space<vmem>>, vector<1x8x8x32xbf16>,
    %c0_158 = arith.constant 0 : index
    %c2_159 = arith.constant 2 : index
    %c1_160 = arith.constant 1 : index
    %c0_161 = arith.constant 0 : index
    %65 = vector.load %arg11[%c0_158, %c2_159, %c1_160, %c0_161] : memref<1x10x10x64xbf16, #tpu.memory_space<vmem>>, vector<1x8x8x32xbf16>
    %c0_162 = arith.constant 0 : index
    %c0_163 = arith.constant 0 : index
    %c0_164 = arith.constant 0 : index
    %c224 = arith.constant 224 : index
    %66 = vector.load %arg12[%c0_162, %c0_163, %c0_164, %c224] : memref<1x8x8x576xbf16, #tpu.memory_space<vmem>>, vector<1x8x8x32xbf16>
    tpu.vector_store %arg12[%c0_162, %c0_163, %c0_164, %c224], %65 {strides = array<i32>} : memref<1x8x8x576xbf16, #tpu.memory_space<vmem>>, vector<1x8x8x32xbf16>,
    %c0_165 = arith.constant 0 : index
    %c2_166 = arith.constant 2 : index
    %c2_167 = arith.constant 2 : index
    %c0_168 = arith.constant 0 : index
    %67 = vector.load %arg11[%c0_165, %c2_166, %c2_167, %c0_168] : memref<1x10x10x64xbf16, #tpu.memory_space<vmem>>, vector<1x8x8x32xbf16>
    %c0_169 = arith.constant 0 : index
    %c0_170 = arith.constant 0 : index
    %c0_171 = arith.constant 0 : index
    %c256_172 = arith.constant 256 : index
    %68 = vector.load %arg12[%c0_169, %c0_170, %c0_171, %c256_172] : memref<1x8x8x576xbf16, #tpu.memory_space<vmem>>, vector<1x8x8x32xbf16>
    tpu.vector_store %arg12[%c0_169, %c0_170, %c0_171, %c256_172], %67 {strides = array<i32>} : memref<1x8x8x576xbf16, #tpu.memory_space<vmem>>, vector<1x8x8x32xbf16>,
    %c0_173 = arith.constant 0 : index
    %c0_174 = arith.constant 0 : index
    %c0_175 = arith.constant 0 : index
    %c0_176 = arith.constant 0 : index
    %69 = vector.load %arg12[%c0_173, %c0_174, %c0_175, %c0_176] : memref<1x8x8x576xbf16, #tpu.memory_space<vmem>>, vector<1x8x8x288xbf16>
    %70 = vector.shape_cast %69 : vector<1x8x8x288xbf16> to vector<64x288xbf16>
    %c0_177 = arith.constant 0 : index
    %c0_178 = arith.constant 0 : index
    %71 = vector.load %arg6[%c0_177, %c0_178] : memref<288x32xbf16, #tpu.memory_space<vmem>>, vector<288x32xbf16>
    %cst_179 = arith.constant dense<0.000000e+00> : vector<64x32xf32>
    %72 = tpu.matmul %70, %71, %cst_179 {dimension_numbers = #tpu.dot_dimension_numbers<[1], [0], [0], [1], [0, 0, 1, 1], [], []>} : vector<64x288xbf16>, vector<288x32xbf16>, vector<64x32xf32> -> vector<64x32xf32>
    %c0_180 = arith.constant 0 : index
    %c0_181 = arith.constant 0 : index
    %73 = vector.load %arg7[%c0_180, %c0_181] : memref<1x32xf32, #tpu.memory_space<vmem>>, vector<1x32xf32>
    %74 = vector.broadcast %73 : vector<1x32xf32> to vector<64x32xf32>
    %75 = arith.addf %72, %74 : vector<64x32xf32>
    %cst_182 = arith.constant 0.000000e+00 : f32
    %76 = vector.broadcast %cst_182 : f32 to vector<64x32xf32>
    %77 = arith.maximumf %75, %76 : vector<64x32xf32>
    %78 = arith.truncf %46 : vector<64x64xf32> to vector<64x64xbf16>
    %79 = arith.truncf %77 : vector<64x32xf32> to vector<64x32xbf16>
    %80 = vector.extract_strided_slice %9 {offsets = [0, 64], sizes = [64, 32], strides = [1, 1]} : vector<64x96xf32> to vector<64x32xf32>
    %81 = arith.truncf %80 : vector<64x32xf32> to vector<64x32xbf16>
    %82 = tpu.concatenate %78, %79, %81 in 1 : vector<64x64xbf16>, vector<64x32xbf16>, vector<64x32xbf16> -> vector<64x128xbf16>
    %c0_183 = arith.constant 0 : index
    %c0_184 = arith.constant 0 : index
    %83 = vector.load %arg8[%c0_183, %c0_184] : memref<128x256xbf16, #tpu.memory_space<vmem>>, vector<128x256xbf16>
    %cst_185 = arith.constant dense<0.000000e+00> : vector<64x256xf32>
    %84 = tpu.matmul %82, %83, %cst_185 {dimension_numbers = #tpu.dot_dimension_numbers<[1], [0], [0], [1], [0, 0, 1, 1], [], []>} : vector<64x128xbf16>, vector<128x256xbf16>, vector<64x256xf32> -> vector<64x256xf32>
    %c0_186 = arith.constant 0 : index
    %c0_187 = arith.constant 0 : index
    %85 = vector.load %arg9[%c0_186, %c0_187] : memref<1x256xf32, #tpu.memory_space<vmem>>, vector<1x256xf32>
    %86 = vector.broadcast %85 : vector<1x256xf32> to vector<64x256xf32>
    %87 = arith.addf %84, %86 : vector<64x256xf32>
    %c0_188 = arith.constant 0 : index
    %c0_189 = arith.constant 0 : index
    %c0_190 = arith.constant 0 : index
    %c0_191 = arith.constant 0 : index
    %88 = vector.load %arg1[%c0_188, %c0_189, %c0_190, %c0_191] : memref<1x8x8x256xf32, #tpu.memory_space<vmem>>, vector<1x8x8x256xf32>
    %89 = vector.shape_cast %88 : vector<1x8x8x256xf32> to vector<64x256xf32>
    %90 = arith.addf %87, %89 : vector<64x256xf32>
    %cst_192 = arith.constant 0.000000e+00 : f32
    %91 = vector.broadcast %cst_192 : f32 to vector<64x256xf32>
    %92 = arith.maximumf %90, %91 : vector<64x256xf32>
    %93 = vector.shape_cast %92 : vector<64x256xf32> to vector<1x8x8x256xf32>
    %c0_193 = arith.constant 0 : index
    %c0_194 = arith.constant 0 : index
    %c0_195 = arith.constant 0 : index
    %c0_196 = arith.constant 0 : index
    %94 = vector.load %arg10[%c0_193, %c0_194, %c0_195, %c0_196] : memref<1x8x8x256xf32, #tpu.memory_space<vmem>>, vector<1x8x8x256xf32>
    tpu.vector_store %arg10[%c0_193, %c0_194, %c0_195, %c0_196], %93 {strides = array<i32>} : memref<1x8x8x256xf32, #tpu.memory_space<vmem>>, vector<1x8x8x256xf32>,
    return
  }
  func.func @transform_0(%arg0: i32) -> (i32, i32, i32, i32) {
    %c0_i32 = arith.constant 0 : i32
    %c0_i32_0 = arith.constant 0 : i32
    %c0_i32_1 = arith.constant 0 : i32
    %c0_i32_2 = arith.constant 0 : i32
    return %arg0, %c0_i32, %c0_i32_0, %c0_i32_1 : i32, i32, i32, i32
  }
  func.func @transform_1(%arg0: i32) -> (i32, i32) {
    %c0_i32 = arith.constant 0 : i32
    %c0_i32_0 = arith.constant 0 : i32
    %c0_i32_1 = arith.constant 0 : i32
    return %c0_i32, %c0_i32_0 : i32, i32
  }
  func.func @transform_2(%arg0: i32) -> (i32, i32) {
    %c0_i32 = arith.constant 0 : i32
    %c0_i32_0 = arith.constant 0 : i32
    %c0_i32_1 = arith.constant 0 : i32
    return %c0_i32, %c0_i32_0 : i32, i32
  }
  func.func @transform_3(%arg0: i32) -> (i32, i32) {
    %c0_i32 = arith.constant 0 : i32
    %c0_i32_0 = arith.constant 0 : i32
    %c0_i32_1 = arith.constant 0 : i32
    return %c0_i32, %c0_i32_0 : i32, i32
  }
  func.func @transform_4(%arg0: i32) -> (i32, i32) {
    %c0_i32 = arith.constant 0 : i32
    %c0_i32_0 = arith.constant 0 : i32
    %c0_i32_1 = arith.constant 0 : i32
    return %c0_i32, %c0_i32_0 : i32, i32
  }
  func.func @transform_5(%arg0: i32) -> (i32, i32) {
    %c0_i32 = arith.constant 0 : i32
    %c0_i32_0 = arith.constant 0 : i32
    %c0_i32_1 = arith.constant 0 : i32
    return %c0_i32, %c0_i32_0 : i32, i32
  }
  func.func @transform_6(%arg0: i32) -> (i32, i32) {
    %c0_i32 = arith.constant 0 : i32
    %c0_i32_0 = arith.constant 0 : i32
    %c0_i32_1 = arith.constant 0 : i32
    return %c0_i32, %c0_i32_0 : i32, i32
  }
  func.func @transform_7(%arg0: i32) -> (i32, i32) {
    %c0_i32 = arith.constant 0 : i32
    %c0_i32_0 = arith.constant 0 : i32
    %c0_i32_1 = arith.constant 0 : i32
    return %c0_i32, %c0_i32_0 : i32, i32
  }
  func.func @transform_8(%arg0: i32) -> (i32, i32) {
    %c0_i32 = arith.constant 0 : i32
    %c0_i32_0 = arith.constant 0 : i32
    %c0_i32_1 = arith.constant 0 : i32
    return %c0_i32, %c0_i32_0 : i32, i32
  }
  func.func @transform_9(%arg0: i32) -> (i32, i32, i32, i32) {
    %c0_i32 = arith.constant 0 : i32
    %c0_i32_0 = arith.constant 0 : i32
    %c0_i32_1 = arith.constant 0 : i32
    %c0_i32_2 = arith.constant 0 : i32
    return %arg0, %c0_i32, %c0_i32_0, %c0_i32_1 : i32, i32, i32, i32
  }
}

</mosaic_0001>

<bundles_post_ra>
// kernel: block35_forward.1
= control target key start
LH: loop header
LB: loop body
LE: loop exit
PB: predicated region body
PF: predicated region fallthrough
CT: control target
= control target key end

     0   :  { %14 = vsyncpa [#allocation5], 0  ;;  %s6237_s0 = inlined_call_operand.vmem [shape: f32[2,8,8,256], index: 0, kind: input, shape index: {}]   ;;  %s6238_s1 = inlined_call_operand.vmem [shape: bf16[256,96], index: 1, kind: input, shape index: {}]   ;;  %s6239_s2 = inlined_call_operand.vmem [shape: f32[1,96], index: 2, kind: input, shape index: {}]   ;;  %s6240_s3 = inlined_call_operand.vmem [shape: bf16[576,64], index: 3, kind: input, shape index: {}]   ;;  %s6241_s4 = inlined_call_operand.vmem [shape: f32[1,64], index: 4, kind: input, shape index: {}]   ;;  %s6242_s5 = inlined_call_operand.vmem [shape: bf16[288,32], index: 5, kind: input, shape index: {}]   ;;  %s6243_s6 = inlined_call_operand.vmem [shape: f32[1,32], index: 6, kind: input, shape index: {}]   ;;  %s6244_s7 = inlined_call_operand.vmem [shape: bf16[128,256], index: 7, kind: input, shape index: {}]   ;;  %s6245_s8 = inlined_call_operand.vmem [shape: f32[1,256], index: 8, kind: input, shape index: {}]   ;;  %s6246_s9 = inlined_call_operand.hbm [shape: f32[2,8,8,256], index: 9, kind: output, shape index: {}]  }
   0x1   :  { %16 = vsyncpa [#allocation5 + $0x1], 0  ;;  %s4716_s30 = smov 0   ;;  %s4718_s10 = smov 0  }
   0x2   :  { %s4720_s11 = smov 0   ;;  %s4722_s12 = smov 0  }
   0x3 LB: > { %s4737_s13 = sadd.s32 4294967295, %s4657_s12   ;;  %s3978_s14 = sadd.s32 4294967294, %s4657_s12   ;;  %s4657_s12 = sphi %s4722_s12, %s6290_s12   ;;  %s4653_s11 = sphi %s4720_s11, %s6289_s11   ;;  %s4649_s10 = sphi %s4718_s10, %s6288_s10   ;;  %s4645_s30 = sphi %s4716_s30, %s6287_s30  }
   0x4   : > { %s4741_s15 = sadd.s32 1, %s4657_s12   ;;  %s223_s16 = sadd.s32 1, %s4653_s11 }
   0x5   : > { %s220_s17 = ssub.s32 %s4657_s12, %s4741_s15  ;;  %p233_p0 = scmp.ne.s32.totalorder %s4653_s11, %s4649_s10 }
   0x6   : > { %p221_p1 = scmp.eq.s32.totalorder %s220_s17, 0  ;;  %p234_p2 = scmp.eq.s32.totalorder %s4737_s13, 1 }
   0x7   : > { %p239_p3 = scmp.ne.s32.totalorder %s4649_s10, %s4645_s30  ;;  %p240_p4 = scmp.eq.s32.totalorder %s3978_s14, 1 }
   0x8   : > { %s4752_s18 = scalar_select %p221_p1, %s4653_s11, %s223_s16  }
   0x9   : > { %p4754_p5 = por %p234_p2, %p233_p0  ;;  %p4758_p6 = por %p240_p4, %p239_p3 }
   0xa   : > { %p3981_p7 = scmp.ge.s32.totalorder %s4657_s12, 1  ;;  %p290_p8 = scmp.lt.s32.totalorder %s4657_s12, 3 }
   0xc   : > { %p291_p9 = pnand %p3981_p7, %p290_p8 }
   0xd   : > { %v4464_v0 = vld [vmem:[%s6238_s1 + $0x40] sm:$0xff] (!%p291_p9)   ;;  %v4466_v2 = vld [vmem:[%s6238_s1 + $0x48] sm:$0xff] (!%p291_p9)   ;;  %p326_p10 = scmp.lt.s32.totalorder (!%p291_p9), %s4737_s13, 1  ;;  %v4468_v4 = vld [vmem:[%s6238_s1 + $0x50] sm:$0xff] (!%p291_p9)   ;;  %vm566_vm0 = vcmask (!%p291_p9), 516096   ;;  %vm564_vm3 = vcmask (!%p291_p9), 519168  }
   0xe   : > { %294 = sbr.rel (%p291_p9) target bundleno = 1507 (0x5e3), region = 56  ;;  %v4465_v1 = vld [vmem:[%s6238_s1] sm:$0xff] (!%p291_p9)   ;;  %4201 = vmatprep.subr.bf16.mxu0 (!%p291_p9), %v4464_v0  ;;  %v4467_v3 = vld [vmem:[%s6238_s1 + $0x8] sm:$0xff] (!%p291_p9)   ;;  %v4469_v5 = vld [vmem:[%s6238_s1 + $0x10] sm:$0xff] (!%p291_p9)   ;;  %vm573_vm1 = vsmask.f32 (!%p291_p9), 256 }
   0xf   : > { %4202 = vmatpush3.bf16.msra.mxu0 (!%p291_p9), %v4465_v1  ;;  %v4470_v6 = vld [vmem:[%s6238_s1 + $0x58] sm:$0xff] (!%p291_p9)   ;;  %v4472_v8 = vld [vmem:[%s6238_s1 + $0x60] sm:$0xff] (!%p291_p9)   ;;  %v4474_v10 = vld [vmem:[%s6238_s1 + $0x68] sm:$0xff] (!%p291_p9)   ;;  %vm599_vm2 = vsmask.f32 (!%p291_p9), 7938  ;;  %v6247_v48 = vmov (!%p291_p9), 0  }
  0x10   : > { %4203 = vmatprep.subr.bf16.mxu0 (!%p291_p9), %v4466_v2  ;;  %v4471_v7 = vld [vmem:[%s6238_s1 + $0x18] sm:$0xff] (!%p291_p9)   ;;  %v4473_v9 = vld [vmem:[%s6238_s1 + $0x20] sm:$0xff] (!%p291_p9)   ;;  %v4475_v14 = vld [vmem:[%s6238_s1 + $0x28] sm:$0xff] (!%p291_p9)   ;;  %565 = vst.msk [vmem:[#allocation2] sm:$0xf] (!%p291_p9), %vm564_vm3, %v6247_v48  ;;  %s4660_s23 = smov (!%p291_p9), 64  }
  0x11   : > { %v4476_v15 = vld [vmem:[%s6238_s1 + $0x70] sm:$0xff] (!%p291_p9)   ;;  %v4478_v17 = vld [vmem:[%s6238_s1 + $0x78] sm:$0xff] (!%p291_p9)   ;;  %vm4837_vm4 = vmand (!%p291_p9), %vm566_vm0, %vm573_vm1  ;;  %567 = vst.msk [vmem:[#allocation2 + $0x4] sm:$0x1] (!%p291_p9), %vm566_vm0, %v6247_v48  ;;  %vm811_vm6 = vsmask.f32 (!%p291_p9), 3328 }
  0x12   : > { %v4477_v16 = vld [vmem:[%s6238_s1 + $0x30] sm:$0xff] (!%p291_p9)   ;;  %v4479_v18 = vld [vmem:[%s6238_s1 + $0x38] sm:$0xff] (!%p291_p9)   ;;  %v575_v41 = vld [vmem:[#allocation2 + $0x8] sm:$0x1] (!%p291_p9)  ;;  %569 = vst.msk [vmem:[#allocation2 + $0x48] sm:$0xf] (!%p291_p9), %vm564_vm3, %v6247_v48 }
  0x13   : > { %4204 = vmatpush3.bf16.msra.mxu0 (!%p291_p9), %v4467_v3  ;;  %v601_v42 = vld [vmem:[#allocation2 + $0xc] sm:$0x1] (!%p291_p9)  ;;  %v576_v43 = vsel (!%p291_p9), %vm4837_vm4, 0, %v575_v41  ;;  %vm4845_vm5 = vmand (!%p291_p9), %vm566_vm0, %vm599_vm2  ;;  %v578_v46 = vld [vmem:[#allocation2 + $0x10] sm:$0x1] (!%p291_p9)  ;;  %vm991_vm9 = vcmask (!%p291_p9), 1042432  }
  0x14   : > { %4205 = vmatprep.subr.bf16.mxu0 (!%p291_p9), %v4468_v4  ;;  %577 = vst [vmem:[#allocation2 + $0x8] sm:$0x1] (!%p291_p9), %v576_v43  ;;  %v602_v45 = vsel (!%p291_p9), %vm4845_vm5, 0, %v601_v42  ;;  %v604_v47 = vld [vmem:[#allocation2 + $0x14] sm:$0x1] (!%p291_p9)  ;;  %v579_v49 = vsel (!%p291_p9), %vm4837_vm4, 0, %v578_v46  ;;  %vm4949_vm13 = vmand (!%p291_p9), %vm564_vm3, %vm599_vm2 }
  0x15   : > { %s327_s16 = scalar_select %p326_p10, %s4737_s13, 1  ;;  %570 = vst.msk [vmem:[#allocation2 + $0x4c] sm:$0x1] %vm566_vm0, %v6247_v48  ;;  %603 = vst [vmem:[#allocation2 + $0xc] sm:$0x1] %v602_v45  ;;  %v605_v50 = vsel %vm4845_vm5, 0, %v604_v47 }
  0x16   : > { %580 = vst [vmem:[#allocation2 + $0x10] sm:$0x1] %v579_v49  ;;  %606 = vst [vmem:[#allocation2 + $0x14] sm:$0x1] %v605_v50  ;;  %v581_v51 = vld [vmem:[#allocation2 + $0x18] sm:$0x1] }
  0x17   : > { %s4183_s24 = sshll.u32 %s327_s16, 7  ;;  %4206 = vmatpush3.bf16.msra.mxu0 %v4469_v5  ;;  %v607_v52 = vld [vmem:[#allocation2 + $0x1c] sm:$0x1]  ;;  %v582_v53 = vsel %vm4837_vm4, 0, %v581_v51  ;;  %v795_v55 = vld [vmem:[#allocation2] sm:$0xf] }
  0x18   : > { %4207 = vmatprep.subr.bf16.mxu0 %v4470_v6  ;;  %s4796_s17 = scalar_lea.vmem %s6237_s0, %s4183_s24  ;;  %v608_v54 = vsel %vm4845_vm5, 0, %v607_v52  ;;  %583 = vst [vmem:[#allocation2 + $0x18] sm:$0x1] %v582_v53  ;;  %v815_v56 = vshrl.u32 %v795_v55, 16  ;;  %v818_v57 = vshll.u32 %v795_v55, 16  ;;  %vm992_vm10 = vcmask 1046532  }
  0x19   : > { %v333_v11 = vld [vmem:[%s4796_s17 + $0x8] sm:$0xff]  ;;  %v335_v12 = vld [vmem:[%s4796_s17 + $0x18] sm:$0xff]  ;;  %v332_v19 = vld [vmem:[%s4796_s17] sm:$0xff]  ;;  %609 = vst [vmem:[#allocation2 + $0x1c] sm:$0x1] %v608_v54  ;;  %vm950_vm12 = vcmask 1043968  }
  0x1a   : > { %v349_v13 = vpack.c.bf16 %v335_v12, %v333_v11  ;;  %v334_v20 = vld [vmem:[%s4796_s17 + $0x10] sm:$0xff]  ;;  %v337_v21 = vld [vmem:[%s4796_s17 + $0x28] sm:$0xff]  ;;  %v339_v22 = vld [vmem:[%s4796_s17 + $0x38] sm:$0xff]  ;;  %v817_v61 = vrot.slane %v815_v56, 4  ;;  %v820_v62 = vrot.slane %v818_v57, 5  ;;  %vm2006_vm14 = vcmask 523264  }
  0x1b   : > { %4208 = vmatpush3.bf16.msra.mxu0 %v4471_v7  ;;  %v348_v23 = vpack.c.bf16 %v334_v20, %v332_v19  ;;  %v351_v24 = vpack.c.bf16 %v339_v22, %v337_v21  ;;  %v336_v25 = vld [vmem:[%s4796_s17 + $0x20] sm:$0xff]  ;;  %v338_v26 = vld [vmem:[%s4796_s17 + $0x30] sm:$0xff]  ;;  %v341_v27 = vld [vmem:[%s4796_s17 + $0x48] sm:$0xff]  ;;  %vm812_vm7 = vsmask.f32 7440  ;;  %vm2326_vm15 = vcmask 257024  }
  0x1c   : > { %4209 = vmatprep.subr.bf16.mxu0 %v4472_v8  ;;  %523 = vmatprep.mubr.bf16.mxu0 %v349_v13  ;;  %v343_v28 = vld [vmem:[%s4796_s17 + $0x58] sm:$0xff]  ;;  %v350_v29 = vpack.c.bf16 %v338_v26, %v336_v25  ;;  %v340_v31 = vld [vmem:[%s4796_s17 + $0x40] sm:$0xff]  ;;  %v342_v32 = vld [vmem:[%s4796_s17 + $0x50] sm:$0xff]  ;;  %v821_v1 = vor.u32 %v820_v62, %v817_v61  ;;  %s4661_s16 = smov 32   ;;  %vm2331_vm0 = vcmask 253952   ;;  %s4662_s25 = smov 96  }
  0x1d   : > { %v353_v30 = vpack.c.bf16 %v343_v28, %v341_v27  ;;  %v345_v33 = vld [vmem:[%s4796_s17 + $0x68] sm:$0xff]  ;;  %v347_v34 = vld [vmem:[%s4796_s17 + $0x78] sm:$0xff]  ;;  %v352_v35 = vpack.c.bf16 %v342_v32, %v340_v31  ;;  %v344_v37 = vld [vmem:[%s4796_s17 + $0x60] sm:$0xff]  ;;  %s323_s22 = sand.u32 1, %s4649_s10   ;;  %s4200_s26 = sshll.u32 %s4737_s13, 11 }
  0x1e   : > { %v355_v36 = vpack.c.bf16 %v347_v34, %v345_v33  ;;  %v346_v38 = vld [vmem:[%s4796_s17 + $0x70] sm:$0xff]  ;;  %v584_v58 = vld [vmem:[#allocation2 + $0x20] sm:$0x1]  ;;  %v610_v60 = vld [vmem:[#allocation2 + $0x24] sm:$0x1]  ;;  %v822_v3 = vrot.slane %v821_v1, 4  ;;  %s6187_s29 = scalar_lea.hbm %s6246_s9, %s4200_s26 }
  0x1f   : > { %4210 = vmatpush3.bf16.msra.mxu0 %v4473_v9  ;;  %v354_v39 = vpack.c.bf16 %v346_v38, %v344_v37  ;;  %v585_v59 = vsel %vm4837_vm4, 0, %v584_v58  ;;  %v611_v63 = vsel %vm4845_vm5, 0, %v610_v60  ;;  %v796_v0 = vld [vmem:[#allocation2 + $0x4] sm:$0x1]  ;;  %v587_v5 = vld [vmem:[#allocation2 + $0x28] sm:$0x1]  ;;  %vm4875_vm8 = vmor %vm811_vm6, %vm812_vm7 }
  0x20   : > { %4211 = vmatprep.subr.bf16.mxu0 %v4474_v10  ;;  %586 = vst [vmem:[#allocation2 + $0x20] sm:$0x1] %v585_v59  ;;  %612 = vst [vmem:[#allocation2 + $0x24] sm:$0x1] %v611_v63  ;;  %v824_v2 = vshll.u32 %v796_v0, 16  ;;  %v588_v7 = vsel %vm4837_vm4, 0, %v587_v5 }
  0x21   : > { %v613_v6 = vld [vmem:[#allocation2 + $0x2c] sm:$0x1]  ;;  %589 = vst [vmem:[#allocation2 + $0x28] sm:$0x1] %v588_v7  ;;  %v590_v10 = vld [vmem:[#allocation2 + $0x30] sm:$0x1]  ;;  %vm4907_vm11 = vmor %vm991_vm9, %vm992_vm10 }
  0x22   : > { %v826_v4 = vrot.slane %v824_v2, 5  ;;  %v614_v8 = vsel %vm4845_vm5, 0, %v613_v6  ;;  %v616_v11 = vld [vmem:[#allocation2 + $0x34] sm:$0x1]  ;;  %v591_v13 = vsel %vm4837_vm4, 0, %v590_v10  ;;  %v4482_v25 = vld [vmem:[%s6240_s3 + $0x48] sm:$0xff]  }
  0x23   : > { %4212 = vmatpush3.bf16.msra.mxu0 %v4475_v14  ;;  %615 = vst [vmem:[#allocation2 + $0x2c] sm:$0x1] %v614_v8  ;;  %v617_v14 = vsel %vm4845_vm5, 0, %v616_v11  ;;  %592 = vst [vmem:[#allocation2 + $0x30] sm:$0x1] %v591_v13  ;;  %v4484_v33 = vld [vmem:[%s6240_s3 + $0x50] sm:$0xff]  }
  0x24   : > { %4213 = vmatprep.subr.bf16.mxu0 %v4476_v15  ;;  %v827_v12 = vsel %vm4875_vm8, %v822_v3, %v826_v4  ;;  %618 = vst [vmem:[#allocation2 + $0x34] sm:$0x1] %v617_v14  ;;  %v593_v15 = vld [vmem:[#allocation2 + $0x38] sm:$0x1]  ;;  %v596_v19 = vld [vmem:[#allocation2 + $0x40] sm:$0x1] }
  0x25   : > { %926 = vrot.lane.b32.xlu0 %v827_v12, %s4660_s23  ;;  %v622_v20 = vld [vmem:[#allocation2 + $0x44] sm:$0x1]  ;;  %v597_v21 = vsel %vm4837_vm4, 0, %v596_v19  ;;  %v779_v26 = vld [vmem:[#allocation2] sm:$0xf]  ;;  %v4485_v3 = vld [vmem:[%s6240_s3 + $0x10] sm:$0xff]  }
  0x26   : > { %v623_v22 = vsel %vm4845_vm5, 0, %v622_v20  ;;  %598 = vst [vmem:[#allocation2 + $0x40] sm:$0x1] %v597_v21  ;;  %787 = vst.msk [vmem:[#allocation3] sm:$0xf] %vm564_vm3, %v779_v26  ;;  %v4486_v4 = vld [vmem:[%s6240_s3 + $0xc0] sm:$0xff]  }
  0x27   : > { %4214 = vmatpush3.bf16.msra.mxu0 %v4477_v16  ;;  %v619_v16 = vld [vmem:[#allocation2 + $0x3c] sm:$0x1]  ;;  %624 = vst [vmem:[#allocation2 + $0x44] sm:$0x1] %v623_v22  ;;  %v959_v27 = vld [vmem:[#allocation2] sm:$0xe] }
  0x28   : > { %4215 = vmatprep.subr.bf16.mxu0 %v4478_v17  ;;  %v594_v17 = vsel %vm4837_vm4, 0, %v593_v15  ;;  %v960_v28 = vld [vmem:[#allocation2 + $0x4] sm:$0x1]  ;;  %v4923_v42 = vld [vmem:[%s6239_s2] ss:$0 sm:$0xff]  ;;  %v4557_v32 = vld [vmem:[%s6242_s5 + $0x30] sm:$0xff]  }
  0x29   : > { %595 = vst [vmem:[#allocation2 + $0x38] sm:$0x1] %v594_v17  ;;  %v996_v31 = vrot.slane %v960_v28, 5  ;;  %v4487_v5 = vld [vmem:[%s6240_s3 + $0x80] sm:$0xff]   ;;  %v731_v7 = vld [vmem:[#allocation2 + $0x8] sm:$0xf] }
  0x2a   : > { %v734_v8 = vld [vmem:[#allocation2 + $0xc] sm:$0x1]  ;;  %v740_v17 = vld [vmem:[#allocation2 + $0x14] sm:$0x1]  ;;  %v4957_v19 = vld [vmem:[#allocation2 + $0x48] sm:$0xf] }
  0x2b   : > { %4216 = vmatpush3.bf16.msra.mxu0 %v4479_v18  ;;  %v620_v18 = vsel %vm4845_vm5, 0, %v619_v16  ;;  %v737_v16 = vld [vmem:[#allocation2 + $0x10] sm:$0xf]  ;;  %v4488_v28 = vld [vmem:[%s6240_s3 + $0x58] sm:$0xff]   ;;  %vm3457_vm5 = vcmask 261120   ;;  %vm2693_vm6 = vcmask 1044224  }
  0x2c   : > { %621 = vst [vmem:[#allocation2 + $0x3c] sm:$0x1] %v620_v18  ;;  %4281 = vmatprep.subr.bf16.mxu0 %v4486_v4  ;;  %vm3644_vm7 = vcmask 785408   ;;  %s3982_s24 = sshll.u32 %s323_s22, 7  ;;  %s6196_s13 = scalar_lea.sflag [#allocation5], %s323_s22 }
  0x2d   : > { %s4663_s21 = smov [#allocation4]  }
  0x2e   : > { %524 = vmatmul.mubr.bf16.vlgmr.msra.gmra.mrb[0].mxu0 %v348_v23  ;;  %v4480_v23 = vld [vmem:[%s6240_s3 + $0x40] sm:$0xff]  }
  0x2f   : > { %531 = vmatprep.mubr.bf16.mxu0 %v351_v24  ;;  %v4481_v24 = vld [vmem:[%s6240_s3] sm:$0xff]   ;;  %4241 = vmatprep.subr.bf16.mxu1 %v4480_v23 }
  0x30   : > { %4242 = vmatpush3.bf16.msra.mxu1 %v4481_v24  ;;  %4282 = vmatpush3.bf16.msra.mxu0 %v4487_v5 }
  0x31   : > { %4243 = vmatprep.subr.bf16.mxu1 %v4482_v25 }
  0x36   : > { %532 = vmatmul.mubr.bf16.gmra.mrb[4].mxu0 %v350_v29  ;;  %v4483_v29 = vld [vmem:[%s6240_s3 + $0x8] sm:$0xff]  }
  0x37   : > { %539 = vmatprep.mubr.bf16.mxu0 %v353_v30  ;;  %v4010_v30 = vrot.slane %v959_v27, 9  ;;  %4244 = vmatpush3.bf16.msra.mxu1 %v4483_v29  ;;  %v4489_v29 = vld [vmem:[%s6240_s3 + $0x18] sm:$0xff]  }
  0x38   : > { %4245 = vmatprep.subr.bf16.mxu1 %v4484_v33 }
  0x39   : > { %v997_v34 = vsel %vm4907_vm11, %v4010_v30, %v996_v31  ;;  %v4490_v30 = vld [vmem:[%s6240_s3 + $0xc8] sm:$0xff]  }
  0x3a   : > { %1034 = vst.msk [vmem:[#allocation3 + $0x4] sm:$0xf] %vm564_vm3, %v997_v34  ;;  %4283 = vmatprep.subr.bf16.mxu0 %v4490_v30 }
  0x3b   : > { %4246 = vmatpush3.bf16.msra.mxu1 %v4485_v3 }
  0x3c   : > { %4247 = vmatprep.subr.bf16.mxu1 %v4488_v28 }
  0x3e   : > { %540 = vmatmul.mubr.bf16.gmra.mrb[8].mxu0 %v352_v35  ;;  %v1521_v35 = vld [vmem:[#allocation2 + $0x48] sm:$0xe] }
  0x3f   : > { %547 = vmatprep.mubr.bf16.mxu0 %v355_v36  ;;  %v1522_v36 = vld [vmem:[#allocation2 + $0x4c] sm:$0x1]  ;;  %v4033_v37 = vrot.slane %v1521_v35, 9  ;;  %4248 = vmatpush3.bf16.msra.mxu1 %v4489_v29 }
  0x40   : > { %v1569_v38 = vrot.slane %v1522_v36, 5  ;;  %v1462_v36 = vshrl.u32 %v4957_v19, 16 }
  0x46   : > { %548 = vmatmul.mubr.bf16.gmra.mrb[12].mxu0 %v354_v39  ;;  %v1570_v39 = vsel %vm4907_vm11, %v4033_v37, %v1569_v38  ;;  %v4491_v37 = vld [vmem:[%s6240_s3 + $0x88] sm:$0xff]   ;;  %v4492_v38 = vld [vmem:[%s6240_s3 + $0x60] sm:$0xff]  }
  0x47   : > { %1586 = vst.msk [vmem:[#allocation3 + $0x9c] sm:$0xf] %vm564_vm3, %v1570_v39  ;;  %4284 = vmatpush3.bf16.msra.mxu0 %v4491_v37  ;;  %4249 = vmatprep.subr.bf16.mxu1 %v4492_v38 }
  0x97   : > { %v927_v2 = vpop.permute.xlu0 %926 }
  0x98   : > { %951 = vst.msk [vmem:[#allocation3] sm:$0xf] %vm950_vm12, %v927_v2  ;;  %v4496_v2 = vld [vmem:[%s6240_s3 + $0x68] sm:$0xff]  }
 0x101   : > { %v4217_v41 = vpop.f32.mrb[0].mxu0 }
 0x102   : > { %v4218_v43 = vpop.f32.mrb[1].mxu0 }
 0x103   : > { %v4219_v44 = vadd.f32 %v4218_v43, %v4217_v41  ;;  %v4220_v45 = vpop.f32.mrb[2].mxu0 }
 0x104   : > { %v4221_v46 = vpop.f32.mrb[3].mxu0 }
 0x105   : > { %v526_v47 = vadd.f32 %v4219_v44, %v4923_v42  ;;  %v4222_v49 = vadd.f32 %v4221_v46, %v4220_v45  ;;  %v4989_v44 = vld [vmem:[#allocation2 + $0x4c] sm:$0x1]  ;;  %v743_v46 = vld [vmem:[#allocation2 + $0x18] sm:$0xf] }
 0x107   : > { %v4926_v50 = vmax.f32 %v526_v47, 0.0  ;;  %v529_v51 = vadd.f32 %v4222_v49, %v4923_v42  ;;  %v746_v47 = vld [vmem:[#allocation2 + $0x1c] sm:$0x1] }
 0x109   : > { %v4184_v52 = vpack.c.bf16 %v4926_v50, %v4926_v50  ;;  %v4931_v53 = vmax.f32 %v529_v51, 0.0  ;;  %v4223_v54 = vpop.f32.mrb[4].mxu0 }
 0x10a   : > { %v4224_v55 = vpop.f32.mrb[5].mxu0 }
 0x10b   : > { %v650_v56 = vshrl.u32 %v4184_v52, 16  ;;  %v4185_v57 = vpack.c.bf16 %v4931_v53, %v4931_v53  ;;  %v4225_v58 = vadd.f32 %v4224_v55, %v4223_v54  ;;  %v4226_v59 = vpop.f32.mrb[6].mxu0  ;;  %v653_v63 = vshll.u32 %v4184_v52, 16 }
 0x10c   : > { %v4227_v60 = vpop.f32.mrb[7].mxu0  ;;  %v1465_v52 = vshll.u32 %v4957_v19, 16 }
 0x10d   : > { %v652_v62 = vrot.slane %v650_v56, 7  ;;  %v658_v0 = vshrl.u32 %v4185_v57, 16  ;;  %v534_v1 = vadd.f32 %v4225_v58, %v4923_v42  ;;  %v661_v10 = vshll.u32 %v4185_v57, 16  ;;  %v4493_v57 = vld [vmem:[%s6240_s3 + $0x20] sm:$0xff]   ;;  %v4494_v58 = vld [vmem:[%s6240_s3 + $0xd0] sm:$0xff]  }
 0x10e   : > { %v4228_v11 = vadd.f32 %v4227_v60, %v4226_v59  ;;  %v4495_v59 = vld [vmem:[%s6240_s3 + $0x90] sm:$0xff]   ;;  %v749_v60 = vld [vmem:[#allocation2 + $0x20] sm:$0xf]  ;;  %4285 = vmatprep.subr.bf16.mxu0 %v4494_v58  ;;  %4250 = vmatpush3.bf16.msra.mxu1 %v4493_v57 }
 0x10f   : > { %v655_v12 = vor.u32 %v653_v63, %v652_v62  ;;  %v656_v13 = vrot.slane %v652_v62, 4  ;;  %v660_v14 = vrot.slane %v658_v0, 7  ;;  %v4954_v15 = vmax.f32 %v534_v1, 0.0  ;;  %4286 = vmatpush3.bf16.msra.mxu0 %v4495_v59  ;;  %4251 = vmatprep.subr.bf16.mxu1 %v4496_v2 }
 0x110   : > { %v537_v18 = vadd.f32 %v4228_v11, %v4923_v42  ;;  %v5007_v0 = vrot.slane %v1462_v36, 4  ;;  %v1471_v1 = vshll.u32 %v4989_v44, 16 }
 0x111   : > { %v732_v20 = vsel %vm4949_vm13, %v655_v12, %v731_v7  ;;  %v735_v21 = vsel %vm4837_vm4, %v656_v13, %v734_v8  ;;  %v663_v22 = vor.u32 %v661_v10, %v660_v14  ;;  %v664_v23 = vrot.slane %v660_v14, 4  ;;  %v4229_v24 = vpop.f32.mrb[8].mxu0  ;;  %v752_v8 = vld [vmem:[#allocation2 + $0x24] sm:$0x1] }
 0x112   : > { %733 = vst [vmem:[#allocation2 + $0x8] sm:$0xf] %v732_v20  ;;  %736 = vst [vmem:[#allocation2 + $0xc] sm:$0x1] %v735_v21  ;;  %v4186_v25 = vpack.c.bf16 %v4954_v15, %v4954_v15  ;;  %v4965_v26 = vmax.f32 %v537_v18, 0.0  ;;  %v4230_v27 = vpop.f32.mrb[9].mxu0 }
 0x113   : > { %v738_v31 = vsel %vm4949_vm13, %v663_v22, %v737_v16  ;;  %v741_v33 = vsel %vm4837_vm4, %v664_v23, %v740_v17  ;;  %v4231_v34 = vadd.f32 %v4230_v27, %v4229_v24  ;;  %v4232_v35 = vpop.f32.mrb[10].mxu0 }
 0x114   : > { %739 = vst [vmem:[#allocation2 + $0x10] sm:$0xf] %v738_v31  ;;  %742 = vst [vmem:[#allocation2 + $0x14] sm:$0x1] %v741_v33  ;;  %v666_v39 = vshrl.u32 %v4186_v25, 16  ;;  %v4187_v41 = vpack.c.bf16 %v4965_v26, %v4965_v26  ;;  %v4233_v43 = vpop.f32.mrb[11].mxu0 }
 0x115   : > { %v542_v49 = vadd.f32 %v4231_v34, %v4923_v42  ;;  %v4234_v51 = vadd.f32 %v4233_v43, %v4232_v35  ;;  %v669_v55 = vshll.u32 %v4186_v25, 16  ;;  %v755_v34 = vld [vmem:[#allocation2 + $0x28] sm:$0xf] }
 0x116   : > { %v668_v54 = vrot.slane %v666_v39, 7  ;;  %v674_v56 = vshrl.u32 %v4187_v41, 16  ;;  %v677_v7 = vshll.u32 %v4187_v41, 16  ;;  %v4497_v39 = vld [vmem:[%s6240_s3 + $0x28] sm:$0xff]  }
 0x117   : > { %v5004_v62 = vmax.f32 %v542_v49, 0.0  ;;  %v545_v63 = vadd.f32 %v4234_v51, %v4923_v42  ;;  %v4498_v51 = vld [vmem:[%s6240_s3 + $0xd8] sm:$0xff]   ;;  %4252 = vmatpush3.bf16.msra.mxu1 %v4497_v39 }
 0x118   : > { %v671_v3 = vor.u32 %v669_v55, %v668_v54  ;;  %v672_v4 = vrot.slane %v668_v54, 4  ;;  %v676_v5 = vrot.slane %v674_v56, 7  ;;  %v758_v54 = vld [vmem:[#allocation2 + $0x2c] sm:$0x1]  ;;  %v761_v55 = vld [vmem:[#allocation2 + $0x30] sm:$0xf]  ;;  %4287 = vmatprep.subr.bf16.mxu0 %v4498_v51 }
 0x119   : > { %v4188_v10 = vpack.c.bf16 %v5004_v62, %v5004_v62  ;;  %v5015_v11 = vmax.f32 %v545_v63, 0.0  ;;  %v4235_v12 = vpop.f32.mrb[12].mxu0  ;;  %v1042_v13 = vld [vmem:[#allocation2 + $0x8] sm:$0xf]  ;;  %v1235_v22 = vld [vmem:[#allocation2 + $0xc] sm:$0x1] }
 0x11a   : > { %v1234_v14 = vld [vmem:[#allocation2 + $0x8] sm:$0xe]  ;;  %v744_v16 = vsel %vm4949_vm13, %v671_v3, %v743_v46  ;;  %v747_v17 = vsel %vm4837_vm4, %v672_v4, %v746_v47  ;;  %v679_v18 = vor.u32 %v677_v7, %v676_v5  ;;  %v680_v20 = vrot.slane %v676_v5, 4  ;;  %v4236_v21 = vpop.f32.mrb[13].mxu0  ;;  %1058 = vrot.lane.b32.xlu1 %v1042_v13, %s4660_s23  ;;  %v764_v3 = vld [vmem:[#allocation2 + $0x34] sm:$0x1] }
 0x11b   : > { %745 = vst [vmem:[#allocation2 + $0x18] sm:$0xf] %v744_v16  ;;  %748 = vst [vmem:[#allocation2 + $0x1c] sm:$0x1] %v747_v17  ;;  %v682_v23 = vshrl.u32 %v4188_v10, 16  ;;  %v685_v24 = vshll.u32 %v4188_v10, 16  ;;  %v4189_v25 = vpack.c.bf16 %v5015_v11, %v5015_v11  ;;  %v4237_v27 = vadd.f32 %v4236_v21, %v4235_v12 }
 0x11c   : > { %v4238_v28 = vpop.f32.mrb[14].mxu0  ;;  %v1043_v29 = vld [vmem:[#allocation2 + $0x10] sm:$0xf]  ;;  %v797_v30 = vld [vmem:[#allocation2 + $0x8] sm:$0xf]  ;;  %v750_v31 = vsel %vm4949_vm13, %v679_v18, %v749_v60  ;;  %v753_v33 = vsel %vm4837_vm4, %v680_v20, %v752_v8  ;;  %v4018_v36 = vrot.slane %v1234_v14, 9 }
 0x11d   : > { %v4239_v35 = vpop.f32.mrb[15].mxu0  ;;  %v1268_v37 = vrot.slane %v1235_v22, 5  ;;  %v1236_v38 = vld [vmem:[#allocation2 + $0x10] sm:$0xe]  ;;  %751 = vst [vmem:[#allocation2 + $0x20] sm:$0xf] %v750_v31  ;;  %v550_v47 = vadd.f32 %v4237_v27, %v4923_v42 }
 0x11e   : > { %754 = vst [vmem:[#allocation2 + $0x24] sm:$0x1] %v753_v33  ;;  %v684_v41 = vrot.slane %v682_v23, 7  ;;  %v690_v43 = vshrl.u32 %v4189_v25, 16  ;;  %v693_v46 = vshll.u32 %v4189_v25, 16  ;;  %v4240_v56 = vadd.f32 %v4239_v35, %v4238_v28  ;;  %1060 = vrot.lane.b32.xlu1 %v1043_v29, %s4660_s23  ;;  %v4499_v5 = vld [vmem:[%s6240_s3 + $0x98] sm:$0xff]  }
 0x11f   : > { %v1237_v49 = vld [vmem:[#allocation2 + $0x14] sm:$0x1]  ;;  %v1269_v57 = vsel %vm4907_vm11, %v4018_v36, %v1268_v37  ;;  %v4019_v58 = vrot.slane %v1236_v38, 9  ;;  %v5038_v4 = vmax.f32 %v550_v47, 0.0  ;;  %v798_v10 = vld [vmem:[#allocation2 + $0xc] sm:$0x1]  ;;  %4288 = vmatpush3.bf16.msra.mxu0 %v4499_v5 }
 0x120   : > { %v1272_v59 = vrot.slane %v1237_v49, 5  ;;  %v687_v60 = vor.u32 %v685_v24, %v684_v41  ;;  %v688_v63 = vrot.slane %v684_v41, 4  ;;  %v692_v2 = vrot.slane %v690_v43, 7  ;;  %1298 = vrot.lane.b32.xlu0 %v1269_v57, %s4660_s23  ;;  %v799_v14 = vld [vmem:[#allocation2 + $0x10] sm:$0xf] }
 0x121   : > { %v553_v7 = vadd.f32 %v4240_v56, %v4923_v42  ;;  %v829_v12 = vshrl.u32 %v797_v30, 16  ;;  %v832_v13 = vshll.u32 %v797_v30, 16  ;;  %v4500_v42 = vld [vmem:[%s6240_s3 + $0x70] sm:$0xff]   ;;  %v4190_v21 = vpack.c.bf16 %v5038_v4, %v5038_v4  ;;  %v767_v43 = vld [vmem:[#allocation2 + $0x38] sm:$0xf] }
 0x122   : > { %v1273_v8 = vsel %vm4907_vm11, %v4019_v58, %v1272_v59  ;;  %v756_v16 = vsel %vm4949_vm13, %v687_v60, %v755_v34  ;;  %v759_v17 = vsel %vm4837_vm4, %v688_v63, %v758_v54  ;;  %v695_v18 = vor.u32 %v693_v46, %v692_v2  ;;  %v1044_v23 = vld [vmem:[#allocation2 + $0x18] sm:$0xf]  ;;  %4253 = vmatprep.subr.bf16.mxu1 %v4500_v42  ;;  %v800_v56 = vld [vmem:[#allocation2 + $0x14] sm:$0x1]  ;;  %v770_v58 = vld [vmem:[#allocation2 + $0x3c] sm:$0x1] }
 0x123   : > { %v696_v20 = vrot.slane %v692_v2, 4  ;;  %757 = vst [vmem:[#allocation2 + $0x28] sm:$0xf] %v756_v16  ;;  %760 = vst [vmem:[#allocation2 + $0x2c] sm:$0x1] %v759_v17  ;;  %v5056_v22 = vmax.f32 %v553_v7, 0.0  ;;  %1300 = vrot.lane.b32.xlu1 %v1273_v8, %s4660_s23 }
 0x124   : > { %v831_v24 = vrot.slane %v829_v12, 4  ;;  %v834_v25 = vrot.slane %v832_v13, 5  ;;  %v762_v27 = vsel %vm4949_vm13, %v695_v18, %v761_v55  ;;  %1062 = vrot.lane.b32.xlu0 %v1044_v23, %s4660_s23  ;;  %v838_v29 = vshll.u32 %v798_v10, 16  ;;  %v801_v31 = vld [vmem:[#allocation2 + $0x18] sm:$0xf] }
 0x125   : > { %v765_v28 = vsel %vm4837_vm4, %v696_v20, %v764_v3  ;;  %v843_v30 = vshrl.u32 %v799_v14, 16  ;;  %v1511_v33 = vld [vmem:[#allocation2 + $0x20] sm:$0xe]  ;;  %v1512_v34 = vld [vmem:[#allocation2 + $0x24] sm:$0x1]  ;;  %v698_v35 = vshrl.u32 %v4190_v21, 16  ;;  %v4191_v37 = vpack.c.bf16 %v5056_v22, %v5056_v22 }
 0x126   : > { %763 = vst [vmem:[#allocation2 + $0x30] sm:$0xf] %v762_v27  ;;  %766 = vst [vmem:[#allocation2 + $0x34] sm:$0x1] %v765_v28  ;;  %v701_v36 = vshll.u32 %v4190_v21, 16  ;;  %v835_v38 = vor.u32 %v834_v25, %v831_v24  ;;  %v4028_v39 = vrot.slane %v1511_v33, 9 }
 0x127   : > { %v1549_v41 = vrot.slane %v1512_v34, 5  ;;  %v1045_v46 = vld [vmem:[#allocation2 + $0x20] sm:$0xf]  ;;  %v840_v47 = vrot.slane %v838_v29, 5  ;;  %v5068_v49 = vrot.slane %v1465_v52, 5  ;;  %v700_v51 = vrot.slane %v698_v35, 7 }
 0x128   : > { %v706_v54 = vshrl.u32 %v4191_v37, 16  ;;  %1064 = vrot.lane.b32.xlu1 %v1045_v46, %s4660_s23  ;;  %v836_v55 = vrot.slane %v835_v38, 4  ;;  %v845_v57 = vrot.slane %v843_v30, 4  ;;  %v709_v59 = vshll.u32 %v4191_v37, 16  ;;  %v802_v10 = vld [vmem:[#allocation2 + $0x1c] sm:$0x1] }
 0x129   : > { %v846_v60 = vshll.u32 %v799_v14, 16  ;;  %v857_v63 = vshrl.u32 %v801_v31, 16  ;;  %v860_v2 = vshll.u32 %v801_v31, 16  ;;  %v703_v3 = vor.u32 %v701_v36, %v700_v51  ;;  %v1347_v12 = vld [vmem:[#allocation2 + $0x10] sm:$0xf] }
 0x12a   : > { %v704_v5 = vrot.slane %v700_v51, 4  ;;  %v708_v7 = vrot.slane %v706_v54, 7  ;;  %v841_v19 = vsel %vm4875_vm8, %v836_v55, %v840_v47  ;;  %v852_v8 = vshll.u32 %v800_v56, 16  ;;  %v773_v18 = vld [vmem:[#allocation2 + $0x40] sm:$0xf]  ;;  %v4501_v46 = vld [vmem:[%s6240_s3 + $0x30] sm:$0xff]  }
 0x12b   : > { %928 = vrot.lane.b32.xlu0 %v841_v19, %s4660_s23  ;;  %v848_v52 = vrot.slane %v846_v60, 5  ;;  %v1550_v13 = vsel %vm4907_vm11, %v4028_v39, %v1549_v41  ;;  %v768_v16 = vsel %vm4949_vm13, %v703_v3, %v767_v43  ;;  %v776_v20 = vld [vmem:[#allocation2 + $0x44] sm:$0x1]  ;;  %v1468_v42 = vor.u32 %v5068_v49, %v5007_v0  ;;  %v1348_v28 = vld [vmem:[#allocation2 + $0x14] sm:$0x1]  ;;  %4254 = vmatpush3.bf16.msra.mxu1 %v4501_v46 }
 0x12c   : > { %v771_v17 = vsel %vm4837_vm4, %v704_v5, %v770_v58  ;;  %v5086_v21 = vrot.slane %v1471_v1, 5  ;;  %1581 = vst.msk [vmem:[#allocation3 + $0x38] sm:$0xf] %vm564_vm3, %v1550_v13  ;;  %769 = vst [vmem:[#allocation2 + $0x38] sm:$0xf] %v768_v16  ;;  %v711_v23 = vor.u32 %v709_v59, %v708_v7  ;;  %v712_v24 = vrot.slane %v708_v7, 4 }
 0x12d   : > { %772 = vst [vmem:[#allocation2 + $0x3c] sm:$0x1] %v771_v17  ;;  %v849_v25 = vor.u32 %v848_v52, %v845_v57  ;;  %v859_v27 = vrot.slane %v857_v63, 4  ;;  %v862_v29 = vrot.slane %v860_v2, 5  ;;  %v866_v30 = vshll.u32 %v802_v10, 16  ;;  %v4502_v54 = vld [vmem:[%s6240_s3 + $0xe0] sm:$0xff]  }
 0x12e   : > { %v1364_v31 = vshrl.u32 %v1347_v12, 16  ;;  %v1367_v33 = vshll.u32 %v1347_v12, 16  ;;  %v1349_v34 = vld [vmem:[#allocation2 + $0x18] sm:$0xf]  ;;  %v774_v0 = vsel %vm4949_vm13, %v711_v23, %v773_v18  ;;  %v777_v44 = vsel %vm4837_vm4, %v712_v24, %v776_v20  ;;  %v1350_v36 = vld [vmem:[#allocation2 + $0x1c] sm:$0x1]  ;;  %4289 = vmatprep.subr.bf16.mxu0 %v4502_v54  ;;  %vm5481_vm4 = vmand %vm2331_vm0, %vm573_vm1 }
 0x12f   : > { %v850_v1 = vrot.slane %v849_v25, 4  ;;  %v854_v35 = vrot.slane %v852_v8, 5  ;;  %v803_v37 = vld [vmem:[#allocation2 + $0x20] sm:$0xf]  ;;  %775 = vst [vmem:[#allocation2 + $0x40] sm:$0xf] %v774_v0  ;;  %v863_v38 = vor.u32 %v862_v29, %v859_v27 }
 0x130   : > { %778 = vst [vmem:[#allocation2 + $0x44] sm:$0x1] %v777_v44  ;;  %v1366_v39 = vrot.slane %v1364_v31, 4  ;;  %v1369_v41 = vrot.slane %v1367_v33, 5  ;;  %v1373_v43 = vshll.u32 %v1348_v28, 16  ;;  %v868_v47 = vrot.slane %v866_v30, 5 }
 0x131   : > { %v855_v6 = vsel %vm4875_vm8, %v850_v1, %v854_v35  ;;  %v1378_v40 = vshrl.u32 %v1349_v34, 16  ;;  %v1381_v49 = vshll.u32 %v1349_v34, 16  ;;  %v5098_v51 = vld [vmem:[#allocation2 + $0x24] sm:$0x1]  ;;  %v864_v55 = vrot.slane %v863_v38, 4  ;;  %v4504_v16 = vld [vmem:[%s6240_s3 + $0x78] sm:$0xff]  }
 0x132   : > { %930 = vrot.lane.b32.xlu0 %v855_v6, %s4660_s23  ;;  %v1370_v56 = vor.u32 %v1369_v41, %v1366_v39  ;;  %v1387_v57 = vshll.u32 %v1350_v36, 16  ;;  %v871_v58 = vshrl.u32 %v803_v37, 16  ;;  %v805_v59 = vld [vmem:[#allocation2 + $0x28] sm:$0xf]  ;;  %v4503_v60 = vld [vmem:[%s6240_s3 + $0xa0] sm:$0xff]   ;;  %v874_v3 = vshll.u32 %v803_v37, 16  ;;  %4255 = vmatprep.subr.bf16.mxu1 %v4504_v16 }
 0x133   : > { %v1380_v63 = vrot.slane %v1378_v40, 4  ;;  %v1383_v2 = vrot.slane %v1381_v49, 5  ;;  %v807_v5 = vld [vmem:[#allocation2 + $0x30] sm:$0xf]  ;;  %v5107_v7 = vrot.slane %v1468_v42, 4  ;;  %v869_v52 = vsel %vm4875_vm8, %v864_v55, %v868_v47  ;;  %4290 = vmatpush3.bf16.msra.mxu0 %v4503_v60  ;;  %v4505_v25 = vld [vmem:[%s6240_s3 + $0x38] sm:$0xff]  }
 0x134   : > { %v5109_v19 = vld [vmem:[#allocation2 + $0x28] sm:$0xe]  ;;  %v1371_v8 = vrot.slane %v1370_v56, 4  ;;  %v1375_v10 = vrot.slane %v1373_v43, 5  ;;  %v873_v12 = vrot.slane %v871_v58, 4  ;;  %932 = vrot.lane.b32.xlu1 %v869_v52, %s4660_s23  ;;  %v876_v20 = vrot.slane %v874_v3, 5  ;;  %4256 = vmatpush3.bf16.msra.mxu1 %v4505_v25 }
 0x135   : > { %v806_v13 = vld [vmem:[#allocation2 + $0x2c] sm:$0x1]  ;;  %v1384_v18 = vor.u32 %v1383_v2, %v1380_v63  ;;  %v880_v42 = vshll.u32 %v5098_v51, 16  ;;  %v885_v23 = vshrl.u32 %v805_v59, 16  ;;  %v808_v24 = vld [vmem:[#allocation2 + $0x34] sm:$0x1] }
 0x136   : > { %v5116_v17 = vld [vmem:[#allocation2 + $0x2c] sm:$0x1]  ;;  %v1376_v27 = vsel %vm4875_vm8, %v1371_v8, %v1375_v10  ;;  %v1389_v28 = vrot.slane %v1387_v57, 5  ;;  %v888_v29 = vshll.u32 %v805_v59, 16  ;;  %v899_v30 = vshrl.u32 %v807_v5, 16  ;;  %v4510_v54 = vld [vmem:[%s6240_s3 + $0xf0] sm:$0xff]  }
 0x137   : > { %v809_v31 = vld [vmem:[#allocation2 + $0x38] sm:$0xf]  ;;  %v4506_v33 = vld [vmem:[%s6240_s3 + $0xe8] sm:$0xff]   ;;  %1475 = vrot.lane.b32.xlu0 %v1376_v27, %s4660_s23  ;;  %v1385_v34 = vrot.slane %v1384_v18, 4  ;;  %v877_v0 = vor.u32 %v876_v20, %v873_v12  ;;  %v887_v44 = vrot.slane %v885_v23, 4  ;;  %v902_v1 = vshll.u32 %v807_v5, 16 }
 0x138   : > { %v5129_v35 = vld [vmem:[#allocation2 + $0x18] sm:$0xe]  ;;  %v4507_v36 = vld [vmem:[%s6240_s3 + $0xa8] sm:$0xff]   ;;  %v890_v38 = vrot.slane %v888_v29, 5  ;;  %v894_v39 = vshll.u32 %v806_v13, 16  ;;  %v901_v41 = vrot.slane %v899_v30, 4  ;;  %4291 = vmatprep.subr.bf16.mxu0 %v4506_v33 }
 0x139   : > { %v1046_v37 = vld [vmem:[#allocation2 + $0x28] sm:$0xf]  ;;  %v908_v43 = vshll.u32 %v808_v24, 16  ;;  %v810_v46 = vld [vmem:[#allocation2 + $0x3c] sm:$0x1]  ;;  %v4029_v6 = vrot.slane %v5109_v19, 9  ;;  %v1390_v47 = vsel %vm4875_vm8, %v1385_v34, %v1389_v28  ;;  %4292 = vmatpush3.bf16.msra.mxu0 %v4507_v36 }
 0x13a   : > { %v904_v40 = vrot.slane %v902_v1, 5  ;;  %v913_v49 = vshrl.u32 %v809_v31, 16  ;;  %v1239_v51 = vld [vmem:[#allocation2 + $0x1c] sm:$0x1]  ;;  %v1553_v55 = vrot.slane %v5116_v17, 5  ;;  %1477 = vrot.lane.b32.xlu1 %v1390_v47, %s4660_s23  ;;  %v878_v56 = vrot.slane %v877_v0, 4  ;;  %4293 = vmatprep.subr.bf16.mxu0 %v4510_v54 }
 0x13b   : > { %v891_v57 = vor.u32 %v890_v38, %v887_v44  ;;  %v916_v58 = vshll.u32 %v809_v31, 16  ;;  %v5142_v59 = vld [vmem:[#allocation2 + $0x20] sm:$0xe]  ;;  %v4511_v63 = vld [vmem:[%s6240_s3 + $0xb0] sm:$0xff]   ;;  %1066 = vrot.lane.b32.xlu0 %v1046_v37, %s4660_s23  ;;  %v882_v3 = vrot.slane %v880_v42, 5  ;;  %v922_v8 = vshll.u32 %v810_v46, 16 }
 0x13c   : > { %v1351_v60 = vld [vmem:[#allocation2 + $0x20] sm:$0xf]  ;;  %v1047_v2 = vld [vmem:[#allocation2 + $0x30] sm:$0xf]  ;;  %v905_v5 = vor.u32 %v904_v40, %v901_v41  ;;  %v915_v52 = vrot.slane %v913_v49, 4  ;;  %v896_v12 = vrot.slane %v894_v39, 5 }
 0x13d   : > { %v5148_v10 = vld [vmem:[#allocation2 + $0x24] sm:$0x1]  ;;  %v5150_v13 = vrot.slane %v908_v43, 5  ;;  %v918_v16 = vrot.slane %v916_v58, 5  ;;  %v4020_v18 = vrot.slane %v5129_v35, 9  ;;  %v892_v23 = vrot.slane %v891_v57, 4  ;;  %4294 = vmatpush3.bf16.msra.mxu0 %v4511_v63 }
 0x13e   : > { %v1352_v20 = vld [vmem:[#allocation2 + $0x24] sm:$0x1]  ;;  %v5153_v24 = vrot.slane %v905_v5, 4  ;;  %v1276_v25 = vrot.slane %v1239_v51, 5  ;;  %v1392_v27 = vshrl.u32 %v1351_v60, 16  ;;  %1068 = vrot.lane.b32.xlu1 %v1047_v2, %s4660_s23  ;;  %v883_v42 = vsel %vm4875_vm8, %v878_v56, %v882_v3  ;;  %v4514_v34 = vld [vmem:[%s6240_s3 + $0xf8] sm:$0xff]  }
 0x13f   : > { %v1353_v28 = vld [vmem:[#allocation2 + $0x28] sm:$0xf]  ;;  %v919_v29 = vor.u32 %v918_v16, %v915_v52  ;;  %v1395_v30 = vshll.u32 %v1351_v60, 16  ;;  %v1354_v31 = vld [vmem:[#allocation2 + $0x2c] sm:$0x1]  ;;  %934 = vrot.lane.b32.xlu0 %v883_v42, %s4660_s23  ;;  %v5164_v0 = vrot.slane %v922_v8, 5  ;;  %4295 = vmatprep.subr.bf16.mxu0 %v4514_v34  ;;  %v897_v47 = vsel %vm4875_vm8, %v892_v23, %v896_v12 }
 0x140   : > { %v5158_v33 = vld [vmem:[#allocation2 + $0x28] sm:$0xe]  ;;  %v4021_v44 = vrot.slane %v5142_v59, 9  ;;  %v1394_v1 = vrot.slane %v1392_v27, 4  ;;  %v1401_v35 = vshll.u32 %v1352_v20, 16  ;;  %v1280_v38 = vrot.slane %v5148_v10, 5 }
 0x141   : > { %v1243_v36 = vld [vmem:[#allocation2 + $0x2c] sm:$0x1]  ;;  %v1048_v37 = vld [vmem:[#allocation2 + $0x38] sm:$0xf]  ;;  %v1397_v39 = vrot.slane %v1395_v30, 5  ;;  %v1406_v41 = vshrl.u32 %v1353_v28, 16  ;;  %v911_v40 = vsel %vm4875_vm8, %v5153_v24, %v5150_v13  ;;  %v5176_v49 = vsel %vm4907_vm11, %v4020_v18, %v1276_v25 }
 0x142   : > { %v1409_v43 = vshll.u32 %v1353_v28, 16  ;;  %v1244_v46 = vld [vmem:[#allocation2 + $0x30] sm:$0xe]  ;;  %v1245_v51 = vld [vmem:[#allocation2 + $0x34] sm:$0x1]  ;;  %936 = vrot.lane.b32.xlu1 %v897_v47, %s4660_s23  ;;  %v920_v57 = vrot.slane %v919_v29, 4  ;;  %v1281_v30 = vsel %vm4907_vm11, %v4021_v44, %v1280_v38 }
 0x143   : > { %v1355_v54 = vld [vmem:[#allocation2 + $0x30] sm:$0xf]  ;;  %v1356_v56 = vld [vmem:[#allocation2 + $0x34] sm:$0x1]  ;;  %v5179_v58 = vrot.slane %v1401_v35, 5  ;;  %v1408_v59 = vrot.slane %v1406_v41, 4  ;;  %1070 = vrot.lane.b32.xlu0 %v1048_v37, %s4660_s23  ;;  %v1398_v3 = vor.u32 %v1397_v39, %v1394_v1 }
 0x144   : > { %v1411_v60 = vrot.slane %v1409_v43, 5  ;;  %v1357_v63 = vld [vmem:[#allocation2 + $0x38] sm:$0xf]  ;;  %v1049_v2 = vld [vmem:[#allocation2 + $0x40] sm:$0xf]  ;;  %v1415_v5 = vshll.u32 %v1354_v31, 16  ;;  %v925_v29 = vsel %vm4875_vm8, %v920_v57, %v5164_v0 }
 0x145   : > { %v4022_v52 = vrot.slane %v5158_v33, 9  ;;  %v1284_v8 = vrot.slane %v1243_v36, 5  ;;  %v1358_v10 = vld [vmem:[#allocation2 + $0x3c] sm:$0x1]  ;;  %v5186_v12 = vld [vmem:[%s6240_s3 + $0x100] sm:$0xff]   ;;  %v4023_v13 = vrot.slane %v1244_v46, 9 }
 0x146   : > { %v1288_v16 = vrot.slane %v1245_v51, 5  ;;  %v1420_v18 = vshrl.u32 %v1355_v54, 16  ;;  %v1423_v20 = vshll.u32 %v1355_v54, 16  ;;  %v4516_v23 = vld [vmem:[%s6240_s3 + $0xb8] sm:$0xff]   ;;  %v1412_v24 = vor.u32 %v1411_v60, %v1408_v59  ;;  %4375 = vmatprep.subr.bf16.mxu1 %v5186_v12  ;;  %1072 = vrot.lane.b32.xlu1 %v1049_v2, %s4660_s23  ;;  %v5202_v1 = vld [vmem:[#allocation2 + $0x40] sm:$0xe] }
 0x147   : > { %v1429_v25 = vshll.u32 %v1356_v56, 16  ;;  %v1434_v27 = vshrl.u32 %v1357_v63, 16  ;;  %v1437_v28 = vshll.u32 %v1357_v63, 16  ;;  %v5191_v42 = vld [vmem:[#allocation2 + $0x38] sm:$0xe]  ;;  %4296 = vmatpush3.bf16.msra.mxu0 %v4516_v23  ;;  %938 = vrot.lane.b32.xlu0 %v911_v40, %s4660_s23  ;;  %v5205_v35 = vrot.slane %v1415_v5, 5 }
 0x148   : > { %v1422_v31 = vrot.slane %v1420_v18, 4  ;;  %v1425_v33 = vrot.slane %v1423_v20, 5  ;;  %v5200_v34 = vld [vmem:[#allocation2 + $0x3c] sm:$0x1]  ;;  %v1443_v39 = vshll.u32 %v1358_v10, 16  ;;  %v1399_v0 = vrot.slane %v1398_v3, 4 }
 0x149   : > { %v1436_v36 = vrot.slane %v1434_v27, 4  ;;  %v1439_v37 = vrot.slane %v1437_v28, 5  ;;  %v1359_v41 = vld [vmem:[#allocation2 + $0x40] sm:$0xf]  ;;  %v1090_v43 = vld [vmem:[#allocation2 + $0x8] sm:$0xf]  ;;  %v5209_v44 = vsel %vm4907_vm11, %v4022_v52, %v1284_v8  ;;  %v5213_v38 = vsel %vm4907_vm11, %v4023_v13, %v1288_v16 }
 0x14a   : > { %v1426_v46 = vor.u32 %v1425_v33, %v1422_v31  ;;  %v5215_v47 = vld [vmem:[#allocation2 + $0x44] sm:$0x1]  ;;  %v5219_v51 = vld [vmem:[#allocation2 + $0xc] sm:$0x1]  ;;  %v1413_v54 = vrot.slane %v1412_v24, 4  ;;  %v5221_v56 = vrot.slane %v1429_v25, 5  ;;  %940 = vrot.lane.b32.xlu1 %v925_v29, %s4660_s23 }
 0x14b   : > { %v5217_v40 = vld [vmem:[#allocation2 + $0x44] sm:$0x1]  ;;  %v1440_v57 = vor.u32 %v1439_v37, %v1436_v36  ;;  %v4024_v59 = vrot.slane %v5191_v42, 9  ;;  %v962_v60 = vld [vmem:[#allocation2 + $0xc] sm:$0x1]  ;;  %v5225_v2 = vrot.slane %v1443_v39, 5  ;;  %1302 = vrot.lane.b32.xlu0 %v5176_v49, %s4660_s23  ;;  %v1404_v49 = vsel %vm4875_vm8, %v1399_v0, %v5179_v58 }
 0x14c   : > { %v961_v63 = vld [vmem:[#allocation2 + $0x8] sm:$0xe]  ;;  %v1292_v3 = vrot.slane %v5200_v34, 5  ;;  %v1448_v5 = vshrl.u32 %v1359_v41, 16  ;;  %v1451_v52 = vshll.u32 %v1359_v41, 16  ;;  %v5230_v16 = vrot.slane %v1426_v46, 4 }
 0x14d   : > { %v963_v8 = vld [vmem:[#allocation2 + $0x10] sm:$0xe]  ;;  %v964_v10 = vld [vmem:[#allocation2 + $0x14] sm:$0x1]  ;;  %v5232_v18 = vrot.slane %v1440_v57, 4  ;;  %v4025_v20 = vrot.slane %v5202_v1, 9  ;;  %v1418_v36 = vsel %vm4875_vm8, %v1413_v54, %v5205_v35 }
 0x14e   : > { %v1092_v13 = vld [vmem:[#allocation2 + $0x10] sm:$0xf]  ;;  %v1296_v23 = vrot.slane %v5215_v47, 5  ;;  %v1093_v24 = vld [vmem:[#allocation2 + $0x14] sm:$0x1]  ;;  %v1450_v25 = vrot.slane %v1448_v5, 4  ;;  %1304 = vrot.lane.b32.xlu1 %v1281_v30, %s4660_s23  ;;  %v1432_v30 = vsel %vm4875_vm8, %v5230_v16, %v5221_v56 }
 0x14f   : > { %v1453_v27 = vrot.slane %v1451_v52, 5  ;;  %v1457_v28 = vshll.u32 %v5217_v40, 16  ;;  %v1107_v29 = vshrl.u32 %v1090_v43, 16  ;;  %v965_v31 = vld [vmem:[#allocation2 + $0x18] sm:$0xe]  ;;  %v1116_v37 = vshll.u32 %v5219_v51, 16  ;;  %1479 = vrot.lane.b32.xlu0 %v1404_v49, %s4660_s23 }
 0x150   : > { %v780_v33 = vld [vmem:[#allocation2 + $0x8] sm:$0xf]  ;;  %v1110_v39 = vshll.u32 %v1090_v43, 16  ;;  %v966_v41 = vld [vmem:[#allocation2 + $0x1c] sm:$0x1]  ;;  %v1000_v52 = vrot.slane %v962_v60, 5  ;;  %v1297_v34 = vsel %vm4907_vm11, %v4025_v20, %v1296_v23 }
 0x151   : > { %788 = vst.msk [vmem:[#allocation3 + $0x14] sm:$0xf] %vm564_vm3, %v780_v33  ;;  %v781_v46 = vld [vmem:[#allocation2 + $0x10] sm:$0xf]  ;;  %v1454_v57 = vor.u32 %v1453_v27, %v1450_v25  ;;  %v1109_v5 = vrot.slane %v1107_v29, 4  ;;  %v4011_v61 = vrot.slane %v961_v63, 9 }
 0x152   : > { %789 = vst.msk [vmem:[#allocation3 + $0x28] sm:$0xf] %vm564_vm3, %v781_v46  ;;  %v782_v58 = vld [vmem:[#allocation2 + $0x18] sm:$0xf]  ;;  %v1112_v0 = vrot.slane %v1110_v39, 5  ;;  %v4012_v35 = vrot.slane %v963_v8, 9  ;;  %1481 = vrot.lane.b32.xlu1 %v1418_v36, %s4660_s23 }
 0x153   : > { %v1004_v54 = vrot.slane %v964_v10, 5  ;;  %v1121_v51 = vshrl.u32 %v1092_v13, 16  ;;  %790 = vst.msk [vmem:[#allocation3 + $0x3c] sm:$0xf] %vm564_vm3, %v782_v58  ;;  %v1331_v43 = vld [vmem:[#allocation2 + $0x10] sm:$0xf]  ;;  %v1001_v60 = vsel %vm4907_vm11, %v4011_v61, %v1000_v52  ;;  %1306 = vrot.lane.b32.xlu0 %v5209_v44, %s4660_s23 }
 0x154   : > { %v1124_v63 = vshll.u32 %v1092_v13, 16  ;;  %v1130_v25 = vshll.u32 %v1093_v24, 16  ;;  %1339 = vst.msk [vmem:[#allocation3 + $0xc] sm:$0xf] %vm564_vm3, %v1331_v43  ;;  %v1332_v27 = vld [vmem:[#allocation2 + $0x18] sm:$0xf]  ;;  %v1113_v29 = vor.u32 %v1112_v0, %v1109_v5 }
 0x155   : > { %1035 = vst.msk [vmem:[#allocation3 + $0x18] sm:$0xf] %vm564_vm3, %v1001_v60  ;;  %v1005_v8 = vsel %vm4907_vm11, %v4012_v35, %v1004_v54  ;;  %v1123_v10 = vrot.slane %v1121_v51, 4  ;;  %v4013_v33 = vrot.slane %v965_v31, 9  ;;  %1340 = vst.msk [vmem:[#allocation3 + $0x20] sm:$0xf] %vm564_vm3, %v1332_v27 }
 0x156   : > { %v967_v49 = vld [vmem:[#allocation2 + $0x20] sm:$0xe]  ;;  %v968_v56 = vld [vmem:[#allocation2 + $0x24] sm:$0x1]  ;;  %v5261_v61 = vrot.slane %v1454_v57, 4  ;;  %v1118_v13 = vrot.slane %v1116_v37, 5  ;;  %1308 = vrot.lane.b32.xlu1 %v5213_v38, %s4660_s23 }
 0x157   : > { %1036 = vst.msk [vmem:[#allocation3 + $0x2c] sm:$0xf] %vm564_vm3, %v1005_v8  ;;  %v1126_v16 = vrot.slane %v1124_v63, 5  ;;  %v1008_v24 = vrot.slane %v966_v41, 5  ;;  %v969_v39 = vld [vmem:[#allocation2 + $0x28] sm:$0xe]  ;;  %v1554_v63 = vsel %vm4907_vm11, %v4029_v6, %v1553_v55  ;;  %1483 = vrot.lane.b32.xlu0 %v1432_v30, %s4660_s23 }
 0x158   : > { %v1114_v46 = vrot.slane %v1113_v29, 4  ;;  %v4014_v5 = vrot.slane %v967_v49, 9  ;;  %v1012_v31 = vrot.slane %v968_v56, 5  ;;  %v970_v52 = vld [vmem:[#allocation2 + $0x2c] sm:$0x1]  ;;  %v4015_v58 = vrot.slane %v969_v39, 9 }
 0x159   : > { %v1127_v0 = vor.u32 %v1126_v16, %v1123_v10  ;;  %v1132_v35 = vrot.slane %v1130_v25, 5  ;;  %v1009_v36 = vsel %vm4907_vm11, %v4013_v33, %v1008_v24  ;;  %v1016_v57 = vrot.slane %v970_v52, 5  ;;  %v783_v37 = vld [vmem:[#allocation2 + $0x20] sm:$0xf]  ;;  %v784_v54 = vld [vmem:[#allocation2 + $0x28] sm:$0xf] }
 0x15a   : > { %v1119_v41 = vsel %vm4875_vm8, %v1114_v46, %v1118_v13  ;;  %1037 = vst.msk [vmem:[#allocation3 + $0x40] sm:$0xf] %vm564_vm3, %v1009_v36  ;;  %v1013_v44 = vsel %vm4907_vm11, %v4014_v5, %v1012_v31  ;;  %791 = vst.msk [vmem:[#allocation3 + $0x50] sm:$0xf] %vm564_vm3, %v783_v37  ;;  %v971_v51 = vld [vmem:[#allocation2 + $0x30] sm:$0xe]  ;;  %v1446_v33 = vsel %vm4875_vm8, %v5232_v18, %v5225_v2 }
 0x15b   : > { %792 = vst.msk [vmem:[#allocation3 + $0x64] sm:$0xf] %vm564_vm3, %v784_v54  ;;  %v972_v43 = vld [vmem:[#allocation2 + $0x34] sm:$0x1]  ;;  %v973_v60 = vld [vmem:[#allocation2 + $0x38] sm:$0xe]  ;;  %v1017_v29 = vsel %vm4907_vm11, %v4015_v58, %v1016_v57  ;;  %v1474_v49 = vsel %vm4875_vm8, %v5107_v7, %v5086_v21  ;;  %1485 = vrot.lane.b32.xlu1 %v1446_v33, %s4660_s23  ;;  %v1293_v31 = vsel %vm4907_vm11, %v4024_v59, %v1292_v3 }
 0x15c   : > { %1226 = vst.msk [vmem:[#allocation3 + $0x8] sm:$0xf] %vm564_vm3, %v1119_v41  ;;  %v1128_v27 = vrot.slane %v1127_v0, 4  ;;  %1038 = vst.msk [vmem:[#allocation3 + $0x54] sm:$0xf] %vm564_vm3, %v1013_v44  ;;  %v4016_v17 = vrot.slane %v971_v51, 9  ;;  %1310 = vrot.lane.b32.xlu0 %v1293_v31, %s4660_s23 }
 0x15d   : > { %v1020_v8 = vrot.slane %v972_v43, 5  ;;  %v974_v19 = vld [vmem:[#allocation2 + $0x3c] sm:$0x1]  ;;  %1582 = vst.msk [vmem:[#allocation3 + $0x4c] sm:$0xf] %vm564_vm3, %v1554_v63  ;;  %v4017_v6 = vrot.slane %v973_v60, 9 }
 0x15e   : > { %1039 = vst.msk [vmem:[#allocation3 + $0x68] sm:$0xf] %vm564_vm3, %v1017_v29  ;;  %v1024_v55 = vrot.slane %v974_v19, 5  ;;  %v785_v38 = vld [vmem:[#allocation2 + $0x30] sm:$0xf]  ;;  %v1133_v56 = vsel %vm4875_vm8, %v1128_v27, %v1132_v35  ;;  %v1459_v42 = vrot.slane %v1457_v28, 5 }
 0x15f   : > { %v786_v10 = vld [vmem:[#allocation2 + $0x38] sm:$0xf]  ;;  %v1021_v30 = vsel %vm4907_vm11, %v4016_v17, %v1020_v8  ;;  %793 = vst.msk [vmem:[#allocation3 + $0x78] sm:$0xf] %vm564_vm3, %v785_v38  ;;  %v1095_v16 = vld [vmem:[#allocation2 + $0x1c] sm:$0x1]  ;;  %1312 = vrot.lane.b32.xlu1 %v1297_v34, %s4660_s23 }
 0x160   : > { %794 = vst.msk [vmem:[#allocation3 + $0x8c] sm:$0xf] %vm564_vm3, %v786_v10  ;;  %v1094_v13 = vld [vmem:[#allocation2 + $0x18] sm:$0xf]  ;;  %v1096_v24 = vld [vmem:[#allocation2 + $0x20] sm:$0xf]  ;;  %v1025_v2 = vsel %vm4907_vm11, %v4017_v6, %v1024_v55  ;;  %v1460_v1 = vsel %vm4875_vm8, %v5261_v61, %v1459_v42 }
 0x161   : > { %1227 = vst.msk [vmem:[#allocation3 + $0x1c] sm:$0xf] %vm564_vm3, %v1133_v56  ;;  %1040 = vst.msk [vmem:[#allocation3 + $0x7c] sm:$0xf] %vm564_vm3, %v1021_v30  ;;  %v1135_v18 = vshrl.u32 %v1094_v13, 16  ;;  %v1138_v39 = vshll.u32 %v1094_v13, 16  ;;  %1487 = vrot.lane.b32.xlu0 %v1460_v1, %s4660_s23 }
 0x162   : > { %v1144_v46 = vshll.u32 %v1095_v16, 16  ;;  %v1097_v5 = vld [vmem:[#allocation2 + $0x24] sm:$0x1]  ;;  %1041 = vst.msk [vmem:[#allocation3 + $0x90] sm:$0xf] %vm564_vm3, %v1025_v2  ;;  %v1149_v52 = vshrl.u32 %v1096_v24, 16 }
 0x163   : > { %v1152_v58 = vshll.u32 %v1096_v24, 16  ;;  %v1158_v0 = vshll.u32 %v1097_v5, 16  ;;  %v1333_v35 = vld [vmem:[#allocation2 + $0x20] sm:$0xf]  ;;  %v1137_v36 = vrot.slane %v1135_v18, 4  ;;  %v1140_v59 = vrot.slane %v1138_v39, 5  ;;  %1489 = vrot.lane.b32.xlu1 %v1474_v49, %s4660_s23 }
 0x164   : > { %1341 = vst.msk [vmem:[#allocation3 + $0x34] sm:$0xf] %vm564_vm3, %v1333_v35  ;;  %v1334_v3 = vld [vmem:[#allocation2 + $0x28] sm:$0xf]  ;;  %v1146_v57 = vrot.slane %v1144_v46, 5  ;;  %v1151_v37 = vrot.slane %v1149_v52, 4 }
 0x165   : > { %v1154_v54 = vrot.slane %v1152_v58, 5  ;;  %v1160_v41 = vrot.slane %v1158_v0, 5  ;;  %1342 = vst.msk [vmem:[#allocation3 + $0x48] sm:$0xf] %vm564_vm3, %v1334_v3  ;;  %v1098_v47 = vld [vmem:[#allocation2 + $0x28] sm:$0xf]  ;;  %v1141_v20 = vor.u32 %v1140_v59, %v1137_v36 }
 0x166   : > { %v1099_v23 = vld [vmem:[#allocation2 + $0x2c] sm:$0x1]  ;;  %v1163_v40 = vshrl.u32 %v1098_v47, 16  ;;  %v1166_v28 = vshll.u32 %v1098_v47, 16  ;;  %v1100_v44 = vld [vmem:[#allocation2 + $0x30] sm:$0xf] }
 0x167   : > { %v1155_v51 = vor.u32 %v1154_v54, %v1151_v37  ;;  %v1172_v43 = vshll.u32 %v1099_v23, 16  ;;  %v1101_v60 = vld [vmem:[#allocation2 + $0x34] sm:$0x1]  ;;  %v1177_v63 = vshrl.u32 %v1100_v44, 16  ;;  %v1180_v27 = vshll.u32 %v1100_v44, 16 }
 0x168   : > { %v1142_v29 = vrot.slane %v1141_v20, 4  ;;  %v1165_v17 = vrot.slane %v1163_v40, 4  ;;  %v1168_v8 = vrot.slane %v1166_v28, 5  ;;  %v1186_v19 = vshll.u32 %v1101_v60, 16  ;;  %v1507_v6 = vld [vmem:[#allocation2 + $0x10] sm:$0xe] }
 0x169   : > { %v1156_v61 = vrot.slane %v1155_v51, 4  ;;  %v1174_v55 = vrot.slane %v1172_v43, 5  ;;  %v1179_v38 = vrot.slane %v1177_v63, 4  ;;  %v1182_v10 = vrot.slane %v1180_v27, 5  ;;  %v1508_v33 = vld [vmem:[#allocation2 + $0x14] sm:$0x1] }
 0x16a   : > { %v1147_v56 = vsel %vm4875_vm8, %v1142_v29, %v1146_v57  ;;  %v1169_v30 = vor.u32 %v1168_v8, %v1165_v17  ;;  %v1188_v13 = vrot.slane %v1186_v19, 5  ;;  %v1509_v16 = vld [vmem:[#allocation2 + $0x18] sm:$0xe]  ;;  %v1510_v24 = vld [vmem:[#allocation2 + $0x1c] sm:$0x1]  ;;  %v4026_v2 = vrot.slane %v1507_v6, 9 }
 0x16b   : > { %1228 = vst.msk [vmem:[#allocation3 + $0x30] sm:$0xf] %vm564_vm3, %v1147_v56  ;;  %v1161_v18 = vsel %vm4875_vm8, %v1156_v61, %v1160_v41  ;;  %v1183_v39 = vor.u32 %v1182_v10, %v1179_v38  ;;  %v1541_v46 = vrot.slane %v1508_v33, 5  ;;  %v4027_v5 = vrot.slane %v1509_v16, 9  ;;  %v1335_v31 = vld [vmem:[#allocation2 + $0x30] sm:$0xf] }
 0x16c   : > { %v1336_v52 = vld [vmem:[#allocation2 + $0x38] sm:$0xf]  ;;  %1229 = vst.msk [vmem:[#allocation3 + $0x44] sm:$0xf] %vm564_vm3, %v1161_v18  ;;  %v1170_v58 = vrot.slane %v1169_v30, 4  ;;  %v1545_v0 = vrot.slane %v1510_v24, 5 }
 0x16d   : > { %1343 = vst.msk [vmem:[#allocation3 + $0x5c] sm:$0xf] %vm564_vm3, %v1335_v31  ;;  %1344 = vst.msk [vmem:[#allocation3 + $0x70] sm:$0xf] %vm564_vm3, %v1336_v52  ;;  %v1102_v21 = vld [vmem:[#allocation2 + $0x38] sm:$0xf]  ;;  %v1542_v35 = vsel %vm4907_vm11, %v4026_v2, %v1541_v46 }
 0x16e   : > { %v1103_v7 = vld [vmem:[#allocation2 + $0x3c] sm:$0x1]  ;;  %v1184_v49 = vrot.slane %v1183_v39, 4  ;;  %v1191_v34 = vshrl.u32 %v1102_v21, 16  ;;  %v1194_v42 = vshll.u32 %v1102_v21, 16  ;;  %v1175_v59 = vsel %vm4875_vm8, %v1170_v58, %v1174_v55 }
 0x16f   : > { %v1104_v36 = vld [vmem:[#allocation2 + $0x40] sm:$0xf]  ;;  %v1546_v3 = vsel %vm4907_vm11, %v4027_v5, %v1545_v0  ;;  %1579 = vst.msk [vmem:[#allocation3 + $0x10] sm:$0xf] %vm564_vm3, %v1542_v35  ;;  %v1200_v57 = vshll.u32 %v1103_v7, 16  ;;  %vm2547_vm1 = vcmask 519424  }
 0x170   : > { %v1105_v37 = vld [vmem:[#allocation2 + $0x44] sm:$0x1]  ;;  %v1205_v54 = vshrl.u32 %v1104_v36, 16  ;;  %1230 = vst.msk [vmem:[#allocation3 + $0x58] sm:$0xf] %vm564_vm3, %v1175_v59  ;;  %v1189_v41 = vsel %vm4875_vm8, %v1184_v49, %v1188_v13  ;;  %v1193_v47 = vrot.slane %v1191_v34, 4 }
 0x171   : > { %1580 = vst.msk [vmem:[#allocation3 + $0x24] sm:$0xf] %vm564_vm3, %v1546_v3  ;;  %v1196_v1 = vrot.slane %v1194_v42, 5  ;;  %v1208_v20 = vshll.u32 %v1104_v36, 16  ;;  %1231 = vst.msk [vmem:[#allocation3 + $0x6c] sm:$0xf] %vm564_vm3, %v1189_v41 }
 0x172   : > { %v1207_v23 = vrot.slane %v1205_v54, 4  ;;  %v1214_v40 = vshll.u32 %v1105_v37, 16  ;;  %v1202_v44 = vrot.slane %v1200_v57, 5  ;;  %v1515_v43 = vld [vmem:[#allocation2 + $0x30] sm:$0xe]  ;;  %v4520_v59 = vld [vmem:[%s6240_s3 + $0x108] sm:$0xff]  }
 0x173   : > { %v1197_v28 = vor.u32 %v1196_v1, %v1193_v47  ;;  %v1210_v51 = vrot.slane %v1208_v20, 5  ;;  %v1516_v60 = vld [vmem:[#allocation2 + $0x34] sm:$0x1]  ;;  %v1517_v63 = vld [vmem:[#allocation2 + $0x38] sm:$0xe]  ;;  %v4030_v29 = vrot.slane %v1515_v43, 9 }
 0x174   : > { %v1518_v27 = vld [vmem:[#allocation2 + $0x3c] sm:$0x1]  ;;  %v1557_v19 = vrot.slane %v1516_v60, 5  ;;  %v4031_v6 = vrot.slane %v1517_v63, 9  ;;  %v1337_v61 = vld [vmem:[#allocation2 + $0x40] sm:$0xf] }
 0x175   : > { %v1198_v17 = vrot.slane %v1197_v28, 4  ;;  %v1211_v8 = vor.u32 %v1210_v51, %v1207_v23  ;;  %v1216_v55 = vrot.slane %v1214_v40, 5  ;;  %v1561_v38 = vrot.slane %v1518_v27, 5  ;;  %1345 = vst.msk [vmem:[#allocation3 + $0x84] sm:$0xf] %vm564_vm3, %v1337_v61  ;;  %v4523_v37 = vld [vmem:[%s6240_s3 + $0x110] sm:$0xff]  }
 0x176   : > { %v1338_v10 = vld [vmem:[#allocation2 + $0x48] sm:$0xf]  ;;  %v1519_v33 = vld [vmem:[#allocation2 + $0x40] sm:$0xe]  ;;  %v1558_v13 = vsel %vm4907_vm11, %v4030_v29, %v1557_v19  ;;  %v1520_v16 = vld [vmem:[#allocation2 + $0x44] sm:$0x1] }
 0x177   : > { %v1203_v56 = vsel %vm4875_vm8, %v1198_v17, %v1202_v44  ;;  %v1212_v30 = vrot.slane %v1211_v8, 4  ;;  %1346 = vst.msk [vmem:[#allocation3 + $0x98] sm:$0xf] %vm564_vm3, %v1338_v10  ;;  %v4032_v24 = vrot.slane %v1519_v33, 9  ;;  %v1562_v2 = vsel %vm4907_vm11, %v4031_v6, %v1561_v38  ;;  %1583 = vst.msk [vmem:[#allocation3 + $0x60] sm:$0xf] %vm564_vm3, %v1558_v13 }
 0x178   : > { %1232 = vst.msk [vmem:[#allocation3 + $0x80] sm:$0xf] %vm564_vm3, %v1203_v56  ;;  %v1565_v18 = vrot.slane %v1520_v16, 5  ;;  %1584 = vst.msk [vmem:[#allocation3 + $0x74] sm:$0xf] %vm564_vm3, %v1562_v2 }
 0x179   : > { %v1217_v39 = vsel %vm4875_vm8, %v1212_v30, %v1216_v55 }
 0x17a   : > { %1233 = vst.msk [vmem:[#allocation3 + $0x94] sm:$0xf] %vm564_vm3, %v1217_v39  ;;  %v1566_v46 = vsel %vm4907_vm11, %v4032_v24, %v1565_v18  ;;  %v4526_v24 = vld [vmem:[#allocation3 + $0x10] ss:$20 sps:$4 sm:$0xff]  }
 0x17b   : > { %1585 = vst.msk [vmem:[#allocation3 + $0x88] sm:$0xf] %vm564_vm3, %v1566_v46  ;;  %vm5469_vm3 = vmand %vm2326_vm15, %vm599_vm2  ;;  %vm2644_vm2 = vcmask 781824  }
 0x18c   : > { %v1059_v5 = vpop.permute.xlu1 %1058 }
 0x18d   : > { %1082 = vst.msk [vmem:[#allocation3 + $0x4] sm:$0xf] %vm950_vm12, %v1059_v5 }
 0x190   : > { %v1061_v31 = vpop.permute.xlu1 %1060 }
 0x191   : > { %1083 = vst.msk [vmem:[#allocation3 + $0x18] sm:$0xf] %vm950_vm12, %v1061_v31 }
 0x192   : > { %v1299_v52 = vpop.permute.xlu0 %1298 }
 0x193   : > { %1322 = vst.msk [vmem:[#allocation3 + $0x8] sm:$0xf] %vm950_vm12, %v1299_v52 }
 0x194   : > { %v1587_v35 = vld [vmem:[#allocation3] sm:$0xff] }
 0x195   : > { %v1301_v58 = vpop.permute.xlu1 %1300 }
 0x196   : > { %v1063_v0 = vpop.permute.xlu0 %1062  ;;  %1323 = vst.msk [vmem:[#allocation3 + $0x1c] sm:$0xf] %vm950_vm12, %v1301_v58 }
 0x197   : > { %1084 = vst.msk [vmem:[#allocation3 + $0x2c] sm:$0xf] %vm950_vm12, %v1063_v0  ;;  %v4530_v0 = vld [vmem:[#allocation3 + $0x38] ss:$20 sps:$4 sm:$0xff]  }
 0x198   : > { %v4508_v42 = vld [vmem:[#allocation3 + $0x4] ss:$20 sps:$4 sm:$0xff]  }
 0x199   : > { %2051 = vmatprep.mubr.bf16.mxu1 %v4508_v42 }
 0x19a   : > { %v1065_v21 = vpop.permute.xlu1 %1064 }
 0x19b   : > { %1085 = vst.msk [vmem:[#allocation3 + $0x40] sm:$0xf] %vm950_vm12, %v1065_v21  ;;  %v4531_v21 = vld [vmem:[#allocation3 + $0x60] ss:$20 sps:$4 sm:$0xff]  }
 0x19d   : > { %v929_v7 = vpop.permute.xlu0 %928  ;;  %v4517_v51 = vld [vmem:[#allocation3 + $0x8] ss:$20 sps:$4 sm:$0xff]  }
 0x19e   : > { %952 = vst.msk [vmem:[#allocation3 + $0x14] sm:$0xf] %vm950_vm12, %v929_v7 }
 0x1a2   : > { %v4512_v20 = vld [vmem:[#allocation3 + $0x2c] ss:$20 sps:$4 sm:$0xff]  }
 0x1a4   : > { %v931_v49 = vpop.permute.xlu0 %930 }
 0x1a5   : > { %953 = vst.msk [vmem:[#allocation3 + $0x28] sm:$0xf] %vm950_vm12, %v931_v49  ;;  %v1590_v34 = vld [vmem:[#allocation3 + $0x14] sm:$0xff] }
 0x1a6   : > { %v4035_v36 = vcombine.low %v1587_v35, %v1590_v34  ;;  %v933_v3 = vpop.permute.xlu1 %932  ;;  %v3164_v35 = vld [vmem:[#allocation2 + $0x48] sm:$0xe]  ;;  %v3165_v34 = vld [vmem:[#allocation2 + $0x4c] sm:$0x1] }
 0x1a7   : > { %954 = vst.msk [vmem:[#allocation3 + $0x3c] sm:$0xf] %vm950_vm12, %v933_v3  ;;  %v4535_v3 = vld [vmem:[#allocation3 + $0x88] ss:$20 sps:$4 sm:$0xff]  }
 0x1a8   : > { %2052 = vmatmul.mubr.bf16.vlgmr.msra.gmra.mrb[0].mxu1 %v4035_v36 }
 0x1a9   : > { %v1476_v57 = vpop.permute.xlu0 %1475  ;;  %4376 = vmatpush3.bf16.msra.mxu1 %v5186_v12  ;;  %v4527_v12 = vld [vmem:[%s6240_s3 + $0x118] sm:$0xff]   ;;  %2059 = vmatprep.mubr.bf16.mxu1 %v4512_v20  ;;  %v2395_v20 = vld [vmem:[#allocation2] sm:$0xf] }
 0x1aa   : > { %1499 = vst.msk [vmem:[#allocation3 + $0xc] sm:$0xf] %vm950_vm12, %v1476_v57  ;;  %4377 = vmatprep.subr.bf16.mxu1 %v4520_v59  ;;  %v4126_v57 = vrot.slane %v3164_v35, 9 }
 0x1ac   : > { %v1478_v54 = vpop.permute.xlu1 %1477  ;;  %v1593_v47 = vld [vmem:[#allocation3 + $0x28] sm:$0xff] }
 0x1ad   : > { %1500 = vst.msk [vmem:[#allocation3 + $0x20] sm:$0xf] %vm950_vm12, %v1478_v54  ;;  %v1067_v41 = vpop.permute.xlu0 %1066  ;;  %4378 = vmatpush3.bf16.msra.mxu1 %v4520_v59 }
 0x1ae   : > { %1086 = vst.msk [vmem:[#allocation3 + $0x54] sm:$0xf] %vm950_vm12, %v1067_v41  ;;  %4379 = vmatprep.subr.bf16.mxu1 %v4523_v37  ;;  %v1596_v1 = vld [vmem:[#allocation3 + $0x3c] sm:$0xff] }
 0x1af   : > { %v4040_v40 = vcombine.low %v1593_v47, %v1596_v1 }
 0x1b0   : > { %v1069_v23 = vpop.permute.xlu1 %1068 }
 0x1b1   : > { %1087 = vst.msk [vmem:[#allocation3 + $0x68] sm:$0xf] %vm950_vm12, %v1069_v23  ;;  %v935_v28 = vpop.permute.xlu0 %934  ;;  %4380 = vmatpush3.bf16.msra.mxu1 %v4523_v37  ;;  %v3212_v37 = vrot.slane %v3165_v34, 5  ;;  %v2396_v23 = vld [vmem:[#allocation2 + $0x4] sm:$0x1] }
 0x1b2   : > { %955 = vst.msk [vmem:[#allocation3 + $0x50] sm:$0xf] %vm950_vm12, %v935_v28  ;;  %2060 = vmatmul.mubr.bf16.gmra.mrb[4].mxu1 %v4040_v40  ;;  %4381 = vmatprep.subr.bf16.mxu1 %v4527_v12  ;;  %v2412_v40 = vshrl.u32 %v2395_v20, 16  ;;  %v2415_v28 = vshll.u32 %v2395_v20, 16 }
 0x1b3   : > { %v3213_v41 = vsel %vm4907_vm11, %v4126_v57, %v3212_v37 }
 0x1b4   : > { %v937_v44 = vpop.permute.xlu1 %936  ;;  %v4519_v43 = vld [vmem:[#allocation3 + $0xc] ss:$20 sps:$4 sm:$0xff]  }
 0x1b5   : > { %956 = vst.msk [vmem:[#allocation3 + $0x64] sm:$0xf] %vm950_vm12, %v937_v44  ;;  %v1071_v60 = vpop.permute.xlu0 %1070  ;;  %4382 = vmatpush3.bf16.msra.mxu1 %v4527_v12  ;;  %2116 = vmatprep.mubr.bf16.mxu0 %v4519_v43  ;;  %v2421_v44 = vshll.u32 %v2396_v23, 16  ;;  %v2417_v43 = vrot.slane %v2415_v28, 5  ;;  %v2378_v28 = vld [vmem:[#allocation2] sm:$0xf] }
 0x1b6   : > { %1088 = vst.msk [vmem:[#allocation3 + $0x7c] sm:$0xf] %vm950_vm12, %v1071_v60  ;;  %2117 = vmatmul.mubr.bf16.vlgmr.msra.gmra.mrb[16].mxu0 %v4517_v51  ;;  %v2414_v51 = vrot.slane %v2412_v40, 4  ;;  %v4538_v60 = vld [vmem:[%s6242_s5 + $0x80] sm:$0xff]  }
 0x1b7   : > { %4391 = vmatprep.subr.bf16.mxu1 %v4538_v60  ;;  %2387 = vst.msk [vmem:[#allocation3] sm:$0xf] %vm2326_vm15, %v2378_v28 }
 0x1b8   : > { %v1073_v63 = vpop.permute.xlu1 %1072  ;;  %v4521_v19 = vld [vmem:[#allocation3 + $0x54] ss:$20 sps:$4 sm:$0xff]  }
 0x1b9   : > { %1089 = vst.msk [vmem:[#allocation3 + $0x90] sm:$0xf] %vm950_vm12, %v1073_v63  ;;  %v939_v27 = vpop.permute.xlu0 %938  ;;  %v1599_v29 = vld [vmem:[#allocation3 + $0x50] sm:$0xff]  ;;  %2067 = vmatprep.mubr.bf16.mxu1 %v4521_v19 }
 0x1ba   : > { %957 = vst.msk [vmem:[#allocation3 + $0x78] sm:$0xf] %vm950_vm12, %v939_v27  ;;  %v2556_v63 = vld [vmem:[#allocation2] sm:$0xe]  ;;  %v2557_v27 = vld [vmem:[#allocation2 + $0x4] sm:$0x1] }
 0x1bb   : > { %v4103_v19 = vrot.slane %v2556_v63, 9 }
 0x1bc   : > { %v941_v17 = vpop.permute.xlu1 %940  ;;  %v1602_v8 = vld [vmem:[#allocation3 + $0x64] sm:$0xff] }
 0x1bd   : > { %958 = vst.msk [vmem:[#allocation3 + $0x8c] sm:$0xf] %vm950_vm12, %v941_v17  ;;  %v1303_v6 = vpop.permute.xlu0 %1302  ;;  %v4045_v61 = vcombine.low %v1599_v29, %v1602_v8  ;;  %v2418_v29 = vor.u32 %v2417_v43, %v2414_v51  ;;  %v2423_v17 = vrot.slane %v2421_v44, 5 }
 0x1be   : > { %1324 = vst.msk [vmem:[#allocation3 + $0x30] sm:$0xf] %vm950_vm12, %v1303_v6  ;;  %v2590_v6 = vrot.slane %v2557_v27, 5 }
 0x1bf   : > { %2068 = vmatmul.mubr.bf16.gmra.mrb[8].mxu1 %v4045_v61  ;;  %v2419_v8 = vrot.slane %v2418_v29, 4  ;;  %v4540_v61 = vld [vmem:[%s6242_s5 + $0x88] sm:$0xff]  }
 0x1c0   : > { %v1305_v55 = vpop.permute.xlu1 %1304  ;;  %v4524_v30 = vld [vmem:[#allocation3 + $0x7c] ss:$20 sps:$4 sm:$0xff]  }
 0x1c1   : > { %1325 = vst.msk [vmem:[#allocation3 + $0x44] sm:$0xf] %vm950_vm12, %v1305_v55  ;;  %v1480_v38 = vpop.permute.xlu0 %1479  ;;  %v1605_v10 = vld [vmem:[#allocation3 + $0x78] sm:$0xff]  ;;  %2075 = vmatprep.mubr.bf16.mxu1 %v4524_v30  ;;  %v2424_v55 = vsel %vm4875_vm8, %v2419_v8, %v2423_v17 }
 0x1c2   : > { %1501 = vst.msk [vmem:[#allocation3 + $0x34] sm:$0xf] %vm950_vm12, %v1480_v38  ;;  %2523 = vrot.lane.b32.xlu0 %v2424_v55, %s4661_s16  ;;  %v2591_v38 = vsel %vm4907_vm11, %v4103_v19, %v2590_v6 }
 0x1c4   : > { %v1482_v33 = vpop.permute.xlu1 %1481  ;;  %v1608_v56 = vld [vmem:[#allocation3 + $0x8c] sm:$0xff] }
 0x1c5   : > { %1502 = vst.msk [vmem:[#allocation3 + $0x48] sm:$0xf] %vm950_vm12, %v1482_v33  ;;  %v1307_v13 = vpop.permute.xlu0 %1306  ;;  %v4050_v16 = vcombine.low %v1605_v10, %v1608_v56 }
 0x1c6   : > { %1326 = vst.msk [vmem:[#allocation3 + $0x58] sm:$0xf] %vm950_vm12, %v1307_v13  ;;  %2620 = vrot.lane.b32.xlu0 %v2591_v38, %s4660_s23 }
 0x1c7   : > { %2076 = vmatmul.mubr.bf16.gmra.mrb[12].mxu1 %v4050_v16 }
 0x1c8   : > { %v1309_v2 = vpop.permute.xlu1 %1308  ;;  %4383 = vmatprep.mubr.msk.bf16.mxu1 %vm2006_vm14, %v4526_v24 }
 0x1c9   : > { %1327 = vst.msk [vmem:[#allocation3 + $0x6c] sm:$0xf] %vm950_vm12, %v1309_v2  ;;  %v1484_v18 = vpop.permute.xlu0 %1483  ;;  %v1594_v39 = vld [vmem:[#allocation3 + $0x30] sm:$0xff] }
 0x1ca   : > { %1503 = vst.msk [vmem:[#allocation3 + $0x5c] sm:$0xf] %vm950_vm12, %v1484_v18 }
 0x1cc   : > { %v1597_v5 = vld [vmem:[#allocation3 + $0x44] sm:$0xff] }
 0x1cd   : > { %v1486_v46 = vpop.permute.xlu1 %1485  ;;  %v4528_v31 = vld [vmem:[#allocation3 + $0x34] ss:$20 sps:$4 sm:$0xff]   ;;  %v4042_v58 = vcombine.low %v1594_v39, %v1597_v5  ;;  %v5440_v5 = vld [vmem:[%s6241_s4] ss:$0 sm:$0xff] }
 0x1ce   : > { %1504 = vst.msk [vmem:[#allocation3 + $0x70] sm:$0xf] %vm950_vm12, %v1486_v46  ;;  %v1311_v52 = vpop.permute.xlu0 %1310  ;;  %2124 = vmatprep.mubr.bf16.mxu0 %v4528_v31 }
 0x1cf   : > { %1328 = vst.msk [vmem:[#allocation3 + $0x80] sm:$0xf] %vm950_vm12, %v1311_v52  ;;  %2125 = vmatmul.mubr.bf16.gmra.mrb[20].mxu0 %v4042_v58  ;;  %4384 = vmatmul.mubr.msk.bf16.vlgmr.msra.gmra.mrb[16].mxu1 %vm2006_vm14, %v4530_v0 }
 0x1d0   : > { %4387 = vmatprep.mubr.msk.bf16.mxu1 %vm2006_vm14, %v4531_v21  ;;  %v4534_v59 = vld [vmem:[#allocation3 + $0x58] ss:$20 sps:$4 sm:$0xff]   ;;  %4392 = vmatpush3.bf16.msra.mxu1 %v4538_v60 }
 0x1d1   : > { %v1313_v7 = vpop.permute.xlu1 %1312  ;;  %4393 = vmatprep.subr.bf16.mxu1 %v4540_v61 }
 0x1d2   : > { %1329 = vst.msk [vmem:[#allocation3 + $0x94] sm:$0xf] %vm950_vm12, %v1313_v7 }
 0x1d3   : > { %v1488_v49 = vpop.permute.xlu0 %1487 }
 0x1d4   : > { %1505 = vst.msk [vmem:[#allocation3 + $0x84] sm:$0xf] %vm950_vm12, %v1488_v49  ;;  %4394 = vmatpush3.bf16.msra.mxu1 %v4540_v61 }
 0x1d5   : > { %v1490_v42 = vpop.permute.xlu1 %1489  ;;  %v4532_v36 = vld [vmem:[#allocation3 + $0x5c] ss:$20 sps:$4 sm:$0xff]  }
 0x1d6   : > { %1506 = vst.msk [vmem:[#allocation3 + $0x98] sm:$0xf] %vm950_vm12, %v1490_v42  ;;  %2132 = vmatprep.mubr.bf16.mxu0 %v4532_v36 }
 0x1d7   : > { %2133 = vmatmul.mubr.bf16.gmra.mrb[24].mxu0 %v4534_v59  ;;  %4388 = vmatmul.mubr.msk.bf16.gmra.mrb[20].mxu1 %vm2006_vm14, %v4535_v3 }
 0x1db   : > { %v1606_v54 = vld [vmem:[#allocation3 + $0x80] sm:$0xff] }
 0x1dd   : > { %v1609_v47 = vld [vmem:[#allocation3 + $0x94] sm:$0xff] }
 0x1de   : > { %v4536_v12 = vld [vmem:[#allocation3 + $0x84] ss:$20 sps:$4 sm:$0xff]   ;;  %3229 = vst.msk [vmem:[#allocation3 + $0x94] sm:$0xf] %vm2326_vm15, %v3213_v41  ;;  %v4052_v1 = vcombine.low %v1606_v54, %v1609_v47 }
 0x1df   : > { %2140 = vmatprep.mubr.bf16.mxu0 %v4536_v12 }
 0x1e0   : > { %2141 = vmatmul.mubr.bf16.gmra.mrb[28].mxu0 %v4052_v1 }
 0x27b   : > { %v4257_v10 = vpop.f32.mrb[0].mxu1 }
 0x27c   : > { %v4258_v33 = vpop.f32.mrb[1].mxu1 }
 0x27d   : > { %v4259_v56 = vadd.f32 %v4258_v33, %v4257_v10  ;;  %v4260_v30 = vpop.f32.mrb[2].mxu1 }
 0x27e   : > { %v4261_v13 = vpop.f32.mrb[3].mxu1 }
 0x27f   : > { %v4262_v16 = vadd.f32 %v4261_v13, %v4260_v30  ;;  %v2054_v0 = vadd.f32 %v4259_v56, %v5440_v5 }
 0x281   : > { %v2057_v35 = vadd.f32 %v4262_v16, %v5440_v5 }
 0x285   : > { %v4263_v24 = vpop.f32.mrb[4].mxu1 }
 0x286   : > { %v4264_v2 = vpop.f32.mrb[5].mxu1 }
 0x287   : > { %v4265_v18 = vadd.f32 %v4264_v2, %v4263_v24  ;;  %v4266_v39 = vpop.f32.mrb[6].mxu1 }
 0x288   : > { %v4267_v46 = vpop.f32.mrb[7].mxu1 }
 0x289   : > { %v4268_v31 = vadd.f32 %v4267_v46, %v4266_v39  ;;  %v4297_v52 = vpop.f32.mrb[16].mxu0  ;;  %v2062_v63 = vadd.f32 %v4265_v18, %v5440_v5 }
 0x28a   : > { %v4298_v58 = vpop.f32.mrb[17].mxu0 }
 0x28b   : > { %v4299_v21 = vadd.f32 %v4298_v58, %v4297_v52  ;;  %v4300_v7 = vpop.f32.mrb[18].mxu0  ;;  %v2065_v19 = vadd.f32 %v4268_v31, %v5440_v5 }
 0x28c   : > { %v4301_v49 = vpop.f32.mrb[19].mxu0 }
 0x28d   : > { %v4302_v34 = vadd.f32 %v4301_v49, %v4300_v7  ;;  %v2119_v42 = vadd.f32 %v4299_v21, %v2054_v0 }
 0x28f   : > { %v2122_v36 = vadd.f32 %v4302_v34, %v2057_v35 }
 0x292   : > { %v4269_v59 = vpop.f32.mrb[8].mxu1 }
 0x293   : > { %v4270_v3 = vpop.f32.mrb[9].mxu1 }
 0x294   : > { %v4271_v57 = vadd.f32 %v4270_v3, %v4269_v59  ;;  %v4272_v37 = vpop.f32.mrb[10].mxu1 }
 0x295   : > { %v4273_v54 = vpop.f32.mrb[11].mxu1 }
 0x296   : > { %v4274_v41 = vadd.f32 %v4273_v54, %v4272_v37  ;;  %v2070_v3 = vadd.f32 %v4271_v57, %v5440_v5  ;;  %v2333_v57 = vld [vmem:[#allocation2 + $0xc] sm:$0x1] }
 0x298   : > { %v2073_v37 = vadd.f32 %v4274_v41, %v5440_v5 }
 0x29a   : > { %v4275_v47 = vpop.f32.mrb[12].mxu1 }
 0x29b   : > { %v4276_v12 = vpop.f32.mrb[13].mxu1 }
 0x29c   : > { %v5444_v1 = vadd.f32 %v4276_v12, %v4275_v47  ;;  %v4278_v20 = vpop.f32.mrb[14].mxu1 }
 0x29d   : > { %v4279_v23 = vpop.f32.mrb[15].mxu1 }
 0x29e   : > { %v5446_v40 = vadd.f32 %v4279_v23, %v4278_v20 }
 0x2a2   : > { %v4303_v44 = vpop.f32.mrb[20].mxu0  ;;  %v4385_v51 = vpop.f32.mrb[16].mxu1 }
 0x2a3   : > { %v4304_v43 = vpop.f32.mrb[21].mxu0  ;;  %v2183_v60 = vpop.f32.mrb[17].mxu1 }
 0x2a4   : > { %v4305_v27 = vadd.f32 %v4304_v43, %v4303_v44  ;;  %v2184_v29 = vadd.f32 %v2183_v60, %v2119_v42  ;;  %v4306_v17 = vpop.f32.mrb[22].mxu0  ;;  %v4386_v8 = vpop.f32.mrb[18].mxu1  ;;  %v5485_v60 = vld [vmem:[#allocation2 + $0x48] sm:$0xf] }
 0x2a5   : > { %v4307_v6 = vpop.f32.mrb[23].mxu0  ;;  %v2186_v61 = vpop.f32.mrb[19].mxu1 }
 0x2a6   : > { %v2127_v55 = vadd.f32 %v4305_v27, %v2062_v63  ;;  %v5451_v38 = vmax.f32 %v2184_v29, 0.0  ;;  %v4308_v10 = vadd.f32 %v4307_v6, %v4306_v17  ;;  %v2187_v33 = vadd.f32 %v2186_v61, %v2122_v36  ;;  %v2328_v63 = vld [vmem:[#allocation2 + $0x8] sm:$0xf] }
 0x2a8   : > { %v2192_v56 = vadd.f32 %v4385_v51, %v2127_v55  ;;  %v4192_v30 = vpack.c.bf16 %v5451_v38, %v5451_v38  ;;  %v2130_v13 = vadd.f32 %v4308_v10, %v2065_v19  ;;  %v5455_v16 = vmax.f32 %v2187_v33, 0.0  ;;  %v2342_v55 = vld [vmem:[#allocation2 + $0x18] sm:$0xf] }
 0x2aa   : > { %v5457_v24 = vmax.f32 %v2192_v56, 0.0  ;;  %v2247_v2 = vshrl.u32 %v4192_v30, 16  ;;  %v2195_v18 = vadd.f32 %v4386_v8, %v2130_v13  ;;  %v4309_v39 = vpop.f32.mrb[24].mxu0  ;;  %v5459_v46 = vpop.f32.mrb[20].mxu1  ;;  %v2250_v31 = vshll.u32 %v4192_v30, 16 }
 0x2ab   : > { %v4193_v58 = vpack.c.bf16 %v5455_v16, %v5455_v16  ;;  %v4310_v0 = vpop.f32.mrb[25].mxu0  ;;  %v2199_v21 = vpop.f32.mrb[21].mxu1  ;;  %v3105_v30 = vshrl.u32 %v5485_v60, 16 }
 0x2ac   : > { %v4194_v7 = vpack.c.bf16 %v5457_v24, %v5457_v24  ;;  %v2249_v35 = vrot.slane %v2247_v2, 7  ;;  %v5473_v34 = vmax.f32 %v2195_v18, 0.0  ;;  %v4311_v42 = vadd.f32 %v4310_v0, %v4309_v39  ;;  %v4312_v36 = vpop.f32.mrb[26].mxu0  ;;  %v5475_v59 = vpop.f32.mrb[22].mxu1  ;;  %v2336_v18 = vld [vmem:[#allocation2 + $0x10] sm:$0xf] }
 0x2ad   : > { %v2255_v47 = vshrl.u32 %v4193_v58, 16  ;;  %v2258_v12 = vshll.u32 %v4193_v58, 16  ;;  %v4313_v20 = vpop.f32.mrb[27].mxu0  ;;  %v2202_v23 = vpop.f32.mrb[23].mxu1  ;;  %v2339_v39 = vld [vmem:[#allocation2 + $0x14] sm:$0x1] }
 0x2ae   : > { %v2263_v28 = vshrl.u32 %v4194_v7, 16  ;;  %v2266_v44 = vshll.u32 %v4194_v7, 16  ;;  %v2252_v51 = vor.u32 %v2250_v31, %v2249_v35  ;;  %v2253_v43 = vrot.slane %v2249_v35, 4  ;;  %v2345_v7 = vld [vmem:[#allocation2 + $0x1c] sm:$0x1] }
 0x2af   : > { %v4195_v41 = vpack.c.bf16 %v5473_v34, %v5473_v34  ;;  %v2257_v27 = vrot.slane %v2255_v47, 7  ;;  %v2135_v29 = vadd.f32 %v4311_v42, %v2070_v3  ;;  %v4314_v17 = vadd.f32 %v4313_v20, %v4312_v36 }
 0x2b0   : > { %v2265_v8 = vrot.slane %v2263_v28, 7  ;;  %v2329_v19 = vsel %vm5469_vm3, %v2252_v51, %v2328_v63  ;;  %v2334_v6 = vsel %vm5481_vm4, %v2253_v43, %v2333_v57 }
 0x2b1   : > { %2335 = vst [vmem:[#allocation2 + $0xc] sm:$0x1] %v2334_v6  ;;  %2330 = vst [vmem:[#allocation2 + $0x8] sm:$0xf] %v2329_v19  ;;  %v2271_v10 = vshrl.u32 %v4195_v41, 16  ;;  %v2260_v33 = vor.u32 %v2258_v12, %v2257_v27  ;;  %v2261_v56 = vrot.slane %v2257_v27, 4  ;;  %v2200_v31 = vadd.f32 %v2199_v21, %v2135_v29 }
 0x2b2   : > { %v2268_v13 = vor.u32 %v2266_v44, %v2265_v8  ;;  %v2269_v2 = vrot.slane %v2265_v8, 4  ;;  %v2138_v58 = vadd.f32 %v4314_v17, %v2073_v37  ;;  %v2274_v42 = vshll.u32 %v4195_v41, 16  ;;  %v2348_v41 = vld [vmem:[#allocation2 + $0x20] sm:$0xf]  ;;  %v2351_v27 = vld [vmem:[#allocation2 + $0x24] sm:$0x1] }
 0x2b3   : > { %v4315_v0 = vpop.f32.mrb[28].mxu0  ;;  %v2273_v35 = vrot.slane %v2271_v10, 7  ;;  %v2337_v36 = vsel %vm5469_vm3, %v2260_v33, %v2336_v18  ;;  %v2340_v3 = vsel %vm5481_vm4, %v2261_v56, %v2339_v39  ;;  %v5504_v21 = vmax.f32 %v2200_v31, 0.0 }
 0x2b4   : > { %v4316_v47 = vpop.f32.mrb[29].mxu0  ;;  %v2343_v12 = vsel %vm5469_vm3, %v2268_v13, %v2342_v55  ;;  %v2346_v20 = vsel %vm5481_vm4, %v2269_v2, %v2345_v7  ;;  %2341 = vst [vmem:[#allocation2 + $0x14] sm:$0x1] %v2340_v3  ;;  %2338 = vst [vmem:[#allocation2 + $0x10] sm:$0xf] %v2337_v36  ;;  %v2203_v37 = vadd.f32 %v2202_v23, %v2138_v58  ;;  %v3108_v56 = vshll.u32 %v5485_v60, 16 }
 0x2b5   : > { %v4318_v28 = vpop.f32.mrb[30].mxu0  ;;  %v2078_v44 = vadd.f32 %v5444_v1, %v5440_v5  ;;  %2344 = vst [vmem:[#allocation2 + $0x18] sm:$0xf] %v2343_v12  ;;  %2347 = vst [vmem:[#allocation2 + $0x1c] sm:$0x1] %v2346_v20  ;;  %v2276_v51 = vor.u32 %v2274_v42, %v2273_v35  ;;  %v2277_v43 = vrot.slane %v2273_v35, 4  ;;  %v4317_v63 = vadd.f32 %v4316_v47, %v4315_v0 }
 0x2b6   : > { %v4319_v57 = vpop.f32.mrb[31].mxu0  ;;  %v4196_v29 = vpack.c.bf16 %v5504_v21, %v5504_v21  ;;  %v5510_v17 = vmax.f32 %v2203_v37, 0.0  ;;  %v2081_v23 = vadd.f32 %v5446_v40, %v5440_v5  ;;  %v5524_v2 = vrot.slane %v3105_v30, 4  ;;  %v2354_v0 = vld [vmem:[#allocation2 + $0x28] sm:$0xf] }
 0x2b7   : > { %v4320_v8 = vadd.f32 %v4319_v57, %v4318_v28  ;;  %v2349_v1 = vsel %vm5469_vm3, %v2276_v51, %v2348_v41  ;;  %v2352_v19 = vsel %vm5481_vm4, %v2277_v43, %v2351_v27  ;;  %v2143_v6 = vadd.f32 %v4317_v63, %v2078_v44  ;;  %v2357_v7 = vld [vmem:[#allocation2 + $0x2c] sm:$0x1]  ;;  %v2360_v37 = vld [vmem:[#allocation2 + $0x30] sm:$0xf]  ;;  %v2363_v28 = vld [vmem:[#allocation2 + $0x34] sm:$0x1] }
 0x2b8   : > { %2350 = vst [vmem:[#allocation2 + $0x20] sm:$0xf] %v2349_v1  ;;  %2353 = vst [vmem:[#allocation2 + $0x24] sm:$0x1] %v2352_v19  ;;  %v2279_v55 = vshrl.u32 %v4196_v29, 16  ;;  %v4197_v33 = vpack.c.bf16 %v5510_v17, %v5510_v17  ;;  %v2282_v13 = vshll.u32 %v4196_v29, 16 }
 0x2b9   : > { %v2208_v5 = vadd.f32 %v5459_v46, %v2143_v6  ;;  %v2146_v40 = vadd.f32 %v4320_v8, %v2081_v23  ;;  %v5526_v31 = vld [vmem:[#allocation2 + $0x8] sm:$0xe]  ;;  %v5528_v58 = vld [vmem:[#allocation2 + $0xc] sm:$0x1] }
 0x2ba   : > { %v2281_v18 = vrot.slane %v2279_v55, 7  ;;  %v2287_v39 = vshrl.u32 %v4197_v33, 16  ;;  %v2290_v35 = vshll.u32 %v4197_v33, 16  ;;  %v5533_v3 = vld [vmem:[#allocation2 + $0x8] sm:$0xe]  ;;  %v4104_v43 = vrot.slane %v5526_v31, 9 }
 0x2bb   : > { %v5530_v42 = vmax.f32 %v2208_v5, 0.0  ;;  %v2211_v36 = vadd.f32 %v5475_v59, %v2146_v40  ;;  %v2594_v63 = vrot.slane %v5528_v58, 5  ;;  %v2653_v8 = vld [vmem:[#allocation2 + $0x8] sm:$0xf]  ;;  %v3150_v1 = vld [vmem:[#allocation2 + $0x10] sm:$0xe] }
 0x2bc   : > { %v2284_v46 = vor.u32 %v2282_v13, %v2281_v18  ;;  %v2285_v47 = vrot.slane %v2281_v18, 4  ;;  %v2289_v30 = vrot.slane %v2287_v39, 7  ;;  %v2943_v12 = vld [vmem:[#allocation2 + $0x18] sm:$0xf]  ;;  %v2563_v23 = vld [vmem:[#allocation2 + $0x1c] sm:$0x1] }
 0x2bd   : > { %v2655_v20 = vld [vmem:[#allocation2 + $0x18] sm:$0xf]  ;;  %v4198_v44 = vpack.c.bf16 %v5530_v42, %v5530_v42  ;;  %v5537_v51 = vmax.f32 %v2211_v36, 0.0  ;;  %2960 = vrot.lane.b32.xlu1 %v2943_v12, %s4660_s23  ;;  %v3151_v33 = vld [vmem:[#allocation2 + $0x14] sm:$0x1]  ;;  %v4111_v13 = vrot.slane %v5533_v3, 9 }
 0x2be   : > { %2673 = vrot.lane.b32.xlu0 %v2655_v20, %s4662_s25  ;;  %v5541_v59 = vld [vmem:[#allocation2 + $0x18] sm:$0xe]  ;;  %v2355_v57 = vsel %vm5469_vm3, %v2284_v46, %v2354_v0  ;;  %v2358_v41 = vsel %vm5481_vm4, %v2285_v47, %v2357_v7  ;;  %v2292_v27 = vor.u32 %v2290_v35, %v2289_v30  ;;  %v2293_v29 = vrot.slane %v2289_v30, 4  ;;  %v3153_v7 = vld [vmem:[#allocation2 + $0x1c] sm:$0x1]  ;;  %v4544_v3 = vld [vmem:[%s6242_s5 + $0x40] sm:$0xff]  }
 0x2bf   : > { %2356 = vst [vmem:[#allocation2 + $0x28] sm:$0xf] %v2355_v57  ;;  %2359 = vst [vmem:[#allocation2 + $0x2c] sm:$0x1] %v2358_v41  ;;  %v2295_v19 = vshrl.u32 %v4198_v44, 16  ;;  %v4199_v6 = vpack.c.bf16 %v5537_v51, %v5537_v51  ;;  %v2298_v18 = vshll.u32 %v4198_v44, 16  ;;  %4329 = vmatprep.subr.bf16.mxu0 %v4544_v3 }
 0x2c0   : > { %v2656_v55 = vld [vmem:[#allocation2 + $0x20] sm:$0xf]  ;;  %v2361_v5 = vsel %vm5469_vm3, %v2292_v27, %v2360_v37  ;;  %v2364_v40 = vsel %vm5481_vm4, %v2293_v29, %v2363_v28  ;;  %v4106_v39 = vrot.slane %v5541_v59, 9  ;;  %v3152_v0 = vld [vmem:[#allocation2 + $0x18] sm:$0xe]  ;;  %v2602_v46 = vrot.slane %v2563_v23, 5  ;;  %v2524_v27 = vpop.permute.xlu0 %2523 }
 0x2c1   : > { %2362 = vst [vmem:[#allocation2 + $0x30] sm:$0xf] %v2361_v5  ;;  %2365 = vst [vmem:[#allocation2 + $0x34] sm:$0x1] %v2364_v40  ;;  %v2297_v35 = vrot.slane %v2295_v19, 7  ;;  %v2303_v36 = vshrl.u32 %v4199_v6, 16  ;;  %2675 = vrot.lane.b32.xlu1 %v2656_v55, %s4662_s25 }
 0x2c2   : > { %2669 = vrot.lane.b32.xlu0 %v2653_v8, %s4662_s25  ;;  %v4119_v47 = vrot.slane %v3150_v1, 9  ;;  %v5559_v30 = vld [vmem:[#allocation2 + $0xc] sm:$0x1]  ;;  %v2366_v12 = vld [vmem:[#allocation2 + $0x38] sm:$0xf]  ;;  %v2306_v37 = vshll.u32 %v4199_v6, 16 }
 0x2c3   : > { %v2369_v20 = vld [vmem:[#allocation2 + $0x3c] sm:$0x1]  ;;  %v2654_v28 = vld [vmem:[#allocation2 + $0x10] sm:$0xf]  ;;  %v2944_v44 = vld [vmem:[#allocation2 + $0x20] sm:$0xf]  ;;  %v2300_v29 = vor.u32 %v2298_v18, %v2297_v35 }
 0x2c4   : > { %v3184_v59 = vrot.slane %v3151_v33, 5  ;;  %v4120_v57 = vrot.slane %v3152_v0, 9  ;;  %v3188_v41 = vrot.slane %v3153_v7, 5  ;;  %v2301_v19 = vrot.slane %v2297_v35, 4  ;;  %v2850_v55 = vld [vmem:[#allocation2 + $0x18] sm:$0xe] }
 0x2c5   : > { %v2305_v5 = vrot.slane %v2303_v36, 7  ;;  %v2851_v40 = vld [vmem:[#allocation2 + $0x1c] sm:$0x1]  ;;  %2548 = vst.msk [vmem:[#allocation3] sm:$0xf] %vm2547_vm1, %v2524_v27  ;;  %v2367_v7 = vsel %vm5469_vm3, %v2300_v29, %v2366_v12  ;;  %2671 = vrot.lane.b32.xlu1 %v2654_v28, %s4662_s25  ;;  %v2603_v12 = vsel %vm4907_vm11, %v4106_v39, %v2602_v46  ;;  %v2621_v28 = vpop.permute.xlu0 %2620  ;;  %v4113_v46 = vrot.slane %v2850_v55, 9 }
 0x2c6   : > { %v2372_v8 = vld [vmem:[#allocation2 + $0x40] sm:$0xf]  ;;  %v2375_v23 = vld [vmem:[#allocation2 + $0x44] sm:$0x1]  ;;  %v3185_v1 = vsel %vm4907_vm11, %v4119_v47, %v3184_v59  ;;  %v3189_v6 = vsel %vm4907_vm11, %v4120_v57, %v3188_v41  ;;  %v2370_v35 = vsel %vm5481_vm4, %v2301_v19, %v2369_v20  ;;  %2962 = vrot.lane.b32.xlu0 %v2944_v44, %s4660_s23  ;;  %2368 = vst [vmem:[#allocation2 + $0x38] sm:$0xf] %v2367_v7 }
 0x2c7   : > { %v5566_v33 = vld [vmem:[#allocation2 + $0x20] sm:$0xe]  ;;  %v5568_v0 = vld [vmem:[#allocation2 + $0x24] sm:$0x1]  ;;  %v2308_v36 = vor.u32 %v2306_v37, %v2305_v5  ;;  %v2309_v27 = vrot.slane %v2305_v5, 4  ;;  %v2880_v20 = vrot.slane %v5559_v30, 5 }
 0x2c8   : > { %v3154_v18 = vld [vmem:[#allocation2 + $0x20] sm:$0xe]  ;;  %3222 = vst.msk [vmem:[#allocation3 + $0x8] sm:$0xf] %vm2326_vm15, %v3185_v1  ;;  %3223 = vst.msk [vmem:[#allocation3 + $0x1c] sm:$0xf] %vm2326_vm15, %v3189_v6 }
 0x2c9   : > { %v3155_v47 = vld [vmem:[#allocation2 + $0x24] sm:$0x1]  ;;  %v5578_v59 = vld [vmem:[#allocation2 + $0x20] sm:$0xe]  ;;  %2371 = vst [vmem:[#allocation2 + $0x3c] sm:$0x1] %v2370_v35  ;;  %v2373_v29 = vsel %vm5469_vm3, %v2308_v36, %v2372_v8  ;;  %v2376_v19 = vsel %vm5481_vm4, %v2309_v27, %v2375_v23  ;;  %2626 = vrot.lane.b32.xlu1 %v2603_v12, %s4660_s23 }
 0x2ca   : > { %v3156_v37 = vld [vmem:[#allocation2 + $0x28] sm:$0xe]  ;;  %v3157_v57 = vld [vmem:[#allocation2 + $0x2c] sm:$0x1]  ;;  %v4121_v41 = vrot.slane %v3154_v18, 9  ;;  %v3192_v5 = vrot.slane %v3155_v47, 5 }
 0x2cb   : > { %v4122_v1 = vrot.slane %v3156_v37, 9  ;;  %2645 = vst.msk [vmem:[#allocation3] sm:$0xf] %vm2644_vm2, %v2621_v28  ;;  %2374 = vst [vmem:[#allocation2 + $0x40] sm:$0xf] %v2373_v29  ;;  %v2888_v30 = vrot.slane %v2851_v40, 5  ;;  %v2595_v37 = vsel %vm4907_vm11, %v4104_v43, %v2594_v63  ;;  %v2881_v63 = vsel %vm4907_vm11, %v4111_v13, %v2880_v20 }
 0x2cc   : > { %2377 = vst [vmem:[#allocation2 + $0x44] sm:$0x1] %v2376_v19  ;;  %v2942_v39 = vld [vmem:[#allocation2 + $0x10] sm:$0xf]  ;;  %v4114_v6 = vrot.slane %v5566_v33, 9  ;;  %v3196_v18 = vrot.slane %v3157_v57, 5  ;;  %v3193_v54 = vsel %vm4907_vm11, %v4121_v41, %v3192_v5 }
 0x2cd   : > { %2958 = vrot.lane.b32.xlu0 %v2942_v39, %s4660_s23  ;;  %v2892_v49 = vrot.slane %v5568_v0, 5  ;;  %v2565_v8 = vld [vmem:[#allocation2 + $0x24] sm:$0x1]  ;;  %v4107_v23 = vrot.slane %v5578_v59, 9  ;;  %v2848_v7 = vld [vmem:[#allocation2 + $0x10] sm:$0xe]  ;;  %v2889_v59 = vsel %vm4907_vm11, %v4113_v46, %v2888_v30  ;;  %2622 = vrot.lane.b32.xlu1 %v2595_v37, %s4660_s23 }
 0x2ce   : > { %v3197_v55 = vsel %vm4907_vm11, %v4122_v1, %v3196_v18  ;;  %3224 = vst.msk [vmem:[#allocation3 + $0x30] sm:$0xf] %vm2326_vm15, %v3193_v54  ;;  %v2849_v40 = vld [vmem:[#allocation2 + $0x14] sm:$0x1]  ;;  %v3158_v33 = vld [vmem:[#allocation2 + $0x30] sm:$0xe] }
 0x2cf   : > { %v3159_v35 = vld [vmem:[#allocation2 + $0x34] sm:$0x1]  ;;  %3225 = vst.msk [vmem:[#allocation3 + $0x44] sm:$0xf] %vm2326_vm15, %v3197_v55  ;;  %v5601_v36 = vld [vmem:[#allocation2 + $0x10] sm:$0xe]  ;;  %v2893_v39 = vsel %vm4907_vm11, %v4114_v6, %v2892_v49 }
 0x2d0   : > { %v4123_v0 = vrot.slane %v3158_v33, 9  ;;  %v3200_v27 = vrot.slane %v3159_v35, 5  ;;  %v2992_v47 = vld [vmem:[#allocation2 + $0x18] sm:$0xf]  ;;  %v2606_v57 = vrot.slane %v2565_v8, 5  ;;  %v4112_v41 = vrot.slane %v2848_v7, 9 }
 0x2d1   : > { %v4539_v12 = vld [vmem:[#allocation3 + $0x8] ss:$20 sps:$4 sm:$0xff]   ;;  %2914 = vrot.lane.b32.xlu0 %v2889_v59, %s4661_s16  ;;  %v3161_v29 = vld [vmem:[#allocation2 + $0x3c] sm:$0x1]  ;;  %v3021_v1 = vshrl.u32 %v2992_v47, 16  ;;  %v3024_v43 = vshll.u32 %v2992_v47, 16  ;;  %2916 = vrot.lane.b32.xlu1 %v2893_v39, %s4661_s16 }
 0x2d2   : > { %v3160_v28 = vld [vmem:[#allocation2 + $0x38] sm:$0xe]  ;;  %v3201_v19 = vsel %vm4907_vm11, %v4123_v0, %v3200_v27  ;;  %4395 = vmatprep.mubr.msk.bf16.mxu1 %vm3457_vm5, %v4539_v12  ;;  %v3204_v58 = vrot.slane %v3161_v29, 5  ;;  %v2993_v31 = vld [vmem:[#allocation2 + $0x1c] sm:$0x1]  ;;  %v2884_v46 = vrot.slane %v2849_v40, 5  ;;  %v2607_v40 = vsel %vm4907_vm11, %v4107_v23, %v2606_v57 }
 0x2d3   : > { %v4124_v5 = vrot.slane %v3160_v28, 9  ;;  %3226 = vst.msk [vmem:[#allocation3 + $0x58] sm:$0xf] %vm2326_vm15, %v3201_v19  ;;  %v4105_v30 = vrot.slane %v5601_v36, 9  ;;  %v3162_v18 = vld [vmem:[#allocation2 + $0x40] sm:$0xe] }
 0x2d4   : > { %v3163_v54 = vld [vmem:[#allocation2 + $0x44] sm:$0x1]  ;;  %v2561_v8 = vld [vmem:[#allocation2 + $0x14] sm:$0x1]  ;;  %v4125_v55 = vrot.slane %v3162_v18, 9  ;;  %v3023_v35 = vrot.slane %v3021_v1, 4  ;;  %v2885_v27 = vsel %vm4907_vm11, %v4112_v41, %v2884_v46 }
 0x2d5   : > { %v3205_v7 = vsel %vm4907_vm11, %v4124_v5, %v3204_v58  ;;  %v3208_v33 = vrot.slane %v3163_v54, 5  ;;  %2910 = vrot.lane.b32.xlu0 %v2881_v63, %s4661_s16  ;;  %v3026_v13 = vrot.slane %v3024_v43, 5  ;;  %v3030_v20 = vshll.u32 %v2993_v31, 16  ;;  %v2401_v6 = vld [vmem:[#allocation2 + $0x18] sm:$0xf]  ;;  %2912 = vrot.lane.b32.xlu1 %v2885_v27, %s4661_s16  ;;  %v4545_v18 = vld [vmem:[%s6242_s5] sm:$0xff]  }
 0x2d6   : > { %3227 = vst.msk [vmem:[#allocation3 + $0x6c] sm:$0xf] %vm2326_vm15, %v3205_v7  ;;  %v4541_v49 = vld [vmem:[#allocation3 + $0x30] ss:$20 sps:$4 sm:$0xff]   ;;  %v2402_v0 = vld [vmem:[#allocation2 + $0x1c] sm:$0x1]  ;;  %4330 = vmatpush3.bf16.msra.mxu0 %v4545_v18 }
 0x2d7   : > { %v3209_v36 = vsel %vm4907_vm11, %v4125_v55, %v3208_v33  ;;  %v2598_v47 = vrot.slane %v2561_v8, 5  ;;  %v2454_v12 = vshrl.u32 %v2401_v6, 16  ;;  %v2457_v59 = vshll.u32 %v2401_v6, 16  ;;  %v2994_v37 = vld [vmem:[#allocation2 + $0x20] sm:$0xf]  ;;  %4396 = vmatmul.mubr.msk.bf16.vlgmr.msra.gmra.mrb[24].mxu1 %vm3457_vm5, %v4541_v49 }
 0x2d8   : > { %3228 = vst.msk [vmem:[#allocation3 + $0x80] sm:$0xf] %vm2326_vm15, %v3209_v36  ;;  %v3027_v28 = vor.u32 %v3026_v13, %v3023_v35  ;;  %v2463_v29 = vshll.u32 %v2402_v0, 16  ;;  %v2995_v19 = vld [vmem:[#allocation2 + $0x24] sm:$0x1]  ;;  %v3035_v23 = vshrl.u32 %v2994_v37, 16 }
 0x2d9   : > { %v3038_v57 = vshll.u32 %v2994_v37, 16  ;;  %2628 = vrot.lane.b32.xlu0 %v2607_v40, %s4660_s23  ;;  %v3032_v5 = vrot.slane %v3030_v20, 5  ;;  %v2456_v58 = vrot.slane %v2454_v12, 4  ;;  %v2459_v41 = vrot.slane %v2457_v59, 5  ;;  %v2947_v1 = vld [vmem:[#allocation2 + $0x38] sm:$0xf] }
 0x2da   : > { %v5644_v31 = vrot.slane %v3108_v56, 5  ;;  %v3037_v43 = vrot.slane %v3035_v23, 4  ;;  %v3044_v39 = vshll.u32 %v2995_v19, 16  ;;  %v2403_v46 = vld [vmem:[#allocation2 + $0x20] sm:$0xf]  ;;  %v2599_v35 = vsel %vm4907_vm11, %v4105_v30, %v2598_v47  ;;  %2968 = vrot.lane.b32.xlu1 %v2947_v1, %s4660_s23 }
 0x2db   : > { %v3040_v63 = vrot.slane %v3038_v57, 5  ;;  %v2460_v54 = vor.u32 %v2459_v41, %v2456_v58  ;;  %v2404_v8 = vld [vmem:[#allocation2 + $0x24] sm:$0x1]  ;;  %v2468_v7 = vshrl.u32 %v2403_v46, 16  ;;  %v2471_v55 = vshll.u32 %v2403_v46, 16  ;;  %v4546_v58 = vld [vmem:[%s6242_s5 + $0x48] sm:$0xff]  }
 0x2dc   : > { %v2397_v33 = vld [vmem:[#allocation2 + $0x8] sm:$0xf]  ;;  %v3028_v56 = vrot.slane %v3027_v28, 4  ;;  %v2465_v3 = vrot.slane %v2463_v29, 5  ;;  %v2477_v49 = vshll.u32 %v2404_v8, 16  ;;  %v3046_v12 = vrot.slane %v3044_v39, 5  ;;  %4331 = vmatprep.subr.bf16.mxu0 %v4546_v58 }
 0x2dd   : > { %v4542_v60 = vld [vmem:[#allocation3 + $0x58] ss:$20 sps:$4 sm:$0xff]   ;;  %v3041_v13 = vor.u32 %v3040_v63, %v3037_v43  ;;  %2624 = vrot.lane.b32.xlu0 %v2599_v35, %s4660_s23  ;;  %v2470_v20 = vrot.slane %v2468_v7, 4  ;;  %v2473_v6 = vrot.slane %v2471_v55, 5  ;;  %v2398_v40 = vld [vmem:[#allocation2 + $0xc] sm:$0x1] }
 0x2de   : > { %v2426_v36 = vshrl.u32 %v2397_v33, 16  ;;  %4399 = vmatprep.mubr.msk.bf16.mxu1 %vm3457_vm5, %v4542_v60  ;;  %v2461_v27 = vrot.slane %v2460_v54, 4  ;;  %v2657_v30 = vld [vmem:[#allocation2 + $0x28] sm:$0xf]  ;;  %v2429_v28 = vshll.u32 %v2397_v33, 16  ;;  %v3033_v29 = vsel %vm4875_vm8, %v3028_v56, %v3032_v5 }
 0x2df   : > { %v4543_v0 = vld [vmem:[#allocation3 + $0x80] ss:$20 sps:$4 sm:$0xff]   ;;  %v3042_v47 = vrot.slane %v3041_v13, 4  ;;  %v2474_v59 = vor.u32 %v2473_v6, %v2470_v20  ;;  %v2435_v19 = vshll.u32 %v2398_v40, 16  ;;  %v5657_v23 = vld [vmem:[#allocation2 + $0x38] sm:$0xe]  ;;  %3120 = vrot.lane.b32.xlu1 %v3033_v29, %s4662_s25 }
 0x2e0   : > { %v2428_v37 = vrot.slane %v2426_v36, 4  ;;  %4400 = vmatmul.mubr.msk.bf16.gmra.mrb[28].mxu1 %vm3457_vm5, %v4543_v0  ;;  %v5659_v57 = vld [vmem:[#allocation2 + $0x3c] sm:$0x1]  ;;  %v5668_v1 = vrot.slane %v2477_v49, 5  ;;  %v2431_v43 = vrot.slane %v2429_v28, 5  ;;  %v4117_v5 = vrot.slane %v5657_v23, 9 }
 0x2e1   : > { %2677 = vrot.lane.b32.xlu0 %v2657_v30, %s4662_s25  ;;  %v5666_v41 = vrot.slane %v2474_v59, 4  ;;  %v5671_v63 = vld [vmem:[#allocation2 + $0x38] sm:$0xe]  ;;  %v5673_v39 = vrot.slane %v2435_v19, 5  ;;  %v2904_v46 = vrot.slane %v5659_v57, 5  ;;  %3807 = vmatprep.mubr.bf16.mxu1 %v6247_v48  ;;  %v2466_v8 = vsel %vm4875_vm8, %v2461_v27, %v2465_v3  ;;  %v4547_v60 = vld [vmem:[%s6242_s5 + $0x8] sm:$0xff]  }
 0x2e2   : > { %v5676_v18 = vld [vmem:[#allocation2 + $0x3c] sm:$0x1]  ;;  %v2990_v54 = vld [vmem:[#allocation2 + $0x10] sm:$0xf]  ;;  %v2432_v7 = vor.u32 %v2431_v43, %v2428_v37  ;;  %v2991_v33 = vld [vmem:[#allocation2 + $0x14] sm:$0x1]  ;;  %4332 = vmatpush3.bf16.msra.mxu0 %v4547_v60  ;;  %v3047_v29 = vsel %vm4875_vm8, %v3042_v47, %v3046_v12 }
 0x2e3   : > { %v5682_v35 = vld [vmem:[#allocation2 + $0x28] sm:$0xe]  ;;  %v2948_v56 = vld [vmem:[#allocation2 + $0x40] sm:$0xf]  ;;  %v2618_v13 = vrot.slane %v5676_v18, 5  ;;  %v3007_v20 = vshrl.u32 %v2990_v54, 16  ;;  %2529 = vrot.lane.b32.xlu1 %v2466_v8, %s4661_s16 }
 0x2e4   : > { %v3010_v6 = vshll.u32 %v2990_v54, 16  ;;  %v3016_v49 = vshll.u32 %v2991_v33, 16  ;;  %v5690_v3 = vld [vmem:[#allocation2 + $0x2c] sm:$0x1]  ;;  %v2399_v40 = vld [vmem:[#allocation2 + $0x10] sm:$0xf] }
 0x2e5   : > { %2970 = vrot.lane.b32.xlu0 %v2948_v56, %s4660_s23  ;;  %v2400_v36 = vld [vmem:[#allocation2 + $0x14] sm:$0x1]  ;;  %v2945_v0 = vld [vmem:[#allocation2 + $0x28] sm:$0xf]  ;;  %v3009_v27 = vrot.slane %v3007_v20, 4  ;;  %v2440_v37 = vshrl.u32 %v2399_v40, 16 }
 0x2e6   : > { %v3012_v30 = vrot.slane %v3010_v6, 5  ;;  %v5693_v28 = vld [vmem:[#allocation2 + $0x40] sm:$0xe]  ;;  %v2443_v19 = vshll.u32 %v2399_v40, 16  ;;  %v2449_v58 = vshll.u32 %v2400_v36, 16  ;;  %v2433_v8 = vrot.slane %v2432_v7, 4 }
 0x2e7   : > { %v5697_v43 = vld [vmem:[#allocation2 + $0x44] sm:$0x1]  ;;  %v5699_v54 = vld [vmem:[#allocation2 + $0x28] sm:$0xe]  ;;  %v2442_v20 = vrot.slane %v2440_v37, 4  ;;  %v4548_v60 = vld [vmem:[%s6242_s5 + $0x50] sm:$0xff]   ;;  %2964 = vrot.lane.b32.xlu1 %v2945_v0, %s4660_s23 }
 0x2e8   : > { %v3013_v33 = vor.u32 %v3012_v30, %v3009_v27  ;;  %v5702_v6 = vld [vmem:[#allocation2 + $0x2c] sm:$0x1]  ;;  %v5709_v12 = vrot.slane %v3016_v49, 5  ;;  %v2445_v47 = vrot.slane %v2443_v19, 5  ;;  %v5713_v36 = vld [vmem:[#allocation2 + $0x30] sm:$0xe]  ;;  %4333 = vmatprep.subr.bf16.mxu0 %v4548_v60  ;;  %v2480_v49 = vsel %vm4875_vm8, %v5666_v41, %v5668_v1 }
 0x2e9   : > { %3122 = vrot.lane.b32.xlu0 %v3047_v29, %s4662_s25  ;;  %v5715_v27 = vrot.slane %v2449_v58, 5  ;;  %v5718_v37 = vld [vmem:[#allocation2 + $0x34] sm:$0x1]  ;;  %v5720_v44 = vld [vmem:[#allocation2 + $0x30] sm:$0xe]  ;;  %v2438_v10 = vsel %vm4875_vm8, %v2433_v8, %v5673_v39  ;;  %v4554_v23 = vld [vmem:[%s6242_s5 + $0x68] sm:$0xff]  }
 0x2ea   : > { %v5726_v0 = vrot.slane %v3013_v33, 4  ;;  %v2446_v29 = vor.u32 %v2445_v47, %v2442_v20  ;;  %v5729_v52 = vld [vmem:[#allocation2 + $0x34] sm:$0x1]  ;;  %v3000_v58 = vld [vmem:[#allocation2 + $0x38] sm:$0xf] }
 0x2eb   : > { %v3001_v60 = vld [vmem:[#allocation2 + $0x3c] sm:$0x1]  ;;  %v3077_v25 = vshrl.u32 %v3000_v58, 16  ;;  %v3080_v48 = vshll.u32 %v3000_v58, 16  ;;  %v4549_v41 = vld [vmem:[%s6242_s5 + $0x10] sm:$0xff]   ;;  %2525 = vrot.lane.b32.xlu1 %v2438_v10, %s4661_s16 }
 0x2ec   : > { %v3086_v39 = vshll.u32 %v3001_v60, 16  ;;  %v2409_v8 = vld [vmem:[#allocation2 + $0x38] sm:$0xf]  ;;  %v2946_v47 = vld [vmem:[#allocation2 + $0x30] sm:$0xf]  ;;  %4334 = vmatpush3.bf16.msra.mxu0 %v4549_v41  ;;  %v5746_v10 = vrot.slane %v2446_v29, 4 }
 0x2ed   : > { %2531 = vrot.lane.b32.xlu0 %v2480_v49, %s4661_s16  ;;  %v2658_v14 = vld [vmem:[#allocation2 + $0x30] sm:$0xf]  ;;  %v3079_v45 = vrot.slane %v3077_v25, 4  ;;  %v3082_v58 = vrot.slane %v3080_v48, 5  ;;  %v2410_v61 = vld [vmem:[#allocation2 + $0x3c] sm:$0x1] }
 0x2ee   : > { %v2510_v30 = vshrl.u32 %v2409_v8, 16  ;;  %v4550_v49 = vld [vmem:[%s6242_s5 + $0x58] sm:$0xff]   ;;  %v2513_v1 = vshll.u32 %v2409_v8, 16  ;;  %v2519_v19 = vshll.u32 %v2410_v61, 16  ;;  %v2998_v33 = vld [vmem:[#allocation2 + $0x30] sm:$0xf] }
 0x2ef   : > { %v4551_v60 = vld [vmem:[%s6242_s5 + $0x18] sm:$0xff]   ;;  %v2999_v40 = vld [vmem:[#allocation2 + $0x34] sm:$0x1]  ;;  %v3063_v25 = vshrl.u32 %v2998_v33, 16  ;;  %v3066_v48 = vshll.u32 %v2998_v33, 16  ;;  %4335 = vmatprep.subr.bf16.mxu0 %v4550_v49  ;;  %v4552_v41 = vld [vmem:[%s6242_s5 + $0x60] sm:$0xff]   ;;  %2679 = vrot.lane.b32.xlu1 %v2658_v14, %s4662_s25  ;;  %v3083_v29 = vor.u32 %v3082_v58, %v3079_v45 }
 0x2f0   : > { %v2512_v20 = vrot.slane %v2510_v30, 4  ;;  %v5756_v61 = vrot.slane %v3086_v39, 5  ;;  %v2515_v8 = vrot.slane %v2513_v1, 5  ;;  %v3072_v7 = vshll.u32 %v2999_v40, 16  ;;  %v2996_v59 = vld [vmem:[#allocation2 + $0x28] sm:$0xf]  ;;  %4336 = vmatpush3.bf16.msra.mxu0 %v4551_v60 }
 0x2f1   : > { %2966 = vrot.lane.b32.xlu0 %v2946_v47, %s4660_s23  ;;  %v2905_v30 = vsel %vm4907_vm11, %v4117_v5, %v2904_v46  ;;  %v3065_v33 = vrot.slane %v3063_v25, 4  ;;  %v3068_v49 = vrot.slane %v3066_v48, 5  ;;  %v2997_v56 = vld [vmem:[#allocation2 + $0x2c] sm:$0x1]  ;;  %v3049_v55 = vshrl.u32 %v2996_v59, 16  ;;  %v4553_v45 = vld [vmem:[%s6242_s5 + $0x20] sm:$0xff]   ;;  %4337 = vmatprep.subr.bf16.mxu0 %v4552_v41 }
 0x2f2   : > { %v2516_v14 = vor.u32 %v2515_v8, %v2512_v20  ;;  %v5767_v1 = vrot.slane %v2519_v19, 5  ;;  %v3052_v40 = vshll.u32 %v2996_v59, 16  ;;  %v3058_v39 = vshll.u32 %v2997_v56, 16  ;;  %v2407_v57 = vld [vmem:[#allocation2 + $0x30] sm:$0xf] }
 0x2f3   : > { %v6265_v5 = vrot.slane %v5671_v63, 9  ;;  %v3069_v47 = vor.u32 %v3068_v49, %v3065_v33  ;;  %v3051_v58 = vrot.slane %v3049_v55, 4  ;;  %v2408_v20 = vld [vmem:[#allocation2 + $0x34] sm:$0x1]  ;;  %v2496_v19 = vshrl.u32 %v2407_v57, 16 }
 0x2f4   : > { %v2405_v60 = vld [vmem:[#allocation2 + $0x28] sm:$0xf]  ;;  %v5780_v59 = vrot.slane %v3083_v29, 4  ;;  %v5782_v56 = vrot.slane %v3072_v7, 5  ;;  %v3054_v25 = vrot.slane %v3052_v40, 5  ;;  %v2499_v18 = vshll.u32 %v2407_v57, 16  ;;  %4338 = vmatpush3.bf16.msra.mxu0 %v4553_v45 }
 0x2f5   : > { %v2619_v46 = vsel %vm4907_vm11, %v6265_v5, %v2618_v13  ;;  %2922 = vrot.lane.b32.xlu0 %v2905_v30, %s4661_s16  ;;  %v5784_v48 = vrot.slane %v2516_v14, 4  ;;  %v2498_v63 = vrot.slane %v2496_v19, 4  ;;  %v2505_v41 = vshll.u32 %v2408_v20, 16  ;;  %v3002_v8 = vld [vmem:[#allocation2 + $0x40] sm:$0xf]  ;;  %4339 = vmatprep.subr.bf16.mxu0 %v4554_v23 }
 0x2f6   : > { %2634 = vrot.lane.b32.xlu1 %v2619_v46, %s4660_s23  ;;  %v2482_v13 = vshrl.u32 %v2405_v60, 16  ;;  %v3055_v55 = vor.u32 %v3054_v25, %v3051_v58  ;;  %v5786_v33 = vrot.slane %v3058_v39, 5  ;;  %v2501_v49 = vrot.slane %v2499_v18, 5  ;;  %v5806_v5 = vld [vmem:[#allocation2 + $0x2c] sm:$0x1] }
 0x2f7   : > { %v2485_v30 = vshll.u32 %v2405_v60, 16  ;;  %v3019_v7 = vsel %vm4875_vm8, %v5726_v0, %v5709_v12  ;;  %v6266_v29 = vrot.slane %v5690_v3, 5  ;;  %v6267_v14 = vrot.slane %v5682_v35, 9  ;;  %v2706_v46 = vld [vmem:[#allocation2 + $0x18] sm:$0xf]  ;;  %v4555_v3 = vld [vmem:[%s6242_s5 + $0x28] sm:$0xff]  }
 0x2f8   : > { %v6268_v45 = vrot.slane %v5697_v43, 5  ;;  %v6269_v39 = vrot.slane %v5693_v28, 9  ;;  %v5804_v23 = vrot.slane %v3069_v47, 4  ;;  %v2502_v35 = vor.u32 %v2501_v49, %v2498_v63  ;;  %v4556_v0 = vld [vmem:[%s6242_s5 + $0x70] sm:$0xff]   ;;  %v2707_v63 = vld [vmem:[#allocation2 + $0x1c] sm:$0x1]  ;;  %4340 = vmatpush3.bf16.msra.mxu0 %v4555_v3 }
 0x2f9   : > { %v2611_v40 = vsel %vm4907_vm11, %v6267_v14, %v6266_v29  ;;  %3118 = vrot.lane.b32.xlu0 %v3019_v7, %s4662_s25  ;;  %v5813_v43 = vrot.slane %v2505_v41, 5  ;;  %v5815_v28 = vrot.slane %v2482_v13, 4  ;;  %v3091_v12 = vshrl.u32 %v3002_v8, 16  ;;  %v2702_v13 = vld [vmem:[#allocation2 + $0x8] sm:$0xf]  ;;  %4341 = vmatprep.subr.bf16.mxu0 %v4556_v0 }
 0x2fa   : > { %v2909_v57 = vsel %vm4907_vm11, %v6269_v39, %v6268_v45  ;;  %2630 = vrot.lane.b32.xlu1 %v2611_v40, %s4660_s23  ;;  %v6270_v47 = vrot.slane %v5702_v6, 5  ;;  %v6271_v58 = vrot.slane %v5699_v54, 9  ;;  %v6272_v19 = vrot.slane %v5718_v37, 5  ;;  %v2703_v40 = vld [vmem:[#allocation2 + $0xc] sm:$0x1] }
 0x2fb   : > { %v6273_v60 = vrot.slane %v5713_v36, 9  ;;  %v3094_v18 = vshll.u32 %v3002_v8, 16  ;;  %v2747_v41 = vshrl.u32 %v2706_v46, 16  ;;  %v5832_v49 = vrot.slane %v3055_v55, 4  ;;  %v2709_v45 = vld [vmem:[#allocation2 + $0x24] sm:$0x1] }
 0x2fc   : > { %v2897_v20 = vsel %vm4907_vm11, %v6271_v58, %v6270_v47  ;;  %v5834_v6 = vrot.slane %v2502_v35, 4  ;;  %v5836_v54 = vrot.slane %v2485_v30, 5  ;;  %v2452_v36 = vsel %vm4875_vm8, %v5746_v10, %v5715_v27  ;;  %v2708_v30 = vld [vmem:[#allocation2 + $0x20] sm:$0xf]  ;;  %v2704_v35 = vld [vmem:[#allocation2 + $0x10] sm:$0xf]  ;;  %4342 = vmatpush3.bf16.msra.mxu0 %v4557_v32 }
 0x2fd   : > { %v2901_v25 = vsel %vm4907_vm11, %v6273_v60, %v6272_v19  ;;  %v6274_v37 = vrot.slane %v5729_v52, 5  ;;  %v6275_v8 = vrot.slane %v5720_v44, 9  ;;  %v2749_v29 = vrot.slane %v2747_v41, 4  ;;  %2527 = vrot.lane.b32.xlu0 %v2452_v36, %s4661_s16  ;;  %v2381_v58 = vld [vmem:[#allocation2 + $0x18] sm:$0xf] }
 0x2fe   : > { %v2750_v14 = vshll.u32 %v2706_v46, 16  ;;  %2924 = vrot.lane.b32.xlu1 %v2909_v57, %s4661_s16  ;;  %v3089_v27 = vsel %vm4875_vm8, %v5780_v59, %v5756_v61  ;;  %v5855_v10 = vrot.slane %v3091_v12, 4  ;;  %v2756_v52 = vshll.u32 %v2707_v63, 16  ;;  %v4558_v61 = vld [vmem:[%s6242_s5 + $0x78] sm:$0xff]   ;;  %2390 = vst.msk [vmem:[#allocation3 + $0x3c] sm:$0xf] %vm2326_vm15, %v2381_v58 }
 0x2ff   : > { %v2615_v55 = vsel %vm4907_vm11, %v6275_v8, %v6274_v37  ;;  %v2719_v44 = vshrl.u32 %v2702_v13, 16  ;;  %v2522_v39 = vsel %vm4875_vm8, %v5784_v48, %v5767_v1  ;;  %v5864_v57 = vrot.slane %v3094_v18, 5  ;;  %v4559_v19 = vld [vmem:[%s6242_s5 + $0x38] sm:$0xff]   ;;  %v2382_v36 = vld [vmem:[#allocation2 + $0x20] sm:$0xf]  ;;  %4343 = vmatprep.subr.bf16.mxu0 %v4558_v61 }
 0x300   : > { %v2752_v46 = vrot.slane %v2750_v14, 5  ;;  %v2722_v3 = vshll.u32 %v2702_v13, 16  ;;  %v3075_v59 = vsel %vm4875_vm8, %v5804_v23, %v5782_v56  ;;  %v2728_v0 = vshll.u32 %v2703_v40, 16  ;;  %v2705_v13 = vld [vmem:[#allocation2 + $0x14] sm:$0x1]  ;;  %4344 = vmatpush3.bf16.msra.mxu0 %v4559_v19 }
 0x301   : > { %v2721_v12 = vrot.slane %v2719_v44, 4  ;;  %v2761_v47 = vshrl.u32 %v2708_v30, 16  ;;  %v2758_v63 = vrot.slane %v2756_v52, 5  ;;  %2918 = vrot.lane.b32.xlu0 %v2897_v20, %s4661_s16  ;;  %v2764_v8 = vshll.u32 %v2708_v30, 16  ;;  %2391 = vst.msk [vmem:[#allocation3 + $0x50] sm:$0xf] %vm2326_vm15, %v2382_v36 }
 0x302   : > { %v2753_v18 = vor.u32 %v2752_v46, %v2749_v29  ;;  %v2724_v41 = vrot.slane %v2722_v3, 5  ;;  %2920 = vrot.lane.b32.xlu1 %v2901_v25, %s4661_s16  ;;  %v2770_v14 = vshll.u32 %v2709_v45, 16  ;;  %v2733_v40 = vshrl.u32 %v2704_v35, 16  ;;  %v2379_v44 = vld [vmem:[#allocation2 + $0x8] sm:$0xf] }
 0x303   : > { %v2763_v37 = vrot.slane %v2761_v47, 4  ;;  %v2488_v29 = vor.u32 %v5836_v54, %v5815_v28  ;;  %v2736_v46 = vshll.u32 %v2704_v35, 16  ;;  %2388 = vst.msk [vmem:[#allocation3 + $0x14] sm:$0xf] %vm2326_vm15, %v2379_v44  ;;  %v2714_v3 = vld [vmem:[#allocation2 + $0x38] sm:$0xf] }
 0x304   : > { %v2754_v52 = vrot.slane %v2753_v18, 4  ;;  %v2725_v32 = vor.u32 %v2724_v41, %v2721_v12  ;;  %v2715_v61 = vld [vmem:[#allocation2 + $0x3c] sm:$0x1]  ;;  %v2730_v20 = vrot.slane %v2728_v0, 5  ;;  %v2766_v58 = vrot.slane %v2764_v8, 5 }
 0x305   : > { %v2735_v25 = vrot.slane %v2733_v40, 4  ;;  %v2742_v47 = vshll.u32 %v2705_v13, 16  ;;  %v2380_v30 = vld [vmem:[#allocation2 + $0x10] sm:$0xf]  ;;  %v2738_v7 = vrot.slane %v2736_v46, 5  ;;  %v2803_v60 = vshrl.u32 %v2714_v3, 16  ;;  %2632 = vrot.lane.b32.xlu0 %v2615_v55, %s4660_s23 }
 0x306   : > { %v2759_v45 = vsel %vm4875_vm8, %v2754_v52, %v2758_v63  ;;  %v2726_v36 = vrot.slane %v2725_v32, 4  ;;  %2389 = vst.msk [vmem:[#allocation3 + $0x28] sm:$0xf] %vm2326_vm15, %v2380_v30  ;;  %v2716_v12 = vld [vmem:[#allocation2 + $0x40] sm:$0xf]  ;;  %3128 = vrot.lane.b32.xlu1 %v3089_v27, %s4662_s25  ;;  %v2767_v35 = vor.u32 %v2766_v58, %v2763_v37  ;;  %v2772_v0 = vrot.slane %v2770_v14, 5 }
 0x307   : > { %2840 = vst.msk [vmem:[#allocation3 + $0x2c] sm:$0xf] %vm2326_vm15, %v2759_v45  ;;  %v2806_v18 = vshll.u32 %v2714_v3, 16  ;;  %v2812_v41 = vshll.u32 %v2715_v61, 16  ;;  %v2717_v19 = vld [vmem:[#allocation2 + $0x44] sm:$0x1]  ;;  %v2739_v8 = vor.u32 %v2738_v7, %v2735_v25 }
 0x308   : > { %v2659_v13 = vld [vmem:[#allocation2 + $0x38] sm:$0xf]  ;;  %v2731_v63 = vsel %vm4875_vm8, %v2726_v36, %v2730_v20  ;;  %v2805_v40 = vrot.slane %v2803_v60, 4  ;;  %v2817_v44 = vshrl.u32 %v2716_v12, 16  ;;  %v2710_v52 = vld [vmem:[#allocation2 + $0x28] sm:$0xf] }
 0x309   : > { %2838 = vst.msk [vmem:[#allocation3 + $0x4] sm:$0xf] %vm2326_vm15, %v2731_v63  ;;  %v2768_v55 = vrot.slane %v2767_v35, 4  ;;  %v2744_v32 = vrot.slane %v2742_v47, 5  ;;  %v2808_v27 = vrot.slane %v2806_v18, 5  ;;  %v2820_v46 = vshll.u32 %v2716_v12, 16  ;;  %2681 = vrot.lane.b32.xlu0 %v2659_v13, %s4662_s25 }
 0x30a   : > { %v2711_v30 = vld [vmem:[#allocation2 + $0x2c] sm:$0x1]  ;;  %v2740_v37 = vrot.slane %v2739_v8, 4  ;;  %v2819_v14 = vrot.slane %v2817_v44, 4  ;;  %v2826_v3 = vshll.u32 %v2717_v19, 16  ;;  %v2775_v61 = vshrl.u32 %v2710_v52, 16  ;;  %2537 = vrot.lane.b32.xlu1 %v2522_v39, %s4661_s16 }
 0x30b   : > { %v2712_v58 = vld [vmem:[#allocation2 + $0x30] sm:$0xf]  ;;  %v3003_v7 = vld [vmem:[#allocation2 + $0x44] sm:$0x1]  ;;  %v2773_v60 = vsel %vm4875_vm8, %v2768_v55, %v2772_v0  ;;  %v2809_v20 = vor.u32 %v2808_v27, %v2805_v40  ;;  %v2822_v25 = vrot.slane %v2820_v46, 5  ;;  %v2778_v47 = vshll.u32 %v2710_v52, 16 }
 0x30c   : > { %v2385_v45 = vld [vmem:[#allocation2 + $0x38] sm:$0xf]  ;;  %v2384_v36 = vld [vmem:[#allocation2 + $0x30] sm:$0xf]  ;;  %2841 = vst.msk [vmem:[#allocation3 + $0x40] sm:$0xf] %vm2326_vm15, %v2773_v60  ;;  %v2745_v12 = vsel %vm4875_vm8, %v2740_v37, %v2744_v32  ;;  %v3097_v8 = vor.u32 %v5864_v57, %v5855_v10  ;;  %v6276_v52 = vsel %vm4875_vm8, %v5832_v49, %v5786_v33  ;;  %v2508_v46 = vsel %vm4875_vm8, %v5834_v6, %v5813_v43 }
 0x30d   : > { %v2814_v35 = vrot.slane %v2812_v41, 5  ;;  %v2777_v18 = vrot.slane %v2775_v61, 4  ;;  %v2784_v19 = vshll.u32 %v2711_v30, 16  ;;  %2394 = vst.msk [vmem:[#allocation3 + $0x8c] sm:$0xf] %vm2326_vm15, %v2385_v45  ;;  %v2810_v48 = vrot.slane %v2809_v20, 4  ;;  %3126 = vrot.lane.b32.xlu0 %v3075_v59, %s4662_s25 }
 0x30e   : > { %2393 = vst.msk [vmem:[#allocation3 + $0x78] sm:$0xf] %vm2326_vm15, %v2384_v36  ;;  %v2383_v1 = vld [vmem:[#allocation2 + $0x28] sm:$0xf]  ;;  %2839 = vst.msk [vmem:[#allocation3 + $0x18] sm:$0xf] %vm2326_vm15, %v2745_v12  ;;  %v2823_v39 = vor.u32 %v2822_v25, %v2819_v14  ;;  %3124 = vrot.lane.b32.xlu1 %v6276_v52, %s4662_s25  ;;  %v3111_v43 = vor.u32 %v5644_v31, %v5524_v2  ;;  %v6278_v31 = vpack.c.bf16 %v4965_v26, %v4954_v15 }
 0x30f   : > { %v2780_v0 = vrot.slane %v2778_v47, 5  ;;  %v2713_v13 = vld [vmem:[#allocation2 + $0x34] sm:$0x1]  ;;  %v2789_v63 = vshrl.u32 %v2712_v58, 16  ;;  %2392 = vst.msk [vmem:[#allocation3 + $0x64] sm:$0xf] %vm2326_vm15, %v2383_v1  ;;  %v2815_v28 = vsel %vm4875_vm8, %v2810_v48, %v2814_v35  ;;  %v6279_v36 = vpack.c.bf16 %v5015_v11, %v5004_v62 }
 0x310   : > { %v2489_v41 = vrot.slane %v2488_v29, 4  ;;  %v2828_v40 = vrot.slane %v2826_v3, 5  ;;  %v2792_v44 = vshll.u32 %v2712_v58, 16  ;;  %v2824_v54 = vrot.slane %v2823_v39, 4  ;;  %v3005_v27 = vld [vmem:[#allocation2 + $0x4c] sm:$0x1] }
 0x311   : > { %v2781_v10 = vor.u32 %v2780_v0, %v2777_v18  ;;  %v2791_v57 = vrot.slane %v2789_v63, 4  ;;  %v6277_v29 = vshll.u32 %v5806_v5, 16  ;;  %v3100_v32 = vshll.u32 %v3003_v7, 16  ;;  %2844 = vst.msk [vmem:[#allocation3 + $0x7c] sm:$0xf] %vm2326_vm15, %v2815_v28  ;;  %2535 = vrot.lane.b32.xlu0 %v2508_v46, %s4661_s16 }
 0x312   : > { %v2794_v56 = vrot.slane %v2792_v44, 5  ;;  %v2798_v23 = vshll.u32 %v2713_v13, 16  ;;  %v2829_v59 = vsel %vm4875_vm8, %v2824_v54, %v2828_v40  ;;  %v2786_v49 = vrot.slane %v2784_v19, 5  ;;  %v2949_v58 = vld [vmem:[#allocation2 + $0x48] sm:$0xf] }
 0x313   : > { %v2493_v55 = vrot.slane %v6277_v29, 5  ;;  %v2782_v33 = vrot.slane %v2781_v10, 4  ;;  %v3098_v30 = vrot.slane %v3097_v8, 4  ;;  %2845 = vst.msk [vmem:[#allocation3 + $0x90] sm:$0xf] %vm2326_vm15, %v2829_v59  ;;  %v3114_v14 = vshll.u32 %v3005_v27, 16 }
 0x314   : > { %v2795_v37 = vor.u32 %v2794_v56, %v2791_v57  ;;  %v3102_v61 = vrot.slane %v3100_v32, 5  ;;  %v2800_v7 = vrot.slane %v2798_v23, 5  ;;  %v3112_v25 = vrot.slane %v3111_v43, 4  ;;  %v2660_v45 = vld [vmem:[#allocation2 + $0x40] sm:$0xf] }
 0x315   : > { %v2494_v5 = vsel %vm4875_vm8, %v2489_v41, %v2493_v55  ;;  %v2787_v3 = vsel %vm4875_vm8, %v2782_v33, %v2786_v49  ;;  %v3116_v47 = vrot.slane %v3114_v14, 5 }
 0x316   : > { %2533 = vrot.lane.b32.xlu1 %v2494_v5, %s4661_s16  ;;  %2842 = vst.msk [vmem:[#allocation3 + $0x54] sm:$0xf] %vm2326_vm15, %v2787_v3  ;;  %v2796_v6 = vrot.slane %v2795_v37, 4  ;;  %v3103_v60 = vsel %vm4875_vm8, %v3098_v30, %v3102_v61 }
 0x317   : > { %3130 = vrot.lane.b32.xlu0 %v3103_v60, %s4662_s25  ;;  %v3117_v2 = vsel %vm4875_vm8, %v3112_v25, %v3116_v47 }
 0x318   : > { %v2801_v20 = vsel %vm4875_vm8, %v2796_v6, %v2800_v7 }
 0x319   : > { %2843 = vst.msk [vmem:[#allocation3 + $0x68] sm:$0xf] %vm2326_vm15, %v2801_v20 }
 0x31a   : > { %2972 = vrot.lane.b32.xlu1 %v2949_v58, %s4660_s23 }
 0x31e   : > { %2683 = vrot.lane.b32.xlu1 %v2660_v45, %s4662_s25 }
 0x322   : > { %3132 = vrot.lane.b32.xlu1 %v3117_v2, %s4662_s25  ;;  %s6143_s25 = scalar_lea.vmem [#allocation4], %s3982_s24 }
 0x323   : > { %s3916_s27 = sshll.u32 %s6143_s25, 4  ;;  %s6189_s27 = int_to_ptr.vmem [resolvable:$true] %s3916_s27 }
 0x324   : > { %s4595_s14 = scalar_lea.vmem %s6189_s27, 2048 }
 0x325   : > { %p4596_p11 = scmp.ne.s32.totalorder %s6189_s27, %s4595_s14 }
 0x326   : > { %3626 = vrot.lane.b32.xlu1 %v6278_v31, %s4661_s16 }
 0x327   : > { %p4597_p12 = pnand %p4596_p11, %p4754_p5 }
 0x329   : > { %p4598_p13 = pneg %p4597_p12 }
 0x32a   : > { %3628 = vrot.lane.b32.xlu1 %v6279_v36, %s4661_s16 }
 0x32f   : > { %v2961_v12 = vpop.permute.xlu1 %2960 }
 0x330   : > { %v2674_v35 = vpop.permute.xlu0 %2673 }
 0x333   : > { %v2676_v18 = vpop.permute.xlu1 %2675 }
 0x334   : > { %v2670_v19 = vpop.permute.xlu0 %2669 }
 0x335   : > { %2694 = vst.msk [vmem:[#allocation3] sm:$0xf] %vm2693_vm6, %v2670_v19 }
 0x337   : > { %v2672_v9 = vpop.permute.xlu1 %2671 }
 0x338   : > { %v2963_v1 = vpop.permute.xlu0 %2962 }
 0x33b   : > { %v2627_v48 = vpop.permute.xlu1 %2626 }
 0x33f   : > { %v2959_v39 = vpop.permute.xlu0 %2958  ;;  %v2623_v13 = vpop.permute.xlu1 %2622 }
 0x343   : > { %v2915_v0 = vpop.permute.xlu0 %2914  ;;  %v2917_v26 = vpop.permute.xlu1 %2916 }
 0x344   : > { %2936 = vst.msk [vmem:[#allocation3 + $0x2c] sm:$0xf] %vm2547_vm1, %v2915_v0  ;;  %2937 = vst.msk [vmem:[#allocation3 + $0x40] sm:$0xf] %vm2547_vm1, %v2917_v26 }
 0x345   : > { %2984 = vst.msk [vmem:[#allocation3 + $0x2c] sm:$0xf] %vm2644_vm2, %v2963_v1 }
 0x347   : > { %v2911_v15 = vpop.permute.xlu0 %2910  ;;  %v2913_v11 = vpop.permute.xlu1 %2912 }
 0x348   : > { %2934 = vst.msk [vmem:[#allocation3 + $0x4] sm:$0xf] %vm2547_vm1, %v2911_v15  ;;  %2935 = vst.msk [vmem:[#allocation3 + $0x18] sm:$0xf] %vm2547_vm1, %v2913_v11  ;;  %v4571_v11 = vld [vmem:[%s6244_s7] ss:$8 sps:$4 sm:$0xff]  }
 0x349   : > { %2982 = vst.msk [vmem:[#allocation3 + $0x4] sm:$0xf] %vm2644_vm2, %v2959_v39  ;;  %2983 = vst.msk [vmem:[#allocation3 + $0x18] sm:$0xf] %vm2644_vm2, %v2961_v12 }
 0x34b   : > { %v2629_v62 = vpop.permute.xlu0 %2628 }
 0x34c   : > { %v2969_v41 = vpop.permute.xlu1 %2968 }
 0x34f   : > { %v2625_v63 = vpop.permute.xlu0 %2624 }
 0x351   : > { %v3121_v40 = vpop.permute.xlu1 %3120 }
 0x352   : > { %3143 = vst.msk [vmem:[#allocation3 + $0x18] sm:$0xf] %vm2693_vm6, %v3121_v40  ;;  %v4579_v40 = vld [vmem:[%s6244_s7 + $0x24] ss:$8 sps:$4 sm:$0xff]  }
 0x353   : > { %v2678_v8 = vpop.permute.xlu0 %2677 }
 0x355   : > { %v2530_v52 = vpop.permute.xlu1 %2529 }
 0x356   : > { %2551 = vst.msk [vmem:[#allocation3 + $0x3c] sm:$0xf] %vm2547_vm1, %v2530_v52  ;;  %v4582_v52 = vld [vmem:[%s6244_s7 + $0x34] ss:$8 sps:$4 sm:$0xff]  }
 0x357   : > { %v2971_v44 = vpop.permute.xlu0 %2970  ;;  %2648 = vst.msk [vmem:[#allocation3 + $0x3c] sm:$0xf] %vm2644_vm2, %v2627_v48 }
 0x358   : > { %2697 = vst.msk [vmem:[#allocation3 + $0x3c] sm:$0xf] %vm2693_vm6, %v2676_v18 }
 0x359   : > { %v2965_v54 = vpop.permute.xlu1 %2964 }
 0x35a   : > { %2985 = vst.msk [vmem:[#allocation3 + $0x40] sm:$0xf] %vm2644_vm2, %v2965_v54  ;;  %v4585_v54 = vld [vmem:[%s6244_s7 + $0x44] ss:$8 sps:$4 sm:$0xff]  }
 0x35b   : > { %v3123_v28 = vpop.permute.xlu0 %3122 }
 0x35c   : > { %3144 = vst.msk [vmem:[#allocation3 + $0x2c] sm:$0xf] %vm2693_vm6, %v3123_v28  ;;  %v4580_v28 = vld [vmem:[%s6244_s7 + $0x30] ss:$8 sps:$4 sm:$0xff]  }
 0x35d   : > { %v2526_v57 = vpop.permute.xlu1 %2525 }
 0x35e   : > { %2549 = vst.msk [vmem:[#allocation3 + $0x14] sm:$0xf] %vm2547_vm1, %v2526_v57  ;;  %v4588_v57 = vld [vmem:[%s6244_s7 + $0x54] ss:$8 sps:$4 sm:$0xff]  }
 0x35f   : > { %v2532_v10 = vpop.permute.xlu0 %2531  ;;  %2646 = vst.msk [vmem:[#allocation3 + $0x14] sm:$0xf] %vm2644_vm2, %v2623_v13 }
 0x360   : > { %2552 = vst.msk [vmem:[#allocation3 + $0x50] sm:$0xf] %vm2547_vm1, %v2532_v10  ;;  %v4583_v10 = vld [vmem:[%s6244_s7 + $0x40] ss:$8 sps:$4 sm:$0xff]  }
 0x361   : > { %2649 = vst.msk [vmem:[#allocation3 + $0x50] sm:$0xf] %vm2644_vm2, %v2629_v62  ;;  %v2680_v55 = vpop.permute.xlu1 %2679 }
 0x362   : > { %2698 = vst.msk [vmem:[#allocation3 + $0x50] sm:$0xf] %vm2693_vm6, %v2678_v8  ;;  %2695 = vst.msk [vmem:[#allocation3 + $0x14] sm:$0xf] %vm2693_vm6, %v2672_v9  ;;  %v6280_v9 = vmov 0  }
 0x363   : > { %v2967_v29 = vpop.permute.xlu0 %2966  ;;  %v4574_v8 = vld [vmem:[%s6244_s7 + $0x10] ss:$8 sps:$4 sm:$0xff]  }
 0x367   : > { %v2923_v32 = vpop.permute.xlu0 %2922 }
 0x368   : > { %v2635_v27 = vpop.permute.xlu1 %2634  ;;  %2940 = vst.msk [vmem:[#allocation3 + $0x7c] sm:$0xf] %vm2547_vm1, %v2923_v32  ;;  %v4589_v32 = vld [vmem:[%s6244_s7 + $0x60] ss:$8 sps:$4 sm:$0xff]  }
 0x369   : > { %2988 = vst.msk [vmem:[#allocation3 + $0x7c] sm:$0xf] %vm2644_vm2, %v2971_v44  ;;  %v4560_v5 = vld [vmem:[#allocation3] ss:$20 sps:$4 sm:$0xff]   ;;  %v4577_v44 = vld [vmem:[%s6244_s7 + $0x20] ss:$8 sps:$4 sm:$0xff]  }
 0x36b   : > { %v3119_v56 = vpop.permute.xlu0 %3118 }
 0x36c   : > { %v2631_v23 = vpop.permute.xlu1 %2630  ;;  %3142 = vst.msk [vmem:[#allocation3 + $0x4] sm:$0xf] %vm2693_vm6, %v3119_v56  ;;  %v4592_v56 = vld [vmem:[%s6244_s7 + $0x70] ss:$8 sps:$4 sm:$0xff]  }
 0x36f   : > { %v2528_v59 = vpop.permute.xlu0 %2527 }
 0x370   : > { %v2925_v33 = vpop.permute.xlu1 %2924  ;;  %2550 = vst.msk [vmem:[#allocation3 + $0x28] sm:$0xf] %vm2547_vm1, %v2528_v59  ;;  %v4127_v59 = vld [vmem:[%s6243_s6] ss:$0 sm:$0xff] }
 0x371   : > { %2941 = vst.msk [vmem:[#allocation3 + $0x90] sm:$0xf] %vm2547_vm1, %v2925_v33 }
 0x372   : > { %2647 = vst.msk [vmem:[#allocation3 + $0x28] sm:$0xf] %vm2644_vm2, %v2625_v63  ;;  %v4573_v63 = vld [vmem:[%s6244_s7 + $0x4] ss:$8 sps:$4 sm:$0xff]  }
 0x373   : > { %2696 = vst.msk [vmem:[#allocation3 + $0x28] sm:$0xf] %vm2693_vm6, %v2674_v35  ;;  %v2919_v49 = vpop.permute.xlu0 %2918  ;;  %v4562_v30 = vld [vmem:[#allocation3 + $0x4] ss:$20 sps:$4 sm:$0xff]   ;;  %4403 = vmatprep.subr.bf16.mxu1 %v4573_v63  ;;  %3765 = vmatprep.subr.bf16.mxu0 %v4573_v63 }
 0x374   : > { %v2921_v46 = vpop.permute.xlu1 %2920  ;;  %2938 = vst.msk [vmem:[#allocation3 + $0x54] sm:$0xf] %vm2547_vm1, %v2919_v49  ;;  %3502 = vmatprep.mubr.bf16.mxu0 %v4562_v30  ;;  %4411 = vmatpush1.bf16.msra.mxu1 %v4571_v11 }
 0x375   : > { %2939 = vst.msk [vmem:[#allocation3 + $0x68] sm:$0xf] %vm2547_vm1, %v2921_v46  ;;  %3503 = vmatmul.mubr.bf16.vlgmr.msra.gmra.mrb[32].mxu0 %v4560_v5 }
 0x376   : > { %2986 = vst.msk [vmem:[#allocation3 + $0x54] sm:$0xf] %vm2644_vm2, %v2967_v29  ;;  %2987 = vst.msk [vmem:[#allocation3 + $0x68] sm:$0xf] %vm2644_vm2, %v2969_v41  ;;  %v4576_v41 = vld [vmem:[%s6244_s7 + $0x14] ss:$8 sps:$4 sm:$0xff]   ;;  %3766 = vmatpush1.bf16.msra.mxu0 %v4571_v11 }
 0x377   : > { %v2633_v37 = vpop.permute.xlu0 %2632  ;;  %4404 = vmatprep.subr.bf16.mxu1 %v4576_v41  ;;  %3767 = vmatprep.subr.bf16.mxu0 %v4576_v41  ;;  %v4586_v29 = vld [vmem:[%s6244_s7 + $0x50] ss:$8 sps:$4 sm:$0xff]  }
 0x378   : > { %v3129_v14 = vpop.permute.xlu1 %3128  ;;  %4412 = vmatpush1.bf16.msra.mxu1 %v4574_v8 }
 0x379   : > { %3147 = vst.msk [vmem:[#allocation3 + $0x68] sm:$0xf] %vm2693_vm6, %v3129_v14  ;;  %4405 = vmatprep.subr.bf16.mxu1 %v4579_v40 }
 0x37a   : > { %v3234_v60 = vld [vmem:[#allocation3 + $0x28] sm:$0xff]  ;;  %3768 = vmatpush1.bf16.msra.mxu0 %v4574_v8 }
 0x37b   : > { %v2682_v3 = vpop.permute.xlu0 %2681  ;;  %3769 = vmatprep.subr.bf16.mxu0 %v4579_v40 }
 0x37c   : > { %v2538_v61 = vpop.permute.xlu1 %2537  ;;  %4413 = vmatpush1.bf16.msra.mxu1 %v4577_v44 }
 0x37d   : > { %2555 = vst.msk [vmem:[#allocation3 + $0x8c] sm:$0xf] %vm2547_vm1, %v2538_v61  ;;  %4406 = vmatprep.subr.bf16.mxu1 %v4582_v52 }
 0x37e   : > { %2652 = vst.msk [vmem:[#allocation3 + $0x8c] sm:$0xf] %vm2644_vm2, %v2635_v27  ;;  %3770 = vmatpush1.bf16.msra.mxu0 %v4577_v44  ;;  %v4594_v27 = vld [vmem:[%s6244_s7 + $0x74] ss:$8 sps:$4 sm:$0xff]  }
 0x37f   : > { %v3127_v58 = vpop.permute.xlu0 %3126  ;;  %3771 = vmatprep.subr.bf16.mxu0 %v4582_v52 }
 0x380   : > { %v3125_v43 = vpop.permute.xlu1 %3124  ;;  %3146 = vst.msk [vmem:[#allocation3 + $0x54] sm:$0xf] %vm2693_vm6, %v3127_v58  ;;  %4414 = vmatpush1.bf16.msra.mxu1 %v4580_v28 }
 0x381   : > { %3145 = vst.msk [vmem:[#allocation3 + $0x40] sm:$0xf] %vm2693_vm6, %v3125_v43  ;;  %4407 = vmatprep.subr.bf16.mxu1 %v4585_v54 }
 0x382   : > { %3772 = vmatpush1.bf16.msra.mxu0 %v4580_v28 }
 0x383   : > { %v2536_v6 = vpop.permute.xlu0 %2535  ;;  %3773 = vmatprep.subr.bf16.mxu0 %v4585_v54 }
 0x384   : > { %2554 = vst.msk [vmem:[#allocation3 + $0x78] sm:$0xf] %vm2547_vm1, %v2536_v6  ;;  %4415 = vmatpush1.bf16.msra.mxu1 %v4583_v10 }
 0x385   : > { %2651 = vst.msk [vmem:[#allocation3 + $0x78] sm:$0xf] %vm2644_vm2, %v2633_v37  ;;  %4408 = vmatprep.subr.bf16.mxu1 %v4588_v57 }
 0x386   : > { %2700 = vst.msk [vmem:[#allocation3 + $0x78] sm:$0xf] %vm2693_vm6, %v2682_v3  ;;  %3774 = vmatpush1.bf16.msra.mxu0 %v4583_v10 }
 0x387   : > { %v4565_v36 = vld [vmem:[#allocation3 + $0x54] ss:$20 sps:$4 sm:$0xff]   ;;  %3775 = vmatprep.subr.bf16.mxu0 %v4588_v57 }
 0x388   : > { %v2534_v7 = vpop.permute.xlu1 %2533  ;;  %v3236_v47 = vld [vmem:[#allocation3 + $0x3c] sm:$0xff]  ;;  %4416 = vmatpush1.bf16.msra.mxu1 %v4586_v29 }
 0x389   : > { %2553 = vst.msk [vmem:[#allocation3 + $0x64] sm:$0xf] %vm2547_vm1, %v2534_v7  ;;  %v3131_v20 = vpop.permute.xlu0 %3130  ;;  %v4563_v45 = vld [vmem:[#allocation3 + $0x2c] ss:$20 sps:$4 sm:$0xff]   ;;  %v4131_v2 = vcombine.low %v3234_v60, %v3236_v47 }
 0x38a   : > { %2650 = vst.msk [vmem:[#allocation3 + $0x64] sm:$0xf] %vm2644_vm2, %v2631_v23  ;;  %3510 = vmatprep.mubr.bf16.mxu0 %v4563_v45  ;;  %3776 = vmatpush1.bf16.msra.mxu0 %v4586_v29 }
 0x38b   : > { %2699 = vst.msk [vmem:[#allocation3 + $0x64] sm:$0xf] %vm2693_vm6, %v2680_v55  ;;  %3148 = vst.msk [vmem:[#allocation3 + $0x7c] sm:$0xf] %vm2693_vm6, %v3131_v20  ;;  %3511 = vmatmul.mubr.bf16.gmra.mrb[36].mxu0 %v4131_v2  ;;  %v4591_v55 = vld [vmem:[%s6244_s7 + $0x64] ss:$8 sps:$4 sm:$0xff]  }
 0x38c   : > { %v2973_v25 = vpop.permute.xlu1 %2972  ;;  %3518 = vmatprep.mubr.bf16.mxu0 %v4565_v36  ;;  %4409 = vmatprep.subr.bf16.mxu1 %v4591_v55 }
 0x38d   : > { %2989 = vst.msk [vmem:[#allocation3 + $0x90] sm:$0xf] %vm2644_vm2, %v2973_v25  ;;  %3777 = vmatprep.subr.bf16.mxu0 %v4591_v55  ;;  %4417 = vmatpush1.bf16.msra.mxu1 %v4589_v32 }
 0x38e   : > { %3778 = vmatpush1.bf16.msra.mxu0 %v4589_v32  ;;  %4410 = vmatprep.subr.bf16.mxu1 %v4594_v27 }
 0x38f   : > { %3779 = vmatprep.subr.bf16.mxu0 %v4594_v27 }
 0x390   : > { %v2684_v31 = vpop.permute.xlu1 %2683 }
 0x391   : > { %2701 = vst.msk [vmem:[#allocation3 + $0x8c] sm:$0xf] %vm2693_vm6, %v2684_v31  ;;  %4418 = vmatpush1.bf16.msra.mxu1 %v4592_v56 }
 0x392   : > { %v4567_v35 = vld [vmem:[#allocation3 + $0x50] ss:$20 sps:$4 sm:$0xff]   ;;  %3780 = vmatpush1.bf16.msra.mxu0 %v4592_v56 }
 0x393   : > { %3519 = vmatmul.mubr.bf16.gmra.mrb[40].mxu0 %v4567_v35 }
 0x394   : > { %v3133_v12 = vpop.permute.xlu1 %3132 }
 0x395   : > { %3149 = vst.msk [vmem:[#allocation3 + $0x90] sm:$0xf] %vm2693_vm6, %v3133_v12 }
 0x398   : > { %v4570_v19 = vld [vmem:[#allocation3 + $0x78] ss:$20 sps:$4 sm:$0xff]  }
 0x39c   : > { %v4568_v18 = vld [vmem:[#allocation3 + $0x7c] ss:$20 sps:$4 sm:$0xff]  }
 0x39d   : > { %3526 = vmatprep.mubr.bf16.mxu0 %v4568_v18 }
 0x39e   : > { %3527 = vmatmul.mubr.bf16.gmra.mrb[44].mxu0 %v4570_v19 }
 0x39f   : > { %3797 = vmatprep.mubr.bf16.mxu0 %v6280_v9 }
 0x3aa   : > { %v6016_v1 = vpop.f32.mrb[24].mxu1 }
 0x3ab   : > { %v6018_v48 = vpop.f32.mrb[25].mxu1 }
 0x3ac   : > { %v6020_v39 = vpop.f32.mrb[26].mxu1 }
 0x3ad   : > { %v6022_v0 = vpop.f32.mrb[27].mxu1 }
 0x3b3   : > { %v6024_v13 = vpop.f32.mrb[28].mxu1 }
 0x3b4   : > { %v6026_v15 = vpop.f32.mrb[29].mxu1 }
 0x3b5   : > { %v6028_v26 = vpop.f32.mrb[30].mxu1 }
 0x3b6   : > { %v6030_v62 = vpop.f32.mrb[31].mxu1 }
 0x448   : > { %v4345_v23 = vpop.f32.mrb[32].mxu0 }
 0x449   : > { %v4346_v33 = vpop.f32.mrb[33].mxu0 }
 0x44a   : > { %v4347_v49 = vadd.f32 %v4346_v33, %v4345_v23  ;;  %v4348_v46 = vpop.f32.mrb[34].mxu0 }
 0x44b   : > { %v4349_v5 = vpop.f32.mrb[35].mxu0 }
 0x44c   : > { %v3505_v30 = vadd.f32 %v4347_v49, %v4127_v59  ;;  %v4350_v37 = vadd.f32 %v4349_v5, %v4348_v46  ;;  %v6281_v5 = vpack.c.bf16 %v4931_v53, %v4926_v50 }
 0x44e   : > { %v3570_v14 = vadd.f32 %v6018_v48, %v3505_v30  ;;  %v3508_v3 = vadd.f32 %v4350_v37, %v4127_v59  ;;  %v6283_v30 = vpack.c.bf16 %v5473_v34, %v5457_v24  ;;  %v6285_v24 = vpack.c.bf16 %v5455_v16, %v5451_v38 }
 0x44f   : > { %v3675_v38 = vlaneseq }
 0x450   : > { %v3573_v61 = vadd.f32 %v6022_v0, %v3508_v3  ;;  %v3600_v58 = vmax.f32 %v3570_v14, 0.0  ;;  %v6284_v3 = vpack.c.bf16 %v5510_v17, %v5504_v21  ;;  %v6286_v21 = vpack.c.bf16 %v5537_v51, %v5530_v42 }
 0x451   : > { %v3676_v16 = vshrl.u32 %v3675_v38, 7 }
 0x452   : > { %v3601_v43 = vmax.f32 %v3573_v61, 0.0 }
 0x454   : > { %v3608_v6 = vpack.c.bf16 %v3601_v43, %v3600_v58 }
 0x45e   : > { %v4351_v7 = vpop.f32.mrb[36].mxu0 }
 0x45f   : > { %v4352_v60 = vpop.f32.mrb[37].mxu0 }
 0x460   : > { %v4353_v20 = vadd.f32 %v4352_v60, %v4351_v7  ;;  %v4354_v25 = vpop.f32.mrb[38].mxu0  ;;  %v3677_v60 = vsub.s32 0, %v3676_v16 }
 0x461   : > { %v4355_v47 = vpop.f32.mrb[39].mxu0 }
 0x462   : > { %v3513_v45 = vadd.f32 %v4353_v20, %v4127_v59  ;;  %v4356_v2 = vadd.f32 %v4355_v47, %v4354_v25  ;;  %v3673_v20 = vld [vmem:[%s6245_s8] sm:$0x3]  ;;  %v3681_v25 = vsub.s32 1, %v3676_v16 }
 0x463   : > { %v6128_v47 = vrot.slane %v3673_v20, %v3677_v60 }
 0x464   : > { %v3578_v31 = vadd.f32 %v6016_v1, %v3513_v45  ;;  %v3516_v36 = vadd.f32 %v4356_v2, %v4127_v59  ;;  %v6131_v42 = vrot.slane %v3673_v20, %v3681_v25  ;;  %v3842_v45 = vld [vmem:[%s4796_s17 + $0x20] sm:$0xff]  ;;  %v3851_v20 = vld [vmem:[%s4796_s17 + $0x68] sm:$0xff] }
 0x466   : > { %v3581_v12 = vadd.f32 %v6020_v39, %v3516_v36  ;;  %v4357_v35 = vpop.f32.mrb[40].mxu0  ;;  %v3602_v19 = vmax.f32 %v3578_v31, 0.0  ;;  %v3843_v36 = vld [vmem:[%s4796_s17 + $0x28] sm:$0xff] }
 0x467   : > { %v4358_v18 = vpop.f32.mrb[41].mxu0 }
 0x468   : > { %v3603_v48 = vmax.f32 %v3581_v12, 0.0  ;;  %v4359_v0 = vadd.f32 %v4358_v18, %v4357_v35  ;;  %v4360_v11 = vpop.f32.mrb[42].mxu0  ;;  %v3844_v18 = vld [vmem:[%s4796_s17 + $0x30] sm:$0xff] }
 0x469   : > { %v4361_v63 = vpop.f32.mrb[43].mxu0 }
 0x46a   : > { %v3521_v41 = vadd.f32 %v4359_v0, %v4127_v59  ;;  %v4362_v8 = vadd.f32 %v4361_v63, %v4360_v11  ;;  %v3609_v40 = vpack.c.bf16 %v3603_v48, %v3602_v19  ;;  %v3845_v11 = vld [vmem:[%s4796_s17 + $0x38] sm:$0xff] }
 0x46c   : > { %v3586_v44 = vadd.f32 %v6026_v15, %v3521_v41  ;;  %v3524_v52 = vadd.f32 %v4362_v8, %v4127_v59  ;;  %3618 = vrot.lane.b32.xlu0 %v3609_v40, %s4660_s23 }
 0x46e   : > { %v3589_v1 = vadd.f32 %v6030_v62, %v3524_v52  ;;  %v3604_v39 = vmax.f32 %v3586_v44, 0.0 }
 0x470   : > { %v3605_v10 = vmax.f32 %v3589_v1, 0.0 }
 0x471   : > { %v4363_v28 = vpop.f32.mrb[44].mxu0 }
 0x472   : > { %v4364_v54 = vpop.f32.mrb[45].mxu0  ;;  %v3610_v56 = vpack.c.bf16 %v3605_v10, %v3604_v39  ;;  %v3846_v39 = vld [vmem:[%s4796_s17 + $0x40] sm:$0xff] }
 0x473   : > { %v4365_v57 = vadd.f32 %v4364_v54, %v4363_v28  ;;  %v4366_v29 = vpop.f32.mrb[46].mxu0 }
 0x474   : > { %v4367_v55 = vpop.f32.mrb[47].mxu0  ;;  %3620 = vrot.lane.b32.xlu0 %v3610_v56, %s4660_s23 }
 0x475   : > { %v3529_v32 = vadd.f32 %v4365_v57, %v4127_v59  ;;  %v4368_v27 = vadd.f32 %v4367_v55, %v4366_v29  ;;  %v3847_v29 = vld [vmem:[%s4796_s17 + $0x48] sm:$0xff] }
 0x477   : > { %v3594_v23 = vadd.f32 %v6024_v13, %v3529_v32  ;;  %v3532_v33 = vadd.f32 %v4368_v27, %v4127_v59  ;;  %v6282_v13 = vpack.c.bf16 %v5056_v22, %v5038_v4  ;;  %v3848_v27 = vld [vmem:[%s4796_s17 + $0x50] sm:$0xff] }
 0x478   : > { %3616 = vrot.lane.b32.xlu0 %v3608_v6, %s4660_s23 }
 0x479   : > { %v3597_v15 = vadd.f32 %v6028_v26, %v3532_v33  ;;  %v3606_v49 = vmax.f32 %v3594_v23, 0.0  ;;  %v3627_v26 = vpop.permute.xlu1 %3626 }
 0x47b   : > { %v3607_v46 = vmax.f32 %v3597_v15, 0.0  ;;  %v3849_v15 = vld [vmem:[%s4796_s17 + $0x58] sm:$0xff] }
 0x47c   : > { %3624 = vrot.lane.b32.xlu0 %v6281_v5, %s4661_s16 }
 0x47d   : > { %v3611_v62 = vpack.c.bf16 %v3607_v46, %v3606_v49  ;;  %v3629_v53 = vpop.permute.xlu1 %3628 }
 0x47f   : > { %3622 = vrot.lane.b32.xlu1 %v3611_v62, %s4660_s23  ;;  %s4599_s23 = sshll.u32 %s4663_s21, 4  ;;  %s4600_s23 = int_to_ptr.vmem [resolvable:$false] %s4599_s23 }
 0x480   : > { %p4602_p0 = scmp.lt.s32.totalorder %s6189_s27, %s4600_s23 }
 0x483   : > { %3630 = vrot.lane.b32.xlu1 %v6282_v13, %s4661_s16  ;;  %s4601_s16 = scalar_lea.vmem %s4600_s23, 4096 }
 0x484   : > { %p4603_p1 = scmp.lt.s32.totalorder %s4601_s16, %s4595_s14 }
 0x486   : > { %p4604_p2 = por %p4603_p1, %p4602_p0 }
 0x488   : > { %p4605_p3 = pnand %p4604_p2, %p4598_p13 }
 0x4de   : > { %v3619_v59 = vpop.permute.xlu0 %3618 }
 0x4df   : > { %v3637_v37 = vsel %vm2006_vm14, %v6283_v30, %v3619_v59 }
 0x4e0   : > { %v3649_v14 = vsel %vm3644_vm7, %v3637_v37, %v3627_v26  ;;  %v3838_v37 = vld [vmem:[%s4796_s17] sm:$0xff] }
 0x4e1   : > { %3808 = vmatmul.mubr.bf16.vlgmr.msra.gmra.mrb[32].mxu1 %v3649_v14 }
 0x4e2   : > { %3817 = vmatprep.mubr.bf16.mxu1 %v6280_v9 }
 0x4e6   : > { %v3621_v50 = vpop.permute.xlu0 %3620 }
 0x4e7   : > { %v3640_v4 = vsel %vm2006_vm14, %v6284_v3, %v3621_v50  ;;  %v3839_v3 = vld [vmem:[%s4796_s17 + $0x8] sm:$0xff] }
 0x4e8   : > { %v3652_v22 = vsel %vm3644_vm7, %v3640_v4, %v3629_v53 }
 0x4e9   : > { %3818 = vmatmul.mubr.bf16.gmra.mrb[36].mxu1 %v3652_v22 }
 0x4ea   : > { %v3617_v61 = vpop.permute.xlu0 %3616  ;;  %3827 = vmatprep.mubr.bf16.mxu1 %v6280_v9 }
 0x4eb   : > { %v3634_v34 = vsel %vm2006_vm14, %v6285_v24, %v3617_v61  ;;  %v3840_v61 = vld [vmem:[%s4796_s17 + $0x10] sm:$0xff] }
 0x4ee   : > { %v3625_v43 = vpop.permute.xlu0 %3624 }
 0x4ef   : > { %v3646_v6 = vsel %vm3644_vm7, %v3634_v34, %v3625_v43  ;;  %v3841_v43 = vld [vmem:[%s4796_s17 + $0x18] sm:$0xff] }
 0x4f0   : > { %3798 = vmatmul.mubr.bf16.vlgmr.msra.gmra.mrb[48].mxu0 %v3646_v6 }
 0x4f1   : > { %v3623_v58 = vpop.permute.xlu1 %3622 }
 0x4f2   : > { %v3643_v17 = vsel %vm2006_vm14, %v6286_v21, %v3623_v58 }
 0x4f5   : > { %v3631_v7 = vpop.permute.xlu1 %3630 }
 0x4f6   : > { %v3655_v9 = vsel %vm3644_vm7, %v3643_v17, %v3631_v7  ;;  %v3850_v7 = vld [vmem:[%s4796_s17 + $0x60] sm:$0xff] }
 0x4f7   : > { %3828 = vmatmul.mubr.bf16.gmra.mrb[40].mxu1 %v3655_v9 }
 0x5b4   : > { %v3809_v51 = vpop.f32.mrb[32].mxu1 }
 0x5b5   : > { %v3810_v2 = vadd.f32 %v3809_v51, %v6128_v47  ;;  %v3811_v31 = vpop.f32.mrb[33].mxu1 }
 0x5b6   : > { %v3812_v12 = vadd.f32 %v3811_v31, %v6131_v42  ;;  %v3813_v35 = vpop.f32.mrb[34].mxu1  ;;  %v3852_v31 = vld [vmem:[%s4796_s17 + $0x70] sm:$0xff] }
 0x5b7   : > { %v3858_v19 = vadd.f32 %v3842_v45, %v3810_v2  ;;  %v3814_v48 = vadd.f32 %v3813_v35, %v6128_v47  ;;  %v3815_v0 = vpop.f32.mrb[35].mxu1 }
 0x5b8   : > { %v3859_v63 = vadd.f32 %v3843_v36, %v3812_v12  ;;  %v3816_v41 = vadd.f32 %v3815_v0, %v6131_v42 }
 0x5b9   : > { %v3874_v8 = vmax.f32 %v3858_v19, 0.0  ;;  %v3860_v40 = vadd.f32 %v3844_v18, %v3814_v48  ;;  %v3853_v19 = vld [vmem:[%s4796_s17 + $0x78] sm:$0xff] }
 0x5ba   : > { %v3875_v44 = vmax.f32 %v3859_v63, 0.0  ;;  %v3861_v52 = vadd.f32 %v3845_v11, %v3816_v41 }
 0x5bb   : > { %3890 = vst [vmem:[%s6143_s25 + $0x20] sm:$0xff] %v3874_v8  ;;  %v3876_v1 = vmax.f32 %v3860_v40, 0.0 }
 0x5bc   : > { %3891 = vst [vmem:[%s6143_s25 + $0x28] sm:$0xff] %v3875_v44  ;;  %v3877_v28 = vmax.f32 %v3861_v52, 0.0  ;;  %v3819_v54 = vpop.f32.mrb[36].mxu1 }
 0x5bd   : > { %3892 = vst [vmem:[%s6143_s25 + $0x30] sm:$0xff] %v3876_v1  ;;  %v3820_v10 = vadd.f32 %v3819_v54, %v6128_v47  ;;  %v3821_v57 = vpop.f32.mrb[37].mxu1 }
 0x5be   : > { %3893 = vst [vmem:[%s6143_s25 + $0x38] sm:$0xff] %v3877_v28  ;;  %v3822_v55 = vadd.f32 %v3821_v57, %v6131_v42  ;;  %v3823_v32 = vpop.f32.mrb[38].mxu1 }
 0x5bf   : > { %v3862_v56 = vadd.f32 %v3846_v39, %v3820_v10  ;;  %v3824_v23 = vadd.f32 %v3823_v32, %v6128_v47  ;;  %v3825_v33 = vpop.f32.mrb[39].mxu1 }
 0x5c0   : > { %v3863_v49 = vadd.f32 %v3847_v29, %v3822_v55  ;;  %v3826_v46 = vadd.f32 %v3825_v33, %v6131_v42 }
 0x5c1   : > { %v3878_v62 = vmax.f32 %v3862_v56, 0.0  ;;  %v3864_v5 = vadd.f32 %v3848_v27, %v3824_v23 }
 0x5c2   : > { %v3879_v13 = vmax.f32 %v3863_v49, 0.0  ;;  %v3865_v59 = vadd.f32 %v3849_v15, %v3826_v46 }
 0x5c3   : > { %3894 = vst [vmem:[%s6143_s25 + $0x40] sm:$0xff] %v3878_v62  ;;  %v3880_v26 = vmax.f32 %v3864_v5, 0.0  ;;  %v3799_v30 = vpop.f32.mrb[48].mxu0 }
 0x5c4   : > { %3895 = vst [vmem:[%s6143_s25 + $0x48] sm:$0xff] %v3879_v13  ;;  %v3881_v14 = vmax.f32 %v3865_v59, 0.0  ;;  %v3800_v50 = vadd.f32 %v3799_v30, %v6128_v47  ;;  %v3801_v53 = vpop.f32.mrb[49].mxu0 }
 0x5c5   : > { %3896 = vst [vmem:[%s6143_s25 + $0x50] sm:$0xff] %v3880_v26  ;;  %v3802_v4 = vadd.f32 %v3801_v53, %v6131_v42  ;;  %v3803_v22 = vpop.f32.mrb[50].mxu0 }
 0x5c6   : > { %3897 = vst [vmem:[%s6143_s25 + $0x58] sm:$0xff] %v3881_v14  ;;  %v3854_v24 = vadd.f32 %v3838_v37, %v3800_v50  ;;  %v3804_v34 = vadd.f32 %v3803_v22, %v6128_v47  ;;  %v3805_v58 = vpop.f32.mrb[51].mxu0 }
 0x5c7   : > { %v3855_v6 = vadd.f32 %v3839_v3, %v3802_v4  ;;  %v3806_v21 = vadd.f32 %v3805_v58, %v6131_v42 }
 0x5c8   : > { %v3870_v9 = vmax.f32 %v3854_v24, 0.0  ;;  %v3856_v38 = vadd.f32 %v3840_v61, %v3804_v34 }
 0x5c9   : > { %v3871_v25 = vmax.f32 %v3855_v6, 0.0  ;;  %v3857_v51 = vadd.f32 %v3841_v43, %v3806_v21 }
 0x5ca   : > { %v3829_v17 = vpop.f32.mrb[40].mxu1  ;;  %3886 = vst [vmem:[%s6143_s25] sm:$0xff] %v3870_v9  ;;  %v3872_v36 = vmax.f32 %v3856_v38, 0.0 }
 0x5cb   : > { %v3830_v16 = vadd.f32 %v3829_v17, %v6128_v47  ;;  %v3831_v60 = vpop.f32.mrb[41].mxu1  ;;  %3887 = vst [vmem:[%s6143_s25 + $0x8] sm:$0xff] %v3871_v25  ;;  %v3873_v48 = vmax.f32 %v3857_v51, 0.0 }
 0x5cc   : > { %v3832_v45 = vadd.f32 %v3831_v60, %v6131_v42  ;;  %v3833_v2 = vpop.f32.mrb[42].mxu1  ;;  %3888 = vst [vmem:[%s6143_s25 + $0x10] sm:$0xff] %v3872_v36 }
 0x5cd   : > { %v3866_v12 = vadd.f32 %v3850_v7, %v3830_v16  ;;  %v3834_v35 = vadd.f32 %v3833_v2, %v6128_v47  ;;  %v3835_v18 = vpop.f32.mrb[43].mxu1  ;;  %3889 = vst [vmem:[%s6143_s25 + $0x18] sm:$0xff] %v3873_v48 }
 0x5ce   : > { %v3867_v0 = vadd.f32 %v3851_v20, %v3832_v45  ;;  %v3836_v11 = vadd.f32 %v3835_v18, %v6131_v42 }
 0x5cf   : > { %v3882_v63 = vmax.f32 %v3866_v12, 0.0  ;;  %v3868_v41 = vadd.f32 %v3852_v31, %v3834_v35 }
 0x5d0   : > { %v3883_v8 = vmax.f32 %v3867_v0, 0.0  ;;  %v3869_v47 = vadd.f32 %v3853_v19, %v3836_v11 }
 0x5d1   : > { %3898 = vst [vmem:[%s6143_s25 + $0x60] sm:$0xff] %v3882_v63  ;;  %v3884_v40 = vmax.f32 %v3868_v41, 0.0 }
 0x5d2   : > { %3899 = vst [vmem:[%s6143_s25 + $0x68] sm:$0xff] %v3883_v8  ;;  %v3885_v42 = vmax.f32 %v3869_v47, 0.0 }
 0x5d3   : > { %3900 = vst [vmem:[%s6143_s25 + $0x70] sm:$0xff] %v3884_v40 }
 0x5d4   : > { %3901 = vst [vmem:[%s6143_s25 + $0x78] sm:$0xff] %v3885_v42 }
 0x5d5   : > { %4608 = shalt.err (!%p4605_p3)
}
 0x5d6   : > { %s4609_s22 = scalar_lea.hbm %s6187_s29, 2048  ;;  %s4613_s26 = scalar_lea.hbm %s6246_s9, 4096 }
 0x5d7   : > { %p4610_p4 = scmp.ne.s32.totalorder %s6187_s29, %s4609_s22  ;;  %p4614_p9 = scmp.lt.u32.totalorder %s6187_s29, %s6246_s9 }
 0x5d8   : > { %p4615_p10 = scmp.lt.u32.totalorder %s4613_s26, %s4609_s22  ;;  %p4617_p12 = scmp.lt.u32.totalorder %s4609_s22, %s6187_s29 }
 0x5d9   : > { %p4611_p7 = pnand %p4610_p4, %p4754_p5 }
 0x5da   : > { %p4616_p11 = por %p4615_p10, %p4614_p9 }
 0x5db   : > { %p4612_p8 = pneg %p4611_p7 }
 0x5dc   : > { %p4618_p13 = por %p4617_p12, %p4616_p11 }
 0x5de   : > { %p4619_p0 = pnand %p4618_p13, %p4612_p8 }
 0x5e0   : > { %4622 = shalt.err (!%p4619_p0)
}
 0x5e1   : > { %s4664_s14 = smov 256   ;;  %s4665_s21 = smov 16  }
 0x5e2   : > { %4419 = dma.vmem_to_hbm [thread:$0]  (%p4754_p5), %s6189_s27, 2048, %s6187_s29, %s6196_s13, %s4664_s14, %s4664_s14, %s4665_s21  }
 0x5e3 PF: > { %p4425_p1 = scmp.ge.s32.totalorder %s4657_s12, 2  ;;  %s3931_s23 = sand.u32 1, %s4645_s30  }
 0x5e4   : > { %s3932_s16 = scalar_lea.sflag [#allocation5], %s3931_s23 }
 0x5e5   : > { %p4422_p2 = pnand %p4425_p1, %p4758_p6 }
 0x5e7   : > { %4640 = dma.done.wait (!%p4422_p2), %s3932_s16, 2048  }
 0x5e8   : > { %4642 = vsyncadd (!%p4422_p2), %s3932_s16, 4294965248  ;;  %p19_p3 = scmp.ge.s32.totalorder %s4741_s15, 4   ;;  %s6287_s30 = smov %s4649_s10 }
 0x5e9   : > { %s6288_s10 = smov %s4653_s11  ;;  %s6289_s11 = smov %s4752_s18 }
 0x5ea   : > { %s6290_s12 = smov %s4741_s15  ;;  %21 = sbr.rel (!%p19_p3) target bundleno = 3 (0x3), region = 94 }
 0x5f1   :  { %3937 = vsyncpa [#allocation5], 1 }
 0x5f2   :  { %3939 = vsyncpa [#allocation5 + $0x1], 1 }

</bundles_post_ra>
